<compile_context>
chip_gen: v7x
topology: tpu7x:2x2x1
jax: 0.10.0
libtpu: 0.0.40
codegen_flags: <defaults>
</compile_context>

<pallas_src>
import jax
import jax.numpy as jnp
from jax import lax
from jax.experimental import pallas as pl
from jax.experimental.pallas import tpu as pltpu

IN_DIM = 512          # ResNet-34 fc.in_features
INTER_DIM = 4096
OUT_DIM = 256
EPS = 1e-5            # torch.nn.BatchNorm1d default eps
TJ = 2048             # tile over the intermediate (4096) dimension
N_SPLIT = 2           # leading "parallel" axis -> both TensorCores on v7x


# ----------------------------------------------------------------------------
# Fused projection-head kernel.
# Grid: (N_SPLIT, INTER_DIM // (N_SPLIT*TJ)).  Axis 0 is "parallel" (one half
# of the hidden dim per TensorCore on v7x); axis 1 is the "arbitrary"
# reduction over column blocks inside a half, accumulated into the resident
# f32 partial-output block.
# ----------------------------------------------------------------------------
def simclr_head_kernel(feat_ref, w1_ref, g1_ref, be1_ref, w2_ref, part_ref):
    j = pl.program_id(1)

    @pl.when(j == 0)
    def _():
        part_ref[...] = jnp.zeros_like(part_ref)

    # --- Layer 1 (this column block): Linear -> BatchNorm1d(batch stats) -> ReLU.
    # BN stats are per-feature, so a column block is exact and independent.
    # Linear bias omitted: it cancels against the train-mode BN mean-subtract.
    h = jnp.dot(feat_ref[...], w1_ref[...],
                preferred_element_type=jnp.float32)               # (N, TJ) f32
    inv_n = 1.0 / h.shape[0]
    m1 = jnp.sum(h, axis=0, keepdims=True) * inv_n
    v1 = jnp.maximum(jnp.sum(h * h, axis=0, keepdims=True) * inv_n - m1 * m1, 0.0)
    # Fold BN into one scale/shift pass (halves the full-width VPU work).
    scale1 = g1_ref[...] * lax.rsqrt(v1 + EPS)
    shift1 = be1_ref[...] - m1 * scale1
    h = jnp.maximum(h * scale1 + shift1, 0.0)

    # --- Layer 2: partial Linear(4096,256) contribution of this column block,
    # accumulated in the f32 output block (VMEM-resident across axis 1).
    part_ref[...] += jnp.dot(h.astype(w2_ref.dtype), w2_ref[...],
                             preferred_element_type=jnp.float32)[None]


# ----------------------------------------------------------------------------
# Parameters (deterministic, synthetic).  Matmul weights stored in bf16.
# Linear biases intentionally absent (cancelled by train-mode BN).
# ----------------------------------------------------------------------------
def init_params(key, in_ch):
    ks = jax.random.split(key, 3)
    p = {}
    # Encoder channel projection (stands in for the ResNet-34 backbone output).
    p["w_enc"] = jax.random.normal(ks[0], (in_ch, IN_DIM), jnp.float32) / jnp.sqrt(in_ch)
    # Linear(512, 4096) stored (in, out); bf16 operands for the MXU.
    p["w1"] = (jax.random.normal(ks[1], (IN_DIM, INTER_DIM), jnp.float32)
               / jnp.sqrt(IN_DIM)).astype(jnp.bfloat16)
    # BatchNorm1d(4096) affine params (PyTorch init: gamma=1, beta=0), f32.
    p["g1"] = jnp.ones((1, INTER_DIM), jnp.float32)
    p["be1"] = jnp.zeros((1, INTER_DIM), jnp.float32)
    # Linear(4096, 256)
    p["w2"] = (jax.random.normal(ks[2], (INTER_DIM, OUT_DIM), jnp.float32)
               / jnp.sqrt(INTER_DIM)).astype(jnp.bfloat16)
    # BatchNorm1d(256)
    p["g2"] = jnp.ones((1, OUT_DIM), jnp.float32)
    p["be2"] = jnp.zeros((1, OUT_DIM), jnp.float32)
    return p


# ----------------------------------------------------------------------------
# Wrapper: tiny encoder stand-in + layout plumbing in plain JAX, projection
# head in ONE pallas_call, (N,256)-sized epilogue (final add + BN2) in JAX.
# ----------------------------------------------------------------------------
def simclr_forward(x_nchw, params):
    N = x_nchw.shape[0]

    # Encoder stand-in: global-average-pool + channel mix as a tiny wrapper op
    # instead of streaming a 256x-expanded weight through the kernel.
    # TODO(synk): real ResNet-34 conv backbone not implementable in-script.
    pooled = jnp.mean(x_nchw, axis=(2, 3)).astype(jnp.float32)        # (N, C)
    feat = jnp.dot(pooled, params["w_enc"]).astype(jnp.bfloat16)      # (N, 512) bf16

    assert INTER_DIM % (N_SPLIT * TJ) == 0
    n_half = INTER_DIM // (N_SPLIT * TJ)    # column blocks per half

    grid_spec = pltpu.PrefetchScalarGridSpec(
        num_scalar_prefetch=0,
        grid=(N_SPLIT, n_half),
        in_specs=[
            pl.BlockSpec((N, IN_DIM), lambda c, j: (0, 0)),                  # feat (resident)
            pl.BlockSpec((IN_DIM, TJ), lambda c, j: (0, c * n_half + j)),    # w1 column block
            pl.BlockSpec((1, TJ), lambda c, j: (0, c * n_half + j)),         # gamma1 block
            pl.BlockSpec((1, TJ), lambda c, j: (0, c * n_half + j)),         # beta1 block
            pl.BlockSpec((TJ, OUT_DIM), lambda c, j: (c * n_half + j, 0)),   # w2 row block
        ],
        out_specs=pl.BlockSpec((1, N, OUT_DIM), lambda c, j: (c, 0, 0)),     # per-half partial
    )

    partials = pl.pallas_call(
        simclr_head_kernel,
        out_shape=jax.ShapeDtypeStruct((N_SPLIT, N, OUT_DIM), jnp.float32),
        grid_spec=grid_spec,
        compiler_params=pltpu.CompilerParams(
            dimension_semantics=("parallel", "arbitrary"),
        ),
    )(feat, params["w1"], params["g1"], params["be1"], params["w2"])

    # Tiny epilogue on (N, 256): combine per-core partials + BatchNorm1d(256).
    z = jnp.sum(partials, axis=0)
    m2 = jnp.mean(z, axis=0, keepdims=True)
    v2 = jnp.var(z, axis=0, keepdims=True)           # biased var, as PyTorch BN normalization
    scale2 = params["g2"] * lax.rsqrt(v2 + EPS)
    shift2 = params["be2"] - m2 * scale2
    return z * scale2 + shift2


if __name__ == "__main__":
    key = jax.random.PRNGKey(0)
    k_x, k_p = jax.random.split(key)

    # Batch = 16 (two augmented views of a micro-batch of 8) -> multiple of 16
    # for bf16 sublane packing.  For real training use >=128/256 rows to fill
    # the MXU; BN stats here use the true (unpadded) row count.
    x = jax.random.normal(k_x, (16, 3, 16, 16), jnp.float32)
    params = init_params(k_p, in_ch=3)

    fwd = jax.jit(simclr_forward)
    out = fwd(x, params)
    out = jax.block_until_ready(out)

    assert out.shape == (16, OUT_DIM), out.shape
    assert bool(jnp.all(jnp.isfinite(out))), "non-finite output"
    print("KERNEL_OK")
</pallas_src>

<mosaic_0001>
module attributes {stable_mosaic.version = 11 : i64} {
  func.func @simclr_head_kernel(%arg0: i32, %arg1: i32, %arg2: memref<16x512xbf16, #tpu.memory_space<vmem>>, %arg3: memref<512x2048xbf16, #tpu.memory_space<vmem>>, %arg4: memref<1x2048xf32, #tpu.memory_space<vmem>>, %arg5: memref<1x2048xf32, #tpu.memory_space<vmem>>, %arg6: memref<2048x256xbf16, #tpu.memory_space<vmem>>, %arg7: memref<1x16x256xf32, #tpu.memory_space<vmem>>) attributes {dimension_semantics = [#tpu.dimension_semantics<parallel>, #tpu.dimension_semantics<arbitrary>], iteration_bounds = array<i64: 2, 1>, scalar_prefetch = 0 : i64, scratch_operands = 0 : i64, tpu.core_type = #tpu.core_type<tc>, window_params = [{pipeline_mode = #tpu.pipeline_mode<synchronous>, transform_indices = @transform_0, window_bounds = array<i64: 16, 512>}, {transform_indices = @transform_1, window_bounds = array<i64: 512, 2048>}, {transform_indices = @transform_2, window_bounds = array<i64: 1, 2048>}, {transform_indices = @transform_3, window_bounds = array<i64: 1, 2048>}, {transform_indices = @transform_4, window_bounds = array<i64: 2048, 256>}, {transform_indices = @transform_5, window_bounds = array<i64: 1, 16, 256>}]} {
    %c0_i32 = arith.constant 0 : i32
    %0 = arith.cmpi eq, %arg1, %c0_i32 : i32
    %1 = arith.extui %0 : i1 to i32
    %c0_i32_0 = arith.constant 0 : i32
    %2 = arith.cmpi ne, %1, %c0_i32_0 : i32
    scf.if %2 {
      %cst_24 = arith.constant 0.000000e+00 : f32
      %40 = vector.broadcast %cst_24 : f32 to vector<1x16x256xf32>
      %c0_25 = arith.constant 0 : index
      %c0_26 = arith.constant 0 : index
      %c0_27 = arith.constant 0 : index
      %41 = vector.load %arg7[%c0_25, %c0_26, %c0_27] : memref<1x16x256xf32, #tpu.memory_space<vmem>>, vector<1x16x256xf32>
      tpu.vector_store %arg7[%c0_25, %c0_26, %c0_27], %40 {strides = array<i32>} : memref<1x16x256xf32, #tpu.memory_space<vmem>>, vector<1x16x256xf32>,
    } else {
    }
    %c0 = arith.constant 0 : index
    %c0_1 = arith.constant 0 : index
    %3 = vector.load %arg2[%c0, %c0_1] : memref<16x512xbf16, #tpu.memory_space<vmem>>, vector<16x512xbf16>
    %c0_2 = arith.constant 0 : index
    %c0_3 = arith.constant 0 : index
    %4 = vector.load %arg3[%c0_2, %c0_3] : memref<512x2048xbf16, #tpu.memory_space<vmem>>, vector<512x2048xbf16>
    %cst = arith.constant dense<0.000000e+00> : vector<16x2048xf32>
    %5 = tpu.matmul %3, %4, %cst {dimension_numbers = #tpu.dot_dimension_numbers<[1], [0], [0], [1], [0, 0, 1, 1], [], []>} : vector<16x512xbf16>, vector<512x2048xbf16>, vector<16x2048xf32> -> vector<16x2048xf32>
    %cst_4 = arith.constant dense<0.000000e+00> : vector<2048xf32>
    %6 = vector.multi_reduction <add>, %5, %cst_4 [0] : vector<16x2048xf32> to vector<2048xf32>
    %7 = vector.shape_cast %6 : vector<2048xf32> to vector<1x2048xf32>
    %cst_5 = arith.constant 6.250000e-02 : f32
    %8 = vector.broadcast %cst_5 : f32 to vector<1x2048xf32>
    %9 = arith.mulf %7, %8 : vector<1x2048xf32>
    %10 = arith.mulf %5, %5 : vector<16x2048xf32>
    %cst_6 = arith.constant dense<0.000000e+00> : vector<2048xf32>
    %11 = vector.multi_reduction <add>, %10, %cst_6 [0] : vector<16x2048xf32> to vector<2048xf32>
    %12 = vector.shape_cast %11 : vector<2048xf32> to vector<1x2048xf32>
    %cst_7 = arith.constant 6.250000e-02 : f32
    %13 = vector.broadcast %cst_7 : f32 to vector<1x2048xf32>
    %14 = arith.mulf %12, %13 : vector<1x2048xf32>
    %15 = arith.mulf %9, %9 : vector<1x2048xf32>
    %16 = arith.subf %14, %15 : vector<1x2048xf32>
    %cst_8 = arith.constant 0.000000e+00 : f32
    %17 = vector.broadcast %cst_8 : f32 to vector<1x2048xf32>
    %18 = arith.maximumf %16, %17 : vector<1x2048xf32>
    %c0_9 = arith.constant 0 : index
    %c0_10 = arith.constant 0 : index
    %19 = vector.load %arg4[%c0_9, %c0_10] : memref<1x2048xf32, #tpu.memory_space<vmem>>, vector<1x2048xf32>
    %cst_11 = arith.constant 9.99999974E-6 : f32
    %20 = vector.broadcast %cst_11 : f32 to vector<1x2048xf32>
    %21 = arith.addf %18, %20 : vector<1x2048xf32>
    %22 = math.rsqrt %21 : vector<1x2048xf32>
    %23 = arith.mulf %19, %22 : vector<1x2048xf32>
    %c0_12 = arith.constant 0 : index
    %c0_13 = arith.constant 0 : index
    %24 = vector.load %arg5[%c0_12, %c0_13] : memref<1x2048xf32, #tpu.memory_space<vmem>>, vector<1x2048xf32>
    %25 = arith.mulf %9, %23 : vector<1x2048xf32>
    %26 = arith.subf %24, %25 : vector<1x2048xf32>
    %27 = vector.broadcast %23 : vector<1x2048xf32> to vector<16x2048xf32>
    %28 = arith.mulf %5, %27 : vector<16x2048xf32>
    %29 = vector.broadcast %26 : vector<1x2048xf32> to vector<16x2048xf32>
    %30 = arith.addf %28, %29 : vector<16x2048xf32>
    %cst_14 = arith.constant 0.000000e+00 : f32
    %31 = vector.broadcast %cst_14 : f32 to vector<16x2048xf32>
    %32 = arith.maximumf %30, %31 : vector<16x2048xf32>
    %c0_15 = arith.constant 0 : index
    %c0_16 = arith.constant 0 : index
    %c0_17 = arith.constant 0 : index
    %33 = vector.load %arg7[%c0_15, %c0_16, %c0_17] : memref<1x16x256xf32, #tpu.memory_space<vmem>>, vector<1x16x256xf32>
    %34 = arith.truncf %32 : vector<16x2048xf32> to vector<16x2048xbf16>
    %c0_18 = arith.constant 0 : index
    %c0_19 = arith.constant 0 : index
    %35 = vector.load %arg6[%c0_18, %c0_19] : memref<2048x256xbf16, #tpu.memory_space<vmem>>, vector<2048x256xbf16>
    %cst_20 = arith.constant dense<0.000000e+00> : vector<16x256xf32>
    %36 = tpu.matmul %34, %35, %cst_20 {dimension_numbers = #tpu.dot_dimension_numbers<[1], [0], [0], [1], [0, 0, 1, 1], [], []>} : vector<16x2048xbf16>, vector<2048x256xbf16>, vector<16x256xf32> -> vector<16x256xf32>
    %37 = vector.shape_cast %36 : vector<16x256xf32> to vector<1x16x256xf32>
    %38 = arith.addf %33, %37 : vector<1x16x256xf32>
    %c0_21 = arith.constant 0 : index
    %c0_22 = arith.constant 0 : index
    %c0_23 = arith.constant 0 : index
    %39 = vector.load %arg7[%c0_21, %c0_22, %c0_23] : memref<1x16x256xf32, #tpu.memory_space<vmem>>, vector<1x16x256xf32>
    tpu.vector_store %arg7[%c0_21, %c0_22, %c0_23], %38 {strides = array<i32>} : memref<1x16x256xf32, #tpu.memory_space<vmem>>, vector<1x16x256xf32>,
    return
  }
  func.func @transform_0(%arg0: i32, %arg1: i32) -> (i32, i32) {
    %c0_i32 = arith.constant 0 : i32
    %c0_i32_0 = arith.constant 0 : i32
    %c0_i32_1 = arith.constant 0 : i32
    return %c0_i32, %c0_i32_0 : i32, i32
  }
  func.func @transform_1(%arg0: i32, %arg1: i32) -> (i32, i32) {
    %c1_i32 = arith.constant 1 : i32
    %0 = arith.muli %arg0, %c1_i32 : i32
    %1 = arith.addi %0, %arg1 : i32
    %c0_i32 = arith.constant 0 : i32
    %c0_i32_0 = arith.constant 0 : i32
    return %c0_i32, %1 : i32, i32
  }
  func.func @transform_2(%arg0: i32, %arg1: i32) -> (i32, i32) {
    %c1_i32 = arith.constant 1 : i32
    %0 = arith.muli %arg0, %c1_i32 : i32
    %1 = arith.addi %0, %arg1 : i32
    %c0_i32 = arith.constant 0 : i32
    %c0_i32_0 = arith.constant 0 : i32
    return %c0_i32, %1 : i32, i32
  }
  func.func @transform_3(%arg0: i32, %arg1: i32) -> (i32, i32) {
    %c1_i32 = arith.constant 1 : i32
    %0 = arith.muli %arg0, %c1_i32 : i32
    %1 = arith.addi %0, %arg1 : i32
    %c0_i32 = arith.constant 0 : i32
    %c0_i32_0 = arith.constant 0 : i32
    return %c0_i32, %1 : i32, i32
  }
  func.func @transform_4(%arg0: i32, %arg1: i32) -> (i32, i32) {
    %c1_i32 = arith.constant 1 : i32
    %0 = arith.muli %arg0, %c1_i32 : i32
    %1 = arith.addi %0, %arg1 : i32
    %c0_i32 = arith.constant 0 : i32
    %c0_i32_0 = arith.constant 0 : i32
    return %1, %c0_i32 : i32, i32
  }
  func.func @transform_5(%arg0: i32, %arg1: i32) -> (i32, i32, i32) {
    %c0_i32 = arith.constant 0 : i32
    %c0_i32_0 = arith.constant 0 : i32
    %c0_i32_1 = arith.constant 0 : i32
    return %arg0, %c0_i32, %c0_i32_0 : i32, i32, i32
  }
}

</mosaic_0001>

<bundles_post_ra>
// kernel: simclr_forward.1
= control target key start
LH: loop header
LB: loop body
LE: loop exit
PB: predicated region body
PF: predicated region fallthrough
CT: control target
= control target key end

     0   :  { %s10274_s0 = inlined_call_operand.vmem [shape: bf16[16,512], index: 0, kind: input, shape index: {}]   ;;  %s10275_s1 = inlined_call_operand.hbm [shape: bf16[512,4096], index: 1, kind: input, shape index: {}]   ;;  %s10276_s2 = inlined_call_operand.hbm [shape: f32[1,4096], index: 2, kind: input, shape index: {}]   ;;  %s10277_s3 = inlined_call_operand.hbm [shape: f32[1,4096], index: 3, kind: input, shape index: {}]   ;;  %s10278_s4 = inlined_call_operand.hbm [shape: bf16[4096,256], index: 4, kind: input, shape index: {}]   ;;  %s10279_s5 = inlined_call_operand.vmem [shape: f32[2,16,256], index: 5, kind: output, shape index: {}]  }
   0x1   :  { %10293 = sst [smem:[#allocation21_spill]] %s10275_s1 }
   0x2   :  { %10294 = sst [smem:[#allocation22_spill]] %s10276_s2 }
   0x3   :  { %10 = vsyncpa [#allocation3], 0 }
   0x4   :  { %12 = vsyncpa [#allocation3 + $0x1], 0 }
   0x5   :  { %13 = vsyncpa [#allocation5], 0 }
   0x6   :  { %15 = vsyncpa [#allocation5 + $0x1], 0 }
   0x7   :  { %16 = vsyncpa [#allocation8], 0 }
   0x8   :  { %18 = vsyncpa [#allocation8 + $0x1], 0  ;;  %s8714_s18 = smov 0   ;;  %s8716_s19 = smov 0  }
   0x9   :  { %s8718_s20 = smov 0   ;;  %s8720_s21 = smov 0  }
   0xa   :  { %s8722_s22 = smov 0   ;;  %s8724_s23 = smov 0  }
   0xb LB: > { %10295 = sst [smem:[#allocation12_spill]] %s8660_s20  ;;  %s10281_s24 = sadd.s32 4294967295, %s8672_s23   ;;  %s8672_s23 = sphi %s8724_s23, %s24_s23   ;;  %s8668_s22 = sphi %s8722_s22, %s10330_s22   ;;  %s8664_s21 = sphi %s8720_s21, %s10329_s21   ;;  %s8660_s20 = sphi %s8718_s20, %s10325_s20   ;;  %s8656_s19 = sphi %s8716_s19, %s10328_s19   ;;  %s8652_s18 = sphi %s8714_s18, %s10327_s18  }
   0xc   : > { %s36_s25 = sadd.s32 1, %s8668_s22  ;;  %s66_s26 = sadd.s32 1, %s8660_s20 }
   0xd   : > { %p38_p0 = scmp.ge.s32.totalorder %s36_s25, 2  ;;  %p73_p1 = scmp.ne.s32.totalorder %s8660_s20, %s8656_s19 }
   0xe   : > { %p74_p2 = scmp.eq.s32.totalorder %s8672_s23, 0  ;;  %p79_p4 = scmp.ne.s32.totalorder %s8656_s19, %s8652_s18 }
   0xf   : > { %s10332_s25 = smov (%p38_p0, %s36_s25), 0  ;;  %p80_p5 = scmp.eq.s32.totalorder %s10281_s24, 0 }
  0x10   : > { %10296 = sst [smem:[#allocation13_spill]] %s10332_s25  ;;  %p75_p3 = por %p74_p2, %p73_p1 }
  0x11   : > { %s63_s27 = ssub.s32 %s8668_s22, %s10332_s25  ;;  %p8755_p7 = por %p80_p5, %p79_p4 }
  0x12   : > { %p64_p6 = scmp.eq.s32.totalorder %s63_s27, 0  ;;  %p8005_p8 = scmp.lt.s32.totalorder %s8672_s23, 2 }
  0x13   : > { %s10297_s28 = scalar_select %p8755_p7, 1, 0 }
  0x14   : > { %s8761_s29 = scalar_select %p64_p6, %s8660_s20, %s66_s26  }
  0x15   : > { %s8764_s30 = sand.u32 1, %s8660_s20   ;;  %p8766_p9 = pnand %p8005_p8, %p75_p3 }
  0x16   : > { %10298 = sst [smem:[#allocation14_spill]] %s8761_s29  ;;  %s238_s7 = sand.u32 1, %s8672_s23  }
  0x17   : > { %s10299_s6 = scalar_select %p8766_p9, 1, 0 }
  0x18   : > { %s10282_s8 = sshll.u32 %s8764_s30, 4  ;;  %s7919_s9 = sshll.u32 %s8668_s22, 8 }
  0x19   : > { %s10300_s2 = sld [smem:[#allocation22_spill]]  ;;  %s242_s13 = scalar_lea.vmem [#allocation4], %s10282_s8 }
  0x1a   : > { %s251_s14 = sshll.u32 %s242_s13, 4  ;;  %s8784_s15 = scalar_lea.sflag [#allocation5], %s238_s7  ;;  %s8782_s14 = int_to_ptr.vmem [resolvable:$true] %s251_s14 }
  0x1b   : > { %p8790_p11 = pneg %p8766_p9 }
  0x1f   : > { %s8778_s12 = scalar_lea.hbm %s10300_s2, %s7919_s9  ;;  %s8499_s27 = scalar_lea.hbm %s10300_s2, 512 }
  0x20   : > { %s8494_s16 = scalar_lea.hbm %s8778_s12, 256  ;;  %p8500_p0 = scmp.lt.u32.totalorder %s8778_s12, %s10300_s2 }
  0x21   : > { %p8495_p10 = scmp.ne.s32.totalorder %s8778_s12, %s8494_s16  ;;  %p8501_p1 = scmp.lt.u32.totalorder %s8499_s27, %s8494_s16 }
  0x22   : > { %p8503_p3 = scmp.lt.u32.totalorder %s8494_s16, %s8778_s12 }
  0x23   : > { %p8497_p12 = pnand %p8790_p11, %p8495_p10  ;;  %p8502_p2 = por %p8501_p1, %p8500_p0 }
  0x25   : > { %p8498_p13 = pneg %p8497_p12  ;;  %p8504_p4 = por %p8503_p3, %p8502_p2 }
  0x27   : > { %p8505_p5 = pnand %p8504_p4, %p8498_p13 }
  0x29   : > { %8508 = shalt.err (!%p8505_p5)
}
  0x2a   : > { %s8509_s7 = scalar_lea.vmem %s8782_s14, 256  ;;  %s8674_s13 = smov [#allocation4]  }
  0x2b   : > { %p8510_p6 = scmp.ne.s32.totalorder %s8782_s14, %s8509_s7  ;;  %s8514_s18 = sshll.u32 %s8674_s13, 4  ;;  %s8515_s18 = int_to_ptr.vmem [resolvable:$false] %s8514_s18 }
  0x2c   : > { %s8516_s26 = scalar_lea.vmem %s8515_s18, 512  ;;  %p8517_p12 = scmp.lt.s32.totalorder %s8782_s14, %s8515_s18 }
  0x2d   : > { %p8512_p8 = pnand %p8510_p6, %p8790_p11  ;;  %p8518_p7 = scmp.lt.s32.totalorder %s8516_s26, %s8509_s7 }
  0x2f   : > { %p8513_p10 = pneg %p8512_p8  ;;  %p8519_p0 = por %p8518_p7, %p8517_p12 }
  0x31   : > { %p8520_p1 = pnand %p8519_p0, %p8513_p10 }
  0x33   : > { %8523 = shalt.err (!%p8520_p1)
}
  0x34   : > { %7998 = dma.hbm_to_vmem [thread:$0]  (!%p8766_p9), %s8778_s12, 256, %s8782_s14, %s8784_s15  }
  0x35   : > { %s8819_s10 = scalar_lea.hbm %s10277_s3, %s7919_s9  ;;  %p7137_p7 = scmp.ge.s32.totalorder %s8672_s23, 1 }
  0x36   : > { %p299_p13 = scmp.lt.s32.totalorder %s8672_s23, 3  ;;  %s7124_s7 = sshll.u32 %s8764_s30, 12 }
  0x37   : > { %s7918_s13 = sshll.u32 %s8668_s22, 10  ;;  %s10303_s1 = sld [smem:[#allocation21_spill]] }
  0x38   : > { %p8823_p2 = pnand %p7137_p7, %p299_p13  ;;  %s220_s12 = scalar_lea.vmem [#allocation2], %s7124_s7 }
  0x39   : > { %s228_s9 = sshll.u32 %s220_s12, 4  ;;  %s217_s14 = scalar_lea.sflag [#allocation3], %s8764_s30  ;;  %s8834_s9 = int_to_ptr.vmem [resolvable:$true] %s228_s9 }
  0x3a   : > { %s10302_s11 = scalar_select %p8823_p2, 1, 0 }
  0x3d   : > { %s8832_s24 = scalar_lea.hbm %s10303_s1, %s7918_s13  ;;  %s8529_s18 = scalar_lea.hbm %s10303_s1, 131072 }
  0x3e   : > { %s8524_s16 = scalar_lea.hbm %s8832_s24, 65536  ;;  %p8530_p6 = scmp.lt.u32.totalorder %s8832_s24, %s10303_s1 }
  0x3f   : > { %p8525_p3 = scmp.ne.s32.totalorder %s8832_s24, %s8524_s16  ;;  %p8531_p8 = scmp.lt.u32.totalorder %s8529_s18, %s8524_s16 }
  0x40   : > { %p8533_p12 = scmp.lt.u32.totalorder %s8524_s16, %s8832_s24 }
  0x41   : > { %p8527_p4 = pnand %p8525_p3, %p8790_p11  ;;  %p8532_p10 = por %p8531_p8, %p8530_p6 }
  0x43   : > { %p8528_p5 = pneg %p8527_p4  ;;  %p8534_p0 = por %p8533_p12, %p8532_p10 }
  0x45   : > { %p8535_p1 = pnand %p8534_p0, %p8528_p5 }
  0x47   : > { %8538 = shalt.err (!%p8535_p1)
}
  0x48   : > { %s8539_s7 = scalar_lea.vmem %s8834_s9, 65536  ;;  %s8675_s8 = smov [#allocation2]  }
  0x49   : > { %p8540_p7 = scmp.ne.s32.totalorder %s8834_s9, %s8539_s7  ;;  %s8544_s12 = sshll.u32 %s8675_s8, 4  ;;  %s8545_s12 = int_to_ptr.vmem [resolvable:$false] %s8544_s12 }
  0x4a   : > { %s8546_s27 = scalar_lea.vmem %s8545_s12, 131072  ;;  %p8547_p4 = scmp.lt.s32.totalorder %s8834_s9, %s8545_s12 }
  0x4b   : > { %p8542_p13 = pnand %p8540_p7, %p8790_p11  ;;  %p8548_p2 = scmp.lt.s32.totalorder %s8546_s27, %s8539_s7 }
  0x4d   : > { %p8543_p3 = pneg %p8542_p13  ;;  %p8549_p6 = por %p8548_p2, %p8547_p4 }
  0x4f   : > { %p8550_p8 = pnand %p8549_p6, %p8543_p3 }
  0x51   : > { %8553 = shalt.err (!%p8550_p8)
}
  0x52   : > { %s8676_s16 = smov 2048   ;;  %s8677_s18 = smov 1024  }
  0x53   : > { %s8678_s13 = smov 64   ;;  %s10304_s26 = sshll.u32 %s8764_s30, 4 }
  0x54   : > { %7995 = dma.hbm_to_vmem [thread:$0]  (!%p8766_p9), %s8832_s24, 65536, %s8834_s9, %s217_s14, %s8676_s16, %s8677_s18, %s8678_s13  }
  0x55   : > { %s262_s7 = scalar_lea.vmem [#allocation6], %s10304_s26  ;;  %s7133_s12 = sshll.u32 %s8764_s30, 11 }
  0x56   : > { %s271_s8 = sshll.u32 %s262_s7, 4  ;;  %s8554_s27 = scalar_lea.hbm %s8819_s10, 256  ;;  %s272_s8 = int_to_ptr.vmem [resolvable:$true] %s271_s8 }
  0x57   : > { %p8555_p2 = scmp.ne.s32.totalorder %s8819_s10, %s8554_s27  ;;  %s8559_s25 = scalar_lea.hbm %s10277_s3, 512 }
  0x58   : > { %p8560_p12 = scmp.lt.u32.totalorder %s8819_s10, %s10277_s3  ;;  %p8561_p0 = scmp.lt.u32.totalorder %s8559_s25, %s8554_s27 }
  0x59   : > { %p8557_p5 = pnand %p8555_p2, %p8790_p11  ;;  %p8563_p7 = scmp.lt.u32.totalorder %s8554_s27, %s8819_s10 }
  0x5a   : > { %p8562_p1 = por %p8561_p0, %p8560_p12 }
  0x5b   : > { %p8558_p10 = pneg %p8557_p5 }
  0x5c   : > { %p8564_p13 = por %p8563_p7, %p8562_p1 }
  0x5e   : > { %p8565_p3 = pnand %p8564_p13, %p8558_p10 }
  0x60   : > { %8568 = shalt.err (!%p8565_p3)
}
  0x61   : > { %s8569_s24 = scalar_lea.vmem %s272_s8, 256  ;;  %s8679_s9 = smov [#allocation6]  }
  0x62   : > { %p8570_p4 = scmp.ne.s32.totalorder %s272_s8, %s8569_s24  ;;  %s8574_s14 = sshll.u32 %s8679_s9, 4  ;;  %s8575_s14 = int_to_ptr.vmem [resolvable:$false] %s8574_s14 }
  0x63   : > { %s8576_s1 = scalar_lea.vmem %s8575_s14, 512  ;;  %p8577_p2 = scmp.lt.s32.totalorder %s272_s8, %s8575_s14 }
  0x64   : > { %p8572_p6 = pnand %p8570_p4, %p8790_p11  ;;  %p8578_p5 = scmp.lt.s32.totalorder %s8576_s1, %s8569_s24 }
  0x66   : > { %p8573_p8 = pneg %p8572_p6  ;;  %p8579_p9 = por %p8578_p5, %p8577_p2 }
  0x68   : > { %p8580_p0 = pnand %p8579_p9, %p8573_p8 }
  0x6a   : > { %8583 = shalt.err (!%p8580_p0)
}
  0x6b   : > { %p10305_p12 = scmp.ne.s32.totalorder %s10299_s6, 0  ;;  %s7922_s2 = sshll.u32 %s8668_s22, 15 }
  0x6c   : > { %s8885_s29 = scalar_lea.hbm %s10278_s4, %s7922_s2  ;;  %s282_s16 = scalar_lea.vmem [#allocation7], %s7133_s12 }
  0x6d   : > { %8001 = dma.hbm_to_vmem [thread:$0]  (!%p10305_p12), %s8819_s10, 256, %s272_s8, %s8784_s15  }
  0x6e   : > { %s291_s18 = sshll.u32 %s282_s16, 4  ;;  %s279_s13 = scalar_lea.sflag [#allocation8], %s8764_s30  ;;  %s8889_s18 = int_to_ptr.vmem [resolvable:$true] %s291_s18 }
  0x6f   : > { %s8584_s26 = scalar_lea.hbm %s8885_s29, 32768  ;;  %s8589_s7 = scalar_lea.hbm %s10278_s4, 65536 }
  0x70   : > { %p8585_p9 = scmp.ne.s32.totalorder %s8885_s29, %s8584_s26  ;;  %p8590_p7 = scmp.lt.u32.totalorder %s8885_s29, %s10278_s4 }
  0x71   : > { %p8591_p13 = scmp.lt.u32.totalorder %s8589_s7, %s8584_s26  ;;  %p8593_p4 = scmp.lt.u32.totalorder %s8584_s26, %s8885_s29 }
  0x72   : > { %p8587_p10 = pnand %p8585_p9, %p8790_p11 }
  0x73   : > { %p8592_p3 = por %p8591_p13, %p8590_p7 }
  0x74   : > { %p8588_p1 = pneg %p8587_p10 }
  0x75   : > { %p8594_p6 = por %p8593_p4, %p8592_p3 }
  0x77   : > { %p8595_p8 = pnand %p8594_p6, %p8588_p1 }
  0x79   : > { %8598 = shalt.err (!%p8595_p8)
}
  0x7a   : > { %s8599_s12 = scalar_lea.vmem %s8889_s18, 32768  ;;  %s8680_s24 = smov [#allocation7]  }
  0x7b   : > { %p8600_p2 = scmp.ne.s32.totalorder %s8889_s18, %s8599_s12  ;;  %s8604_s9 = sshll.u32 %s8680_s24, 4  ;;  %s8605_s9 = int_to_ptr.vmem [resolvable:$false] %s8604_s9 }
  0x7c   : > { %s8606_s14 = scalar_lea.vmem %s8605_s9, 65536  ;;  %p8607_p9 = scmp.lt.s32.totalorder %s8889_s18, %s8605_s9 }
  0x7d   : > { %p8602_p5 = pnand %p8600_p2, %p8790_p11  ;;  %p8608_p10 = scmp.lt.s32.totalorder %s8606_s14, %s8599_s12 }
  0x7f   : > { %p8603_p0 = pneg %p8602_p5  ;;  %p8609_p7 = por %p8608_p10, %p8607_p9 }
  0x81   : > { %p8610_p13 = pnand %p8609_p7, %p8603_p0 }
  0x83   : > { %8613 = shalt.err (!%p8610_p13)
}
  0x84   : > { %s8681_s1 = smov 128   ;;  %s8682_s2 = smov 8  }
  0x85   : > { %8004 = dma.hbm_to_vmem [thread:$0]  (!%p10305_p12), %s8885_s29, 32768, %s8889_s18, %s279_s13, %s8681_s1, %s8681_s1, %s8682_s2  }
  0x86   : > { %p10306_p11 = scmp.ne.s32.totalorder %s10302_s11, 0 }
  0x88   : > { %303 = sbr.rel (%p10306_p11) target bundleno = 1622 (0x656), region = 40 }
  0x8f   : > { %s305_s17 = sand.u32 1, %s8656_s19   ;;  %p10307_p1 = scmp.ne.s32.totalorder %s10297_s28, 0 }
  0x90   : > { %s7138_s20 = sshll.u32 %s305_s17, 12  ;;  %s306_s25 = scalar_lea.sflag [#allocation3], %s305_s17 }
  0x91   : > { %s8918_s16 = scalar_lea.vmem [#allocation2], %s7138_s20 }
  0x92   : > { %8639 = dma.done.wait (%p10307_p1), %s306_s25, 65536  }
  0x93   : > { %8641 = vsyncadd (%p10307_p1), %s306_s25, 4294901760  ;;  %s10308_s26 = sadd.s32 4294967295, %s8672_s23   ;;  %s7139_s6 = sshll.u32 %s305_s17, 4 }
  0x94   : > { %s314_s30 = sand.u32 1, %s10308_s26   ;;  %s8926_s11 = scalar_lea.vmem [#allocation4], %s7139_s6 }
  0x95   : > { %s315_s29 = scalar_lea.sflag [#allocation5], %s314_s30 }
  0x96   : > { %8643 = dma.done.wait (%p10307_p1), %s315_s29, 512  }
  0x97   : > { %8645 = vsyncadd (%p10307_p1), %s315_s29, 4294966784  ;;  %s7141_s18 = sshll.u32 %s305_s17, 11  ;;  %s8932_s13 = scalar_lea.vmem [#allocation6], %s7139_s6 }
  0x98   : > { %s333_s15 = scalar_lea.sflag [#allocation8], %s305_s17  ;;  %s8934_s10 = scalar_lea.vmem [#allocation7], %s7141_s18 }
  0x99   : > { %8647 = dma.done.wait (%p10307_p1), %s333_s15, 32768  }
  0x9a   : > { %8649 = vsyncadd (%p10307_p1), %s333_s15, 4294934528  ;;  %v403_v0 = vld [vmem:[%s8918_s16] sm:$0xff]  ;;  %p386_p12 = scmp.lt.s32.totalorder %s8664_s21, 1 }
  0x9b   : > { %v411_v1 = vld [vmem:[%s8918_s16 + $0x40] sm:$0xff] }
  0x9c   : > { %v419_v2 = vld [vmem:[%s8918_s16 + $0x80] sm:$0xff]  ;;  %v7149_v3 = vcombine.high %v403_v0, %v411_v1  ;;  %v7148_v4 = vcombine.low %v403_v0, %v411_v1  ;;  %s10334_s21 = smov (!%p386_p12, %s8664_s21), 1 }
  0x9d   : > { %v427_v5 = vld [vmem:[%s8918_s16 + $0xc0] sm:$0xff] }
  0x9e   : > { %v7165_v6 = vcombine.high %v419_v2, %v427_v5  ;;  %v435_v7 = vld [vmem:[%s8918_s16 + $0x100] sm:$0xff]  ;;  %3495 = vmatprep.subr.bf16.mxu1 %v7149_v3  ;;  %v7164_v9 = vcombine.low %v419_v2, %v427_v5 }
  0x9f   : > { %v443_v8 = vld [vmem:[%s8918_s16 + $0x140] sm:$0xff]  ;;  %3496 = vmatpush1.bf16.msra.mxu1 %v7148_v4 }
  0xa0   : > { %3497 = vmatprep.subr.bf16.mxu1 %v7165_v6  ;;  %v7181_v10 = vcombine.high %v435_v7, %v443_v8  ;;  %v451_v11 = vld [vmem:[%s8918_s16 + $0x180] sm:$0xff]  ;;  %v7180_v13 = vcombine.low %v435_v7, %v443_v8 }
  0xa1   : > { %v459_v12 = vld [vmem:[%s8918_s16 + $0x1c0] sm:$0xff] }
  0xa2   : > { %v7197_v14 = vcombine.high %v451_v11, %v459_v12  ;;  %v467_v15 = vld [vmem:[%s8918_s16 + $0x200] sm:$0xff]  ;;  %v7196_v18 = vcombine.low %v451_v11, %v459_v12 }
  0xa3   : > { %3498 = vmatpush1.bf16.msra.mxu1 %v7164_v9  ;;  %v475_v16 = vld [vmem:[%s8918_s16 + $0x240] sm:$0xff] }
  0xa4   : > { %3499 = vmatprep.subr.bf16.mxu1 %v7181_v10  ;;  %v8953_v17 = vld [vmem:[%s10274_s0 + $0x4] ss:$16 sps:$4 sm:$0xff]   ;;  %v7213_v19 = vcombine.high %v467_v15, %v475_v16  ;;  %v7212_v22 = vcombine.low %v467_v15, %v475_v16  ;;  %v8986_v6 = vld [vmem:[%s10274_s0] ss:$16 sps:$4 sm:$0xff]   ;;  %v8993_v10 = vld [vmem:[%s10274_s0 + $0xc] ss:$16 sps:$4 sm:$0xff]  }
  0xa5   : > { %3527 = vmatprep.mubr.bf16.mxu1 %v8953_v17  ;;  %v483_v20 = vld [vmem:[%s8918_s16 + $0x280] sm:$0xff]  ;;  %3871 = vmatprep.mubr.bf16.mxu0 %v8953_v17 }
  0xa6   : > { %v491_v21 = vld [vmem:[%s8918_s16 + $0x2c0] sm:$0xff] }
  0xa7   : > { %3500 = vmatpush1.bf16.msra.mxu1 %v7180_v13  ;;  %v7229_v23 = vcombine.high %v483_v20, %v491_v21  ;;  %v499_v24 = vld [vmem:[%s8918_s16 + $0x300] sm:$0xff]  ;;  %v7228_v26 = vcombine.low %v483_v20, %v491_v21 }
  0xa8   : > { %3501 = vmatprep.subr.bf16.mxu1 %v7197_v14  ;;  %v507_v25 = vld [vmem:[%s8918_s16 + $0x340] sm:$0xff] }
  0xa9   : > { %v7245_v27 = vcombine.high %v499_v24, %v507_v25  ;;  %v515_v28 = vld [vmem:[%s8918_s16 + $0x380] sm:$0xff]  ;;  %v7244_v30 = vcombine.low %v499_v24, %v507_v25 }
  0xaa   : > { %v523_v29 = vld [vmem:[%s8918_s16 + $0x3c0] sm:$0xff] }
  0xab   : > { %3502 = vmatpush1.bf16.msra.mxu1 %v7196_v18  ;;  %v7261_v31 = vcombine.high %v515_v28, %v523_v29  ;;  %v531_v32 = vld [vmem:[%s8918_s16 + $0x400] sm:$0xff]  ;;  %v7260_v34 = vcombine.low %v515_v28, %v523_v29 }
  0xac   : > { %3503 = vmatprep.subr.bf16.mxu1 %v7213_v19  ;;  %v539_v33 = vld [vmem:[%s8918_s16 + $0x440] sm:$0xff] }
  0xad   : > { %v547_v35 = vld [vmem:[%s8918_s16 + $0x480] sm:$0xff]  ;;  %v7277_v36 = vcombine.high %v531_v32, %v539_v33  ;;  %v7276_v38 = vcombine.low %v531_v32, %v539_v33 }
  0xae   : > { %v555_v37 = vld [vmem:[%s8918_s16 + $0x4c0] sm:$0xff] }
  0xaf   : > { %3504 = vmatpush1.bf16.msra.mxu1 %v7212_v22  ;;  %v563_v39 = vld [vmem:[%s8918_s16 + $0x500] sm:$0xff]  ;;  %v7293_v41 = vcombine.high %v547_v35, %v555_v37  ;;  %v7292_v42 = vcombine.low %v547_v35, %v555_v37 }
  0xb0   : > { %3505 = vmatprep.subr.bf16.mxu1 %v7229_v23  ;;  %v571_v40 = vld [vmem:[%s8918_s16 + $0x540] sm:$0xff] }
  0xb1   : > { %v579_v43 = vld [vmem:[%s8918_s16 + $0x580] sm:$0xff]  ;;  %v7309_v45 = vcombine.high %v563_v39, %v571_v40  ;;  %v7308_v46 = vcombine.low %v563_v39, %v571_v40 }
  0xb2   : > { %v587_v44 = vld [vmem:[%s8918_s16 + $0x5c0] sm:$0xff] }
  0xb3   : > { %3506 = vmatpush1.bf16.msra.mxu1 %v7228_v26  ;;  %v595_v47 = vld [vmem:[%s8918_s16 + $0x600] sm:$0xff]  ;;  %v7325_v49 = vcombine.high %v579_v43, %v587_v44  ;;  %v7324_v50 = vcombine.low %v579_v43, %v587_v44 }
  0xb4   : > { %3507 = vmatprep.subr.bf16.mxu1 %v7245_v27  ;;  %v603_v48 = vld [vmem:[%s8918_s16 + $0x640] sm:$0xff] }
  0xb5   : > { %v611_v51 = vld [vmem:[%s8918_s16 + $0x680] sm:$0xff]  ;;  %v7341_v53 = vcombine.high %v595_v47, %v603_v48  ;;  %v7340_v54 = vcombine.low %v595_v47, %v603_v48 }
  0xb6   : > { %v619_v52 = vld [vmem:[%s8918_s16 + $0x6c0] sm:$0xff] }
  0xb7   : > { %3508 = vmatpush1.bf16.msra.mxu1 %v7244_v30  ;;  %v627_v55 = vld [vmem:[%s8918_s16 + $0x700] sm:$0xff]  ;;  %v7357_v57 = vcombine.high %v611_v51, %v619_v52  ;;  %v7356_v58 = vcombine.low %v611_v51, %v619_v52 }
  0xb8   : > { %3509 = vmatprep.subr.bf16.mxu1 %v7261_v31  ;;  %v635_v56 = vld [vmem:[%s8918_s16 + $0x740] sm:$0xff] }
  0xb9   : > { %v643_v59 = vld [vmem:[%s8918_s16 + $0x780] sm:$0xff]  ;;  %v7373_v61 = vcombine.high %v627_v55, %v635_v56  ;;  %v7372_v62 = vcombine.low %v627_v55, %v635_v56 }
  0xba   : > { %v651_v60 = vld [vmem:[%s8918_s16 + $0x7c0] sm:$0xff] }
  0xbb   : > { %3510 = vmatpush1.bf16.msra.mxu1 %v7260_v34  ;;  %v659_v63 = vld [vmem:[%s8918_s16 + $0x800] sm:$0xff]  ;;  %v7389_v1 = vcombine.high %v643_v59, %v651_v60  ;;  %v7388_v2 = vcombine.low %v643_v59, %v651_v60 }
  0xbc   : > { %3511 = vmatprep.subr.bf16.mxu1 %v7277_v36  ;;  %v667_v0 = vld [vmem:[%s8918_s16 + $0x840] sm:$0xff] }
  0xbd   : > { %v675_v3 = vld [vmem:[%s8918_s16 + $0x880] sm:$0xff]  ;;  %v7405_v5 = vcombine.high %v659_v63, %v667_v0  ;;  %v7404_v7 = vcombine.low %v659_v63, %v667_v0 }
  0xbe   : > { %v683_v4 = vld [vmem:[%s8918_s16 + $0x8c0] sm:$0xff] }
  0xbf   : > { %3512 = vmatpush1.bf16.msra.mxu1 %v7276_v38  ;;  %v691_v8 = vld [vmem:[%s8918_s16 + $0x900] sm:$0xff]  ;;  %v7421_v11 = vcombine.high %v675_v3, %v683_v4  ;;  %v7420_v12 = vcombine.low %v675_v3, %v683_v4  ;;  %v412_v3 = vld [vmem:[%s8918_s16 + $0x48] sm:$0xff] }
  0xc0   : > { %3513 = vmatprep.subr.bf16.mxu1 %v7293_v41  ;;  %v699_v9 = vld [vmem:[%s8918_s16 + $0x940] sm:$0xff] }
  0xc1   : > { %v707_v13 = vld [vmem:[%s8918_s16 + $0x980] sm:$0xff]  ;;  %v7437_v15 = vcombine.high %v691_v8, %v699_v9  ;;  %v7436_v16 = vcombine.low %v691_v8, %v699_v9  ;;  %v428_v8 = vld [vmem:[%s8918_s16 + $0xc8] sm:$0xff] }
  0xc2   : > { %v715_v14 = vld [vmem:[%s8918_s16 + $0x9c0] sm:$0xff]  ;;  %v9030_v9 = vld [vmem:[%s10274_s0 + $0x8] ss:$16 sps:$4 sm:$0xff]  }
  0xc3   : > { %3514 = vmatpush1.bf16.msra.mxu1 %v7292_v42  ;;  %v723_v18 = vld [vmem:[%s8918_s16 + $0xa00] sm:$0xff]  ;;  %v7453_v20 = vcombine.high %v707_v13, %v715_v14  ;;  %v7452_v21 = vcombine.low %v707_v13, %v715_v14  ;;  %v436_v13 = vld [vmem:[%s8918_s16 + $0x108] sm:$0xff] }
  0xc4   : > { %3515 = vmatprep.subr.bf16.mxu1 %v7309_v45  ;;  %v731_v19 = vld [vmem:[%s8918_s16 + $0xa40] sm:$0xff]  ;;  %v444_v14 = vld [vmem:[%s8918_s16 + $0x148] sm:$0xff] }
  0xc5   : > { %v739_v22 = vld [vmem:[%s8918_s16 + $0xa80] sm:$0xff]  ;;  %v7469_v24 = vcombine.high %v723_v18, %v731_v19  ;;  %v7468_v25 = vcombine.low %v723_v18, %v731_v19  ;;  %v7183_v18 = vcombine.high %v436_v13, %v444_v14  ;;  %v452_v19 = vld [vmem:[%s8918_s16 + $0x188] sm:$0xff] }
  0xc6   : > { %v747_v23 = vld [vmem:[%s8918_s16 + $0xac0] sm:$0xff] }
  0xc7   : > { %3516 = vmatpush1.bf16.msra.mxu1 %v7308_v46  ;;  %v755_v26 = vld [vmem:[%s8918_s16 + $0xb00] sm:$0xff]  ;;  %v7485_v28 = vcombine.high %v739_v22, %v747_v23  ;;  %v7484_v29 = vcombine.low %v739_v22, %v747_v23  ;;  %v468_v23 = vld [vmem:[%s8918_s16 + $0x208] sm:$0xff] }
  0xc8   : > { %3517 = vmatprep.subr.bf16.mxu1 %v7325_v49  ;;  %v763_v27 = vld [vmem:[%s8918_s16 + $0xb40] sm:$0xff] }
  0xc9   : > { %v771_v30 = vld [vmem:[%s8918_s16 + $0xb80] sm:$0xff]  ;;  %v7501_v32 = vcombine.high %v755_v26, %v763_v27  ;;  %v7500_v33 = vcombine.low %v755_v26, %v763_v27  ;;  %v492_v27 = vld [vmem:[%s8918_s16 + $0x2c8] sm:$0xff] }
  0xca   : > { %v779_v31 = vld [vmem:[%s8918_s16 + $0xbc0] sm:$0xff] }
  0xcb   : > { %3518 = vmatpush1.bf16.msra.mxu1 %v7324_v50  ;;  %v787_v34 = vld [vmem:[%s8918_s16 + $0xc00] sm:$0xff]  ;;  %v7517_v36 = vcombine.high %v771_v30, %v779_v31  ;;  %v7516_v37 = vcombine.low %v771_v30, %v779_v31  ;;  %v500_v30 = vld [vmem:[%s8918_s16 + $0x308] sm:$0xff] }
  0xcc   : > { %3519 = vmatprep.subr.bf16.mxu1 %v7341_v53  ;;  %v795_v35 = vld [vmem:[%s8918_s16 + $0xc40] sm:$0xff]  ;;  %v508_v31 = vld [vmem:[%s8918_s16 + $0x348] sm:$0xff] }
  0xcd   : > { %v803_v38 = vld [vmem:[%s8918_s16 + $0xc80] sm:$0xff]  ;;  %v7533_v40 = vcombine.high %v787_v34, %v795_v35  ;;  %v7532_v41 = vcombine.low %v787_v34, %v795_v35  ;;  %v516_v34 = vld [vmem:[%s8918_s16 + $0x388] sm:$0xff] }
  0xce   : > { %v811_v39 = vld [vmem:[%s8918_s16 + $0xcc0] sm:$0xff]  ;;  %v524_v35 = vld [vmem:[%s8918_s16 + $0x3c8] sm:$0xff] }
  0xcf   : > { %3520 = vmatpush1.bf16.msra.mxu1 %v7340_v54  ;;  %v819_v42 = vld [vmem:[%s8918_s16 + $0xd00] sm:$0xff]  ;;  %v7549_v44 = vcombine.high %v803_v38, %v811_v39  ;;  %v7548_v45 = vcombine.low %v803_v38, %v811_v39  ;;  %v532_v38 = vld [vmem:[%s8918_s16 + $0x408] sm:$0xff] }
  0xd0   : > { %3521 = vmatprep.subr.bf16.mxu1 %v7357_v57  ;;  %v827_v43 = vld [vmem:[%s8918_s16 + $0xd40] sm:$0xff]  ;;  %v540_v39 = vld [vmem:[%s8918_s16 + $0x448] sm:$0xff] }
  0xd1   : > { %v835_v46 = vld [vmem:[%s8918_s16 + $0xd80] sm:$0xff]  ;;  %v7565_v48 = vcombine.high %v819_v42, %v827_v43  ;;  %v7564_v49 = vcombine.low %v819_v42, %v827_v43  ;;  %v548_v42 = vld [vmem:[%s8918_s16 + $0x488] sm:$0xff] }
  0xd2   : > { %v843_v47 = vld [vmem:[%s8918_s16 + $0xdc0] sm:$0xff]  ;;  %v556_v43 = vld [vmem:[%s8918_s16 + $0x4c8] sm:$0xff] }
  0xd3   : > { %3522 = vmatpush1.bf16.msra.mxu1 %v7356_v58  ;;  %v851_v50 = vld [vmem:[%s8918_s16 + $0xe00] sm:$0xff]  ;;  %v7581_v52 = vcombine.high %v835_v46, %v843_v47  ;;  %v7580_v53 = vcombine.low %v835_v46, %v843_v47  ;;  %v564_v46 = vld [vmem:[%s8918_s16 + $0x508] sm:$0xff] }
  0xd4   : > { %3523 = vmatprep.subr.bf16.mxu1 %v7373_v61  ;;  %v859_v51 = vld [vmem:[%s8918_s16 + $0xe40] sm:$0xff]  ;;  %v572_v47 = vld [vmem:[%s8918_s16 + $0x548] sm:$0xff] }
  0xd5   : > { %v867_v54 = vld [vmem:[%s8918_s16 + $0xe80] sm:$0xff]  ;;  %v7597_v56 = vcombine.high %v851_v50, %v859_v51  ;;  %v7596_v57 = vcombine.low %v851_v50, %v859_v51  ;;  %v580_v50 = vld [vmem:[%s8918_s16 + $0x588] sm:$0xff] }
  0xd6   : > { %v875_v55 = vld [vmem:[%s8918_s16 + $0xec0] sm:$0xff]  ;;  %v588_v51 = vld [vmem:[%s8918_s16 + $0x5c8] sm:$0xff] }
  0xd7   : > { %3524 = vmatpush1.bf16.msra.mxu1 %v7372_v62  ;;  %v883_v58 = vld [vmem:[%s8918_s16 + $0xf00] sm:$0xff]  ;;  %v7613_v60 = vcombine.high %v867_v54, %v875_v55  ;;  %v7612_v61 = vcombine.low %v867_v54, %v875_v55  ;;  %v596_v54 = vld [vmem:[%s8918_s16 + $0x608] sm:$0xff] }
  0xd8   : > { %3525 = vmatprep.subr.bf16.mxu1 %v7389_v1  ;;  %v891_v59 = vld [vmem:[%s8918_s16 + $0xf40] sm:$0xff]  ;;  %v604_v55 = vld [vmem:[%s8918_s16 + $0x648] sm:$0xff] }
  0xd9   : > { %v899_v62 = vld [vmem:[%s8918_s16 + $0xf80] sm:$0xff]  ;;  %v7629_v0 = vcombine.high %v883_v58, %v891_v59  ;;  %v7628_v1 = vcombine.low %v883_v58, %v891_v59  ;;  %v612_v58 = vld [vmem:[%s8918_s16 + $0x688] sm:$0xff] }
  0xda   : > { %v907_v63 = vld [vmem:[%s8918_s16 + $0xfc0] sm:$0xff]  ;;  %v620_v59 = vld [vmem:[%s8918_s16 + $0x6c8] sm:$0xff] }
  0xdb   : > { %3526 = vmatpush1.bf16.msra.mxu1 %v7388_v2  ;;  %v404_v2 = vld [vmem:[%s8918_s16 + $0x8] sm:$0xff]  ;;  %v7645_v4 = vcombine.high %v899_v62, %v907_v63 }
  0xdc   : > { %3538 = vmatprep.subr.bf16.mxu1 %v7405_v5  ;;  %v7644_v5 = vcombine.low %v899_v62, %v907_v63  ;;  %v628_v62 = vld [vmem:[%s8918_s16 + $0x708] sm:$0xff] }
  0xdd   : > { %v636_v63 = vld [vmem:[%s8918_s16 + $0x748] sm:$0xff] }
  0xde   : > { %3528 = vmatmul.mubr.bf16.vlgmr.msra.gmra.mrb[0].mxu1 %v8986_v6 }
  0xdf   : > { %3539 = vmatpush1.bf16.msra.mxu1 %v7404_v7  ;;  %3570 = vmatprep.mubr.bf16.mxu1 %v8993_v10  ;;  %v420_v7 = vld [vmem:[%s8918_s16 + $0x88] sm:$0xff] }
  0xe0   : > { %3540 = vmatprep.subr.bf16.mxu1 %v7421_v11  ;;  %v7151_v11 = vcombine.high %v404_v2, %v412_v3 }
  0xe3   : > { %3541 = vmatpush1.bf16.msra.mxu1 %v7420_v12  ;;  %v7150_v12 = vcombine.low %v404_v2, %v412_v3  ;;  %v644_v2 = vld [vmem:[%s8918_s16 + $0x788] sm:$0xff] }
  0xe4   : > { %3542 = vmatprep.subr.bf16.mxu1 %v7437_v15  ;;  %v7167_v15 = vcombine.high %v420_v7, %v428_v8  ;;  %v652_v3 = vld [vmem:[%s8918_s16 + $0x7c8] sm:$0xff] }
  0xe7   : > { %3543 = vmatpush1.bf16.msra.mxu1 %v7436_v16  ;;  %v7166_v16 = vcombine.low %v420_v7, %v428_v8  ;;  %v660_v7 = vld [vmem:[%s8918_s16 + $0x808] sm:$0xff] }
  0xe8   : > { %3544 = vmatprep.subr.bf16.mxu1 %v7453_v20  ;;  %v460_v20 = vld [vmem:[%s8918_s16 + $0x1c8] sm:$0xff] }
  0xe9   : > { %v7199_v22 = vcombine.high %v452_v19, %v460_v20  ;;  %v668_v8 = vld [vmem:[%s8918_s16 + $0x848] sm:$0xff] }
  0xeb   : > { %3545 = vmatpush1.bf16.msra.mxu1 %v7452_v21  ;;  %v7182_v21 = vcombine.low %v436_v13, %v444_v14  ;;  %v676_v13 = vld [vmem:[%s8918_s16 + $0x888] sm:$0xff] }
  0xec   : > { %3546 = vmatprep.subr.bf16.mxu1 %v7469_v24  ;;  %v476_v24 = vld [vmem:[%s8918_s16 + $0x248] sm:$0xff] }
  0xed   : > { %v7215_v26 = vcombine.high %v468_v23, %v476_v24  ;;  %v684_v14 = vld [vmem:[%s8918_s16 + $0x8c8] sm:$0xff] }
  0xef   : > { %3547 = vmatpush1.bf16.msra.mxu1 %v7468_v25  ;;  %v7198_v25 = vcombine.low %v452_v19, %v460_v20  ;;  %v700_v19 = vld [vmem:[%s8918_s16 + $0x948] sm:$0xff]  ;;  %v7422_v20 = vcombine.low %v676_v13, %v684_v14 }
  0xf0   : > { %3548 = vmatprep.subr.bf16.mxu1 %v7485_v28  ;;  %v7214_v28 = vcombine.low %v468_v23, %v476_v24  ;;  %v716_v23 = vld [vmem:[%s8918_s16 + $0x9c8] sm:$0xff] }
  0xf3   : > { %3549 = vmatpush1.bf16.msra.mxu1 %v7484_v29 }
  0xf4   : > { %3550 = vmatprep.subr.bf16.mxu1 %v7501_v32 }
  0xf7   : > { %3551 = vmatpush1.bf16.msra.mxu1 %v7500_v33  ;;  %v7247_v33 = vcombine.high %v500_v30, %v508_v31 }
  0xf8   : > { %3552 = vmatprep.subr.bf16.mxu1 %v7517_v36  ;;  %v7246_v36 = vcombine.low %v500_v30, %v508_v31  ;;  %v756_v31 = vld [vmem:[%s8918_s16 + $0xb08] sm:$0xff] }
  0xfb   : > { %3553 = vmatpush1.bf16.msra.mxu1 %v7516_v37  ;;  %v7263_v37 = vcombine.high %v516_v34, %v524_v35 }
  0xfc   : > { %3554 = vmatprep.subr.bf16.mxu1 %v7533_v40  ;;  %v7262_v40 = vcombine.low %v516_v34, %v524_v35  ;;  %v772_v35 = vld [vmem:[%s8918_s16 + $0xb88] sm:$0xff] }
  0xff   : > { %3555 = vmatpush1.bf16.msra.mxu1 %v7532_v41  ;;  %v7279_v41 = vcombine.high %v532_v38, %v540_v39 }
 0x100   : > { %3556 = vmatprep.subr.bf16.mxu1 %v7549_v44  ;;  %v7278_v44 = vcombine.low %v532_v38, %v540_v39  ;;  %v788_v39 = vld [vmem:[%s8918_s16 + $0xc08] sm:$0xff] }
 0x103   : > { %3557 = vmatpush1.bf16.msra.mxu1 %v7548_v45  ;;  %v7295_v45 = vcombine.high %v548_v42, %v556_v43 }
 0x104   : > { %3558 = vmatprep.subr.bf16.mxu1 %v7565_v48  ;;  %v7294_v48 = vcombine.low %v548_v42, %v556_v43  ;;  %v804_v43 = vld [vmem:[%s8918_s16 + $0xc88] sm:$0xff] }
 0x107   : > { %3559 = vmatpush1.bf16.msra.mxu1 %v7564_v49  ;;  %v7311_v49 = vcombine.high %v564_v46, %v572_v47 }
 0x108   : > { %3560 = vmatprep.subr.bf16.mxu1 %v7581_v52  ;;  %v7310_v52 = vcombine.low %v564_v46, %v572_v47  ;;  %v820_v47 = vld [vmem:[%s8918_s16 + $0xd08] sm:$0xff] }
 0x10b   : > { %3561 = vmatpush1.bf16.msra.mxu1 %v7580_v53  ;;  %v7327_v53 = vcombine.high %v580_v50, %v588_v51 }
 0x10c   : > { %3562 = vmatprep.subr.bf16.mxu1 %v7597_v56  ;;  %v7326_v56 = vcombine.low %v580_v50, %v588_v51  ;;  %v836_v51 = vld [vmem:[%s8918_s16 + $0xd88] sm:$0xff] }
 0x10f   : > { %3563 = vmatpush1.bf16.msra.mxu1 %v7596_v57  ;;  %v7343_v57 = vcombine.high %v596_v54, %v604_v55 }
 0x110   : > { %3564 = vmatprep.subr.bf16.mxu1 %v7613_v60  ;;  %v7342_v60 = vcombine.low %v596_v54, %v604_v55  ;;  %v852_v55 = vld [vmem:[%s8918_s16 + $0xe08] sm:$0xff] }
 0x113   : > { %3565 = vmatpush1.bf16.msra.mxu1 %v7612_v61  ;;  %v7359_v61 = vcombine.high %v612_v58, %v620_v59 }
 0x114   : > { %3566 = vmatprep.subr.bf16.mxu1 %v7629_v0  ;;  %v7358_v0 = vcombine.low %v612_v58, %v620_v59  ;;  %v868_v59 = vld [vmem:[%s8918_s16 + $0xe88] sm:$0xff] }
 0x117   : > { %3567 = vmatpush1.bf16.msra.mxu1 %v7628_v1  ;;  %v7375_v1 = vcombine.high %v628_v62, %v636_v63 }
 0x118   : > { %3568 = vmatprep.subr.bf16.mxu1 %v7645_v4  ;;  %v7374_v4 = vcombine.low %v628_v62, %v636_v63  ;;  %v884_v63 = vld [vmem:[%s8918_s16 + $0xf08] sm:$0xff] }
 0x11b   : > { %3569 = vmatpush1.bf16.msra.mxu1 %v7644_v5  ;;  %v7391_v5 = vcombine.high %v644_v2, %v652_v3 }
 0x11c   : > { %3581 = vmatprep.subr.bf16.mxu1 %v7151_v11  ;;  %v7390_v11 = vcombine.low %v644_v2, %v652_v3  ;;  %v900_v3 = vld [vmem:[%s8918_s16 + $0xf88] sm:$0xff] }
 0x11e   : > { %3571 = vmatmul.mubr.bf16.vlgmr.msra.gmra.mrb[0].mxu1 %v9030_v9 }
 0x11f   : > { %3582 = vmatpush1.bf16.msra.mxu1 %v7150_v12  ;;  %3613 = vmatprep.mubr.bf16.mxu1 %v8953_v17  ;;  %v484_v17 = vld [vmem:[%s8918_s16 + $0x288] sm:$0xff]  ;;  %v7407_v12 = vcombine.high %v660_v7, %v668_v8 }
 0x120   : > { %3583 = vmatprep.subr.bf16.mxu1 %v7167_v15  ;;  %v7231_v29 = vcombine.high %v484_v17, %v492_v27  ;;  %v7230_v32 = vcombine.low %v484_v17, %v492_v27  ;;  %v7406_v15 = vcombine.low %v660_v7, %v668_v8  ;;  %v732_v17 = vld [vmem:[%s8918_s16 + $0xa48] sm:$0xff]  ;;  %v405_v8 = vld [vmem:[%s8918_s16 + $0x10] sm:$0xff] }
 0x123   : > { %3584 = vmatpush1.bf16.msra.mxu1 %v7166_v16  ;;  %v7423_v16 = vcombine.high %v676_v13, %v684_v14  ;;  %v421_v14 = vld [vmem:[%s8918_s16 + $0x90] sm:$0xff] }
 0x124   : > { %3585 = vmatprep.subr.bf16.mxu1 %v7183_v18  ;;  %v692_v18 = vld [vmem:[%s8918_s16 + $0x908] sm:$0xff] }
 0x125   : > { %v7438_v24 = vcombine.low %v692_v18, %v700_v19 }
 0x127   : > { %3586 = vmatpush1.bf16.msra.mxu1 %v7182_v21  ;;  %v7439_v21 = vcombine.high %v692_v18, %v700_v19  ;;  %v437_v19 = vld [vmem:[%s8918_s16 + $0x110] sm:$0xff] }
 0x128   : > { %3587 = vmatprep.subr.bf16.mxu1 %v7199_v22  ;;  %v708_v22 = vld [vmem:[%s8918_s16 + $0x988] sm:$0xff] }
 0x12b   : > { %3588 = vmatpush1.bf16.msra.mxu1 %v7198_v25  ;;  %v7455_v25 = vcombine.high %v708_v22, %v716_v23 }
 0x12c   : > { %3589 = vmatprep.subr.bf16.mxu1 %v7215_v26  ;;  %v724_v26 = vld [vmem:[%s8918_s16 + $0xa08] sm:$0xff] }
 0x12d   : > { %v7471_v27 = vcombine.high %v724_v26, %v732_v17 }
 0x12f   : > { %3590 = vmatpush1.bf16.msra.mxu1 %v7214_v28  ;;  %v748_v28 = vld [vmem:[%s8918_s16 + $0xac8] sm:$0xff] }
 0x130   : > { %3591 = vmatprep.subr.bf16.mxu1 %v7231_v29  ;;  %v7470_v29 = vcombine.low %v724_v26, %v732_v17  ;;  %v469_v17 = vld [vmem:[%s8918_s16 + $0x210] sm:$0xff] }
 0x133   : > { %3592 = vmatpush1.bf16.msra.mxu1 %v7230_v32  ;;  %v764_v32 = vld [vmem:[%s8918_s16 + $0xb48] sm:$0xff] }
 0x134   : > { %3593 = vmatprep.subr.bf16.mxu1 %v7247_v33  ;;  %v7503_v34 = vcombine.high %v756_v31, %v764_v32 }
 0x137   : > { %3594 = vmatpush1.bf16.msra.mxu1 %v7246_v36  ;;  %v780_v36 = vld [vmem:[%s8918_s16 + $0xbc8] sm:$0xff] }
 0x138   : > { %3595 = vmatprep.subr.bf16.mxu1 %v7263_v37  ;;  %v7502_v37 = vcombine.low %v756_v31, %v764_v32  ;;  %v7519_v38 = vcombine.high %v772_v35, %v780_v36  ;;  %v501_v32 = vld [vmem:[%s8918_s16 + $0x310] sm:$0xff] }
 0x13b   : > { %3596 = vmatpush1.bf16.msra.mxu1 %v7262_v40  ;;  %v796_v40 = vld [vmem:[%s8918_s16 + $0xc48] sm:$0xff] }
 0x13c   : > { %3597 = vmatprep.subr.bf16.mxu1 %v7279_v41  ;;  %v7518_v41 = vcombine.low %v772_v35, %v780_v36  ;;  %v7535_v42 = vcombine.high %v788_v39, %v796_v40  ;;  %v517_v36 = vld [vmem:[%s8918_s16 + $0x390] sm:$0xff] }
 0x13f   : > { %3598 = vmatpush1.bf16.msra.mxu1 %v7278_v44  ;;  %v812_v44 = vld [vmem:[%s8918_s16 + $0xcc8] sm:$0xff] }
 0x140   : > { %3599 = vmatprep.subr.bf16.mxu1 %v7295_v45  ;;  %v7534_v45 = vcombine.low %v788_v39, %v796_v40  ;;  %v7551_v46 = vcombine.high %v804_v43, %v812_v44  ;;  %v415_v39 = vld [vmem:[%s8918_s16 + $0x60] sm:$0xff] }
 0x143   : > { %3600 = vmatpush1.bf16.msra.mxu1 %v7294_v48  ;;  %v828_v48 = vld [vmem:[%s8918_s16 + $0xd48] sm:$0xff] }
 0x144   : > { %3601 = vmatprep.subr.bf16.mxu1 %v7311_v49  ;;  %v7550_v49 = vcombine.low %v804_v43, %v812_v44  ;;  %v7567_v50 = vcombine.high %v820_v47, %v828_v48  ;;  %v533_v44 = vld [vmem:[%s8918_s16 + $0x410] sm:$0xff] }
 0x147   : > { %3602 = vmatpush1.bf16.msra.mxu1 %v7310_v52  ;;  %v844_v52 = vld [vmem:[%s8918_s16 + $0xdc8] sm:$0xff] }
 0x148   : > { %3603 = vmatprep.subr.bf16.mxu1 %v7327_v53  ;;  %v7566_v53 = vcombine.low %v820_v47, %v828_v48  ;;  %v7583_v54 = vcombine.high %v836_v51, %v844_v52  ;;  %v431_v47 = vld [vmem:[%s8918_s16 + $0xe0] sm:$0xff] }
 0x14b   : > { %3604 = vmatpush1.bf16.msra.mxu1 %v7326_v56  ;;  %v860_v56 = vld [vmem:[%s8918_s16 + $0xe48] sm:$0xff] }
 0x14c   : > { %3605 = vmatprep.subr.bf16.mxu1 %v7343_v57  ;;  %v7582_v57 = vcombine.low %v836_v51, %v844_v52  ;;  %v7599_v58 = vcombine.high %v852_v55, %v860_v56  ;;  %v549_v52 = vld [vmem:[%s8918_s16 + $0x490] sm:$0xff] }
 0x14f   : > { %3606 = vmatpush1.bf16.msra.mxu1 %v7342_v60  ;;  %v876_v60 = vld [vmem:[%s8918_s16 + $0xec8] sm:$0xff] }
 0x150   : > { %3607 = vmatprep.subr.bf16.mxu1 %v7359_v61  ;;  %v7598_v61 = vcombine.low %v852_v55, %v860_v56  ;;  %v7615_v62 = vcombine.high %v868_v59, %v876_v60  ;;  %v447_v55 = vld [vmem:[%s8918_s16 + $0x160] sm:$0xff] }
 0x153   : > { %3608 = vmatpush1.bf16.msra.mxu1 %v7358_v0  ;;  %v892_v0 = vld [vmem:[%s8918_s16 + $0xf48] sm:$0xff] }
 0x154   : > { %3609 = vmatprep.subr.bf16.mxu1 %v7375_v1  ;;  %v7614_v1 = vcombine.low %v868_v59, %v876_v60  ;;  %v7631_v2 = vcombine.high %v884_v63, %v892_v0  ;;  %v565_v60 = vld [vmem:[%s8918_s16 + $0x510] sm:$0xff] }
 0x157   : > { %3610 = vmatpush1.bf16.msra.mxu1 %v7374_v4  ;;  %v908_v4 = vld [vmem:[%s8918_s16 + $0xfc8] sm:$0xff] }
 0x158   : > { %3611 = vmatprep.subr.bf16.mxu1 %v7391_v5  ;;  %v7630_v5 = vcombine.low %v884_v63, %v892_v0  ;;  %v7647_v7 = vcombine.high %v900_v3, %v908_v4  ;;  %v463_v63 = vld [vmem:[%s8918_s16 + $0x1e0] sm:$0xff] }
 0x15b   : > { %3612 = vmatpush1.bf16.msra.mxu1 %v7390_v11  ;;  %v413_v11 = vld [vmem:[%s8918_s16 + $0x50] sm:$0xff] }
 0x15c   : > { %3624 = vmatprep.subr.bf16.mxu1 %v7407_v12  ;;  %v7646_v12 = vcombine.low %v900_v3, %v908_v4  ;;  %v7153_v13 = vcombine.high %v405_v8, %v413_v11  ;;  %v581_v4 = vld [vmem:[%s8918_s16 + $0x590] sm:$0xff] }
 0x15e   : > { %3614 = vmatmul.mubr.bf16.vlgmr.msra.gmra.mrb[4].mxu1 %v8986_v6  ;;  %v7454_v6 = vcombine.low %v708_v22, %v716_v23  ;;  %v9106_v22 = vld [vmem:[%s10274_s0 + $0x4] ss:$16 sps:$4 sm:$0xff]  }
 0x15f   : > { %3625 = vmatpush1.bf16.msra.mxu1 %v7406_v15  ;;  %3656 = vmatprep.mubr.bf16.mxu1 %v8993_v10  ;;  %v740_v10 = vld [vmem:[%s8918_s16 + $0xa88] sm:$0xff]  ;;  %v429_v15 = vld [vmem:[%s8918_s16 + $0xd0] sm:$0xff] }
 0x160   : > { %3626 = vmatprep.subr.bf16.mxu1 %v7423_v16  ;;  %v7487_v30 = vcombine.high %v740_v10, %v748_v28  ;;  %v7486_v33 = vcombine.low %v740_v10, %v748_v28  ;;  %v7152_v16 = vcombine.low %v405_v8, %v413_v11  ;;  %v7169_v18 = vcombine.high %v421_v14, %v429_v15  ;;  %v485_v28 = vld [vmem:[%s8918_s16 + $0x290] sm:$0xff]  ;;  %v479_v8 = vld [vmem:[%s8918_s16 + $0x260] sm:$0xff] }
 0x163   : > { %3627 = vmatpush1.bf16.msra.mxu1 %v7422_v20  ;;  %v445_v20 = vld [vmem:[%s8918_s16 + $0x150] sm:$0xff] }
 0x164   : > { %3628 = vmatprep.subr.bf16.mxu1 %v7439_v21  ;;  %v7168_v21 = vcombine.low %v421_v14, %v429_v15  ;;  %v7185_v23 = vcombine.high %v437_v19, %v445_v20  ;;  %v7184_v26 = vcombine.low %v437_v19, %v445_v20  ;;  %v597_v15 = vld [vmem:[%s8918_s16 + $0x610] sm:$0xff]  ;;  %v495_v19 = vld [vmem:[%s8918_s16 + $0x2e0] sm:$0xff] }
 0x167   : > { %3629 = vmatpush1.bf16.msra.mxu1 %v7438_v24  ;;  %v453_v24 = vld [vmem:[%s8918_s16 + $0x190] sm:$0xff] }
 0x168   : > { %3630 = vmatprep.subr.bf16.mxu1 %v7455_v25  ;;  %v461_v25 = vld [vmem:[%s8918_s16 + $0x1d0] sm:$0xff] }
 0x16b   : > { %3631 = vmatpush1.bf16.msra.mxu1 %v7454_v6  ;;  %v477_v6 = vld [vmem:[%s8918_s16 + $0x250] sm:$0xff] }
 0x16c   : > { %3632 = vmatprep.subr.bf16.mxu1 %v7471_v27  ;;  %v7200_v27 = vcombine.low %v453_v24, %v461_v25  ;;  %v7217_v10 = vcombine.high %v469_v17, %v477_v6 }
 0x16f   : > { %3633 = vmatpush1.bf16.msra.mxu1 %v7470_v29  ;;  %v493_v29 = vld [vmem:[%s8918_s16 + $0x2d0] sm:$0xff] }
 0x170   : > { %3634 = vmatprep.subr.bf16.mxu1 %v7487_v30  ;;  %v7216_v30 = vcombine.low %v469_v17, %v477_v6  ;;  %v7233_v31 = vcombine.high %v485_v28, %v493_v29  ;;  %v511_v17 = vld [vmem:[%s8918_s16 + $0x360] sm:$0xff] }
 0x173   : > { %3635 = vmatpush1.bf16.msra.mxu1 %v7486_v33  ;;  %v509_v33 = vld [vmem:[%s8918_s16 + $0x350] sm:$0xff] }
 0x174   : > { %3636 = vmatprep.subr.bf16.mxu1 %v7503_v34  ;;  %v7232_v34 = vcombine.low %v485_v28, %v493_v29  ;;  %v7249_v35 = vcombine.high %v501_v32, %v509_v33  ;;  %v629_v29 = vld [vmem:[%s8918_s16 + $0x710] sm:$0xff] }
 0x177   : > { %3637 = vmatpush1.bf16.msra.mxu1 %v7502_v37  ;;  %v525_v37 = vld [vmem:[%s8918_s16 + $0x3d0] sm:$0xff] }
 0x178   : > { %3638 = vmatprep.subr.bf16.mxu1 %v7519_v38  ;;  %v407_v38 = vld [vmem:[%s8918_s16 + $0x20] sm:$0xff]  ;;  %v7265_v43 = vcombine.high %v517_v36, %v525_v37 }
 0x179   : > { %v7157_v40 = vcombine.high %v407_v38, %v415_v39 }
 0x17b   : > { %3639 = vmatpush1.bf16.msra.mxu1 %v7518_v41  ;;  %v7248_v41 = vcombine.low %v501_v32, %v509_v33  ;;  %3839 = vmatprep.subr.bf16.mxu0 %v7157_v40  ;;  %v527_v32 = vld [vmem:[%s8918_s16 + $0x3e0] sm:$0xff] }
 0x17c   : > { %3640 = vmatprep.subr.bf16.mxu1 %v7535_v42  ;;  %v7156_v42 = vcombine.low %v407_v38, %v415_v39  ;;  %v653_v38 = vld [vmem:[%s8918_s16 + $0x7d0] sm:$0xff]  ;;  %v535_v39 = vld [vmem:[%s8918_s16 + $0x420] sm:$0xff] }
 0x17d   : > { %v543_v40 = vld [vmem:[%s8918_s16 + $0x460] sm:$0xff] }
 0x17e   : > { %3840 = vmatpush1.bf16.msra.mxu0 %v7156_v42 }
 0x17f   : > { %3641 = vmatpush1.bf16.msra.mxu1 %v7534_v45  ;;  %v541_v45 = vld [vmem:[%s8918_s16 + $0x450] sm:$0xff] }
 0x180   : > { %3642 = vmatprep.subr.bf16.mxu1 %v7551_v46  ;;  %v423_v46 = vld [vmem:[%s8918_s16 + $0xa0] sm:$0xff]  ;;  %v7281_v51 = vcombine.high %v533_v44, %v541_v45 }
 0x181   : > { %v7173_v48 = vcombine.high %v423_v46, %v431_v47 }
 0x183   : > { %3643 = vmatpush1.bf16.msra.mxu1 %v7550_v49  ;;  %v7264_v49 = vcombine.low %v517_v36, %v525_v37  ;;  %3841 = vmatprep.subr.bf16.mxu0 %v7173_v48  ;;  %v645_v37 = vld [vmem:[%s8918_s16 + $0x790] sm:$0xff]  ;;  %v559_v48 = vld [vmem:[%s8918_s16 + $0x4e0] sm:$0xff] }
 0x184   : > { %3644 = vmatprep.subr.bf16.mxu1 %v7567_v50  ;;  %v7172_v50 = vcombine.low %v423_v46, %v431_v47  ;;  %v669_v46 = vld [vmem:[%s8918_s16 + $0x850] sm:$0xff]  ;;  %v551_v47 = vld [vmem:[%s8918_s16 + $0x4a0] sm:$0xff] }
 0x186   : > { %3842 = vmatpush1.bf16.msra.mxu0 %v7172_v50  ;;  %v7392_v50 = vcombine.low %v645_v37, %v653_v38 }
 0x187   : > { %3645 = vmatpush1.bf16.msra.mxu1 %v7566_v53  ;;  %v557_v53 = vld [vmem:[%s8918_s16 + $0x4d0] sm:$0xff] }
 0x188   : > { %3646 = vmatprep.subr.bf16.mxu1 %v7583_v54  ;;  %v439_v54 = vld [vmem:[%s8918_s16 + $0x120] sm:$0xff]  ;;  %v7297_v59 = vcombine.high %v549_v52, %v557_v53 }
 0x189   : > { %v7189_v56 = vcombine.high %v439_v54, %v447_v55 }
 0x18b   : > { %3647 = vmatpush1.bf16.msra.mxu1 %v7582_v57  ;;  %v7280_v57 = vcombine.low %v533_v44, %v541_v45  ;;  %3843 = vmatprep.subr.bf16.mxu0 %v7189_v56  ;;  %v7393_v44 = vcombine.high %v645_v37, %v653_v38  ;;  %v661_v45 = vld [vmem:[%s8918_s16 + $0x810] sm:$0xff]  ;;  %v575_v56 = vld [vmem:[%s8918_s16 + $0x560] sm:$0xff] }
 0x18c   : > { %3648 = vmatprep.subr.bf16.mxu1 %v7599_v58  ;;  %v7188_v58 = vcombine.low %v439_v54, %v447_v55  ;;  %v685_v54 = vld [vmem:[%s8918_s16 + $0x8d0] sm:$0xff]  ;;  %v567_v55 = vld [vmem:[%s8918_s16 + $0x520] sm:$0xff] }
 0x18e   : > { %3844 = vmatpush1.bf16.msra.mxu0 %v7188_v58  ;;  %v7408_v58 = vcombine.low %v661_v45, %v669_v46 }
 0x18f   : > { %3649 = vmatpush1.bf16.msra.mxu1 %v7598_v61  ;;  %v573_v61 = vld [vmem:[%s8918_s16 + $0x550] sm:$0xff] }
 0x190   : > { %3650 = vmatprep.subr.bf16.mxu1 %v7615_v62  ;;  %v455_v62 = vld [vmem:[%s8918_s16 + $0x1a0] sm:$0xff]  ;;  %v7313_v3 = vcombine.high %v565_v60, %v573_v61 }
 0x191   : > { %v7205_v0 = vcombine.high %v455_v62, %v463_v63 }
 0x193   : > { %3651 = vmatpush1.bf16.msra.mxu1 %v7614_v1  ;;  %v7296_v1 = vcombine.low %v549_v52, %v557_v53  ;;  %3845 = vmatprep.subr.bf16.mxu0 %v7205_v0  ;;  %v7409_v52 = vcombine.high %v661_v45, %v669_v46  ;;  %v677_v53 = vld [vmem:[%s8918_s16 + $0x890] sm:$0xff]  ;;  %v591_v0 = vld [vmem:[%s8918_s16 + $0x5e0] sm:$0xff] }
 0x194   : > { %3652 = vmatprep.subr.bf16.mxu1 %v7631_v2  ;;  %v7204_v2 = vcombine.low %v455_v62, %v463_v63  ;;  %v701_v62 = vld [vmem:[%s8918_s16 + $0x950] sm:$0xff]  ;;  %v583_v63 = vld [vmem:[%s8918_s16 + $0x5a0] sm:$0xff] }
 0x196   : > { %3846 = vmatpush1.bf16.msra.mxu0 %v7204_v2  ;;  %v7333_v2 = vcombine.high %v583_v63, %v591_v0 }
 0x197   : > { %3653 = vmatpush1.bf16.msra.mxu1 %v7630_v5  ;;  %v589_v5 = vld [vmem:[%s8918_s16 + $0x5d0] sm:$0xff] }
 0x198   : > { %3654 = vmatprep.subr.bf16.mxu1 %v7647_v7  ;;  %v471_v7 = vld [vmem:[%s8918_s16 + $0x220] sm:$0xff]  ;;  %v7329_v14 = vcombine.high %v581_v4, %v589_v5 }
 0x199   : > { %v7221_v11 = vcombine.high %v471_v7, %v479_v8 }
 0x19b   : > { %3655 = vmatpush1.bf16.msra.mxu1 %v7646_v12  ;;  %v7312_v12 = vcombine.low %v565_v60, %v573_v61  ;;  %3847 = vmatprep.subr.bf16.mxu0 %v7221_v11  ;;  %v7425_v60 = vcombine.high %v677_v53, %v685_v54  ;;  %v693_v61 = vld [vmem:[%s8918_s16 + $0x910] sm:$0xff] }
 0x19c   : > { %3667 = vmatprep.subr.bf16.mxu1 %v7153_v13  ;;  %v7220_v13 = vcombine.low %v471_v7, %v479_v8  ;;  %v7441_v7 = vcombine.high %v693_v61, %v701_v62  ;;  %v709_v8 = vld [vmem:[%s8918_s16 + $0x990] sm:$0xff] }
 0x19d   : > { %v717_v11 = vld [vmem:[%s8918_s16 + $0x9d0] sm:$0xff] }
 0x19e   : > { %3657 = vmatmul.mubr.bf16.vlgmr.msra.gmra.mrb[4].mxu1 %v9030_v9  ;;  %v7201_v9 = vcombine.high %v453_v24, %v461_v25  ;;  %3848 = vmatpush1.bf16.msra.mxu0 %v7220_v13  ;;  %v613_v25 = vld [vmem:[%s8918_s16 + $0x690] sm:$0xff]  ;;  %v607_v13 = vld [vmem:[%s8918_s16 + $0x660] sm:$0xff] }
 0x19f   : > { %3668 = vmatpush1.bf16.msra.mxu1 %v7152_v16  ;;  %3699 = vmatprep.mubr.bf16.mxu1 %v9106_v22  ;;  %v605_v16 = vld [vmem:[%s8918_s16 + $0x650] sm:$0xff] }
 0x1a0   : > { %3669 = vmatprep.subr.bf16.mxu1 %v7169_v18  ;;  %v487_v18 = vld [vmem:[%s8918_s16 + $0x2a0] sm:$0xff]  ;;  %v7345_v24 = vcombine.high %v597_v15, %v605_v16 }
 0x1a1   : > { %v7237_v20 = vcombine.high %v487_v18, %v495_v19 }
 0x1a3   : > { %3670 = vmatpush1.bf16.msra.mxu1 %v7168_v21  ;;  %v7328_v21 = vcombine.low %v581_v4, %v589_v5  ;;  %3849 = vmatprep.subr.bf16.mxu0 %v7237_v20  ;;  %v9174_v4 = vld [vmem:[%s10274_s0 + $0xc] ss:$16 sps:$4 sm:$0xff]   ;;  %v7332_v5 = vcombine.low %v583_v63, %v591_v0  ;;  %v733_v20 = vld [vmem:[%s8918_s16 + $0xa50] sm:$0xff] }
 0x1a4   : > { %3671 = vmatprep.subr.bf16.mxu1 %v7185_v23  ;;  %v7236_v23 = vcombine.low %v487_v18, %v495_v19  ;;  %v7457_v18 = vcombine.high %v709_v8, %v717_v11  ;;  %v725_v19 = vld [vmem:[%s8918_s16 + $0xa10] sm:$0xff] }
 0x1a6   : > { %3850 = vmatpush1.bf16.msra.mxu0 %v7236_v23  ;;  %v623_v23 = vld [vmem:[%s8918_s16 + $0x6e0] sm:$0xff] }
 0x1a7   : > { %3672 = vmatpush1.bf16.msra.mxu1 %v7184_v26  ;;  %v621_v26 = vld [vmem:[%s8918_s16 + $0x6d0] sm:$0xff] }
 0x1a8   : > { %3673 = vmatprep.subr.bf16.mxu1 %v7201_v9  ;;  %v503_v9 = vld [vmem:[%s8918_s16 + $0x320] sm:$0xff]  ;;  %v7361_v28 = vcombine.high %v613_v25, %v621_v26 }
 0x1a9   : > { %v7253_v6 = vcombine.high %v503_v9, %v511_v17 }
 0x1ab   : > { %3674 = vmatpush1.bf16.msra.mxu1 %v7200_v27  ;;  %v7344_v27 = vcombine.low %v597_v15, %v605_v16  ;;  %3851 = vmatprep.subr.bf16.mxu0 %v7253_v6  ;;  %v7440_v15 = vcombine.low %v693_v61, %v701_v62  ;;  %v749_v6 = vld [vmem:[%s8918_s16 + $0xad0] sm:$0xff]  ;;  %v687_v61 = vld [vmem:[%s8918_s16 + $0x8e0] sm:$0xff] }
 0x1ac   : > { %3675 = vmatprep.subr.bf16.mxu1 %v7217_v10  ;;  %v7252_v10 = vcombine.low %v503_v9, %v511_v17  ;;  %v7473_v9 = vcombine.high %v725_v19, %v733_v20  ;;  %v741_v17 = vld [vmem:[%s8918_s16 + $0xa90] sm:$0xff] }
 0x1ad   : > { %v7488_v37 = vcombine.low %v741_v17, %v749_v6 }
 0x1ae   : > { %3852 = vmatpush1.bf16.msra.mxu0 %v7252_v10  ;;  %v639_v10 = vld [vmem:[%s8918_s16 + $0x760] sm:$0xff] }
 0x1af   : > { %3676 = vmatpush1.bf16.msra.mxu1 %v7216_v30  ;;  %v637_v30 = vld [vmem:[%s8918_s16 + $0x750] sm:$0xff] }
 0x1b0   : > { %3677 = vmatprep.subr.bf16.mxu1 %v7233_v31  ;;  %v519_v31 = vld [vmem:[%s8918_s16 + $0x3a0] sm:$0xff]  ;;  %v7377_v36 = vcombine.high %v629_v29, %v637_v30  ;;  %v7376_v42 = vcombine.low %v629_v29, %v637_v30  ;;  %v7472_v29 = vcombine.low %v725_v19, %v733_v20 }
 0x1b1   : > { %v7269_v33 = vcombine.high %v519_v31, %v527_v32  ;;  %v703_v19 = vld [vmem:[%s8918_s16 + $0x960] sm:$0xff] }
 0x1b3   : > { %3678 = vmatpush1.bf16.msra.mxu1 %v7232_v34  ;;  %v7360_v34 = vcombine.low %v613_v25, %v621_v26  ;;  %3853 = vmatprep.subr.bf16.mxu0 %v7269_v33  ;;  %v7456_v25 = vcombine.low %v709_v8, %v717_v11  ;;  %v765_v33 = vld [vmem:[%s8918_s16 + $0xb50] sm:$0xff] }
 0x1b4   : > { %3679 = vmatprep.subr.bf16.mxu1 %v7249_v35  ;;  %v7268_v35 = vcombine.low %v519_v31, %v527_v32  ;;  %v7489_v31 = vcombine.high %v741_v17, %v749_v6  ;;  %v757_v32 = vld [vmem:[%s8918_s16 + $0xb10] sm:$0xff] }
 0x1b6   : > { %3854 = vmatpush1.bf16.msra.mxu0 %v7268_v35  ;;  %v655_v35 = vld [vmem:[%s8918_s16 + $0x7e0] sm:$0xff] }
 0x1b7   : > { %3680 = vmatpush1.bf16.msra.mxu1 %v7248_v41  ;;  %v7285_v41 = vcombine.high %v535_v39, %v543_v40 }
 0x1b8   : > { %3681 = vmatprep.subr.bf16.mxu1 %v7265_v43  ;;  %v7284_v43 = vcombine.low %v535_v39, %v543_v40  ;;  %v7505_v39 = vcombine.high %v757_v32, %v765_v33  ;;  %v773_v40 = vld [vmem:[%s8918_s16 + $0xb90] sm:$0xff] }
 0x1b9   : > { %3855 = vmatprep.subr.bf16.mxu0 %v7285_v41  ;;  %v781_v41 = vld [vmem:[%s8918_s16 + $0xbd0] sm:$0xff] }
 0x1ba   : > { %3856 = vmatpush1.bf16.msra.mxu0 %v7284_v43  ;;  %v663_v43 = vld [vmem:[%s8918_s16 + $0x820] sm:$0xff] }
 0x1bb   : > { %3682 = vmatpush1.bf16.msra.mxu1 %v7264_v49  ;;  %v7301_v49 = vcombine.high %v551_v47, %v559_v48 }
 0x1bc   : > { %3683 = vmatprep.subr.bf16.mxu1 %v7281_v51  ;;  %v7300_v51 = vcombine.low %v551_v47, %v559_v48  ;;  %v7504_v48 = vcombine.low %v757_v32, %v765_v33  ;;  %v719_v32 = vld [vmem:[%s8918_s16 + $0x9e0] sm:$0xff] }
 0x1bd   : > { %3857 = vmatprep.subr.bf16.mxu0 %v7301_v49  ;;  %v7521_v49 = vcombine.high %v773_v40, %v781_v41 }
 0x1be   : > { %3858 = vmatpush1.bf16.msra.mxu0 %v7300_v51 }
 0x1bf   : > { %3684 = vmatpush1.bf16.msra.mxu1 %v7280_v57  ;;  %v7317_v57 = vcombine.high %v567_v55, %v575_v56 }
 0x1c0   : > { %3685 = vmatprep.subr.bf16.mxu1 %v7297_v59  ;;  %v7316_v59 = vcombine.low %v567_v55, %v575_v56  ;;  %v789_v55 = vld [vmem:[%s8918_s16 + $0xc10] sm:$0xff] }
 0x1c1   : > { %3859 = vmatprep.subr.bf16.mxu0 %v7317_v57 }
 0x1c2   : > { %3860 = vmatpush1.bf16.msra.mxu0 %v7316_v59  ;;  %v797_v59 = vld [vmem:[%s8918_s16 + $0xc50] sm:$0xff] }
 0x1c3   : > { %3686 = vmatpush1.bf16.msra.mxu1 %v7296_v1  ;;  %v9168_v1 = vld [vmem:[%s10274_s0] ss:$16 sps:$4 sm:$0xff]   ;;  %3861 = vmatprep.subr.bf16.mxu0 %v7333_v2 }
 0x1c4   : > { %3687 = vmatprep.subr.bf16.mxu1 %v7313_v3  ;;  %v7424_v3 = vcombine.low %v677_v53, %v685_v54 }
 0x1c6   : > { %3862 = vmatpush1.bf16.msra.mxu0 %v7332_v5  ;;  %v7520_v5 = vcombine.low %v773_v40, %v781_v41 }
 0x1c7   : > { %3688 = vmatpush1.bf16.msra.mxu1 %v7312_v12  ;;  %v599_v12 = vld [vmem:[%s8918_s16 + $0x620] sm:$0xff] }
 0x1c8   : > { %3689 = vmatprep.subr.bf16.mxu1 %v7329_v14  ;;  %v7349_v14 = vcombine.high %v599_v12, %v607_v13  ;;  %v7348_v16 = vcombine.low %v599_v12, %v607_v13  ;;  %v7537_v12 = vcombine.high %v789_v55, %v797_v59  ;;  %v805_v13 = vld [vmem:[%s8918_s16 + $0xc90] sm:$0xff] }
 0x1ca   : > { %3863 = vmatprep.subr.bf16.mxu0 %v7349_v14 }
 0x1cb   : > { %3690 = vmatpush1.bf16.msra.mxu1 %v7328_v21  ;;  %3864 = vmatpush1.bf16.msra.mxu0 %v7348_v16  ;;  %v615_v21 = vld [vmem:[%s8918_s16 + $0x6a0] sm:$0xff]  ;;  %v813_v16 = vld [vmem:[%s8918_s16 + $0xcd0] sm:$0xff] }
 0x1cc   : > { %3691 = vmatprep.subr.bf16.mxu1 %v7345_v24  ;;  %v7365_v24 = vcombine.high %v615_v21, %v623_v23  ;;  %v7364_v26 = vcombine.low %v615_v21, %v623_v23 }
 0x1ce   : > { %3865 = vmatprep.subr.bf16.mxu0 %v7365_v24 }
 0x1cf   : > { %3692 = vmatpush1.bf16.msra.mxu1 %v7344_v27  ;;  %3866 = vmatpush1.bf16.msra.mxu0 %v7364_v26  ;;  %v631_v27 = vld [vmem:[%s8918_s16 + $0x720] sm:$0xff]  ;;  %v7536_v26 = vcombine.low %v789_v55, %v797_v59 }
 0x1d0   : > { %3693 = vmatprep.subr.bf16.mxu1 %v7361_v28  ;;  %v7381_v28 = vcombine.high %v631_v27, %v639_v10  ;;  %v7380_v30 = vcombine.low %v631_v27, %v639_v10  ;;  %v7553_v27 = vcombine.high %v805_v13, %v813_v16  ;;  %v821_v10 = vld [vmem:[%s8918_s16 + $0xd10] sm:$0xff] }
 0x1d2   : > { %3867 = vmatprep.subr.bf16.mxu0 %v7381_v28 }
 0x1d3   : > { %3694 = vmatpush1.bf16.msra.mxu1 %v7360_v34  ;;  %3868 = vmatpush1.bf16.msra.mxu0 %v7380_v30  ;;  %v647_v34 = vld [vmem:[%s8918_s16 + $0x7a0] sm:$0xff]  ;;  %v829_v30 = vld [vmem:[%s8918_s16 + $0xd50] sm:$0xff] }
 0x1d4   : > { %3695 = vmatprep.subr.bf16.mxu1 %v7377_v36  ;;  %v7397_v36 = vcombine.high %v647_v34, %v655_v35  ;;  %v7396_v38 = vcombine.low %v647_v34, %v655_v35 }
 0x1d6   : > { %3869 = vmatprep.subr.bf16.mxu0 %v7397_v36 }
 0x1d7   : > { %3696 = vmatpush1.bf16.msra.mxu1 %v7376_v42  ;;  %3870 = vmatpush1.bf16.msra.mxu0 %v7396_v38  ;;  %v7552_v38 = vcombine.low %v805_v13, %v813_v16 }
 0x1d8   : > { %3697 = vmatprep.subr.bf16.mxu1 %v7393_v44  ;;  %v671_v44 = vld [vmem:[%s8918_s16 + $0x860] sm:$0xff] }
 0x1d9   : > { %v7413_v46 = vcombine.high %v663_v43, %v671_v44 }
 0x1da   : > { %3872 = vmatmul.mubr.bf16.vlgmr.msra.gmra.mrb[0].mxu0 %v9168_v1 }
 0x1db   : > { %3698 = vmatpush1.bf16.msra.mxu1 %v7392_v50  ;;  %v7412_v50 = vcombine.low %v663_v43, %v671_v44  ;;  %3882 = vmatprep.subr.bf16.mxu0 %v7413_v46  ;;  %v7569_v43 = vcombine.high %v821_v10, %v829_v30  ;;  %v837_v44 = vld [vmem:[%s8918_s16 + $0xd90] sm:$0xff] }
 0x1dc   : > { %3710 = vmatprep.subr.bf16.mxu1 %v7409_v52  ;;  %3914 = vmatprep.mubr.bf16.mxu0 %v9174_v4 }
 0x1dd   : > { %3883 = vmatpush1.bf16.msra.mxu0 %v7412_v50  ;;  %v727_v50 = vld [vmem:[%s8918_s16 + $0xa20] sm:$0xff] }
 0x1de   : > { %3700 = vmatmul.mubr.bf16.vlgmr.msra.gmra.mrb[8].mxu1 %v9168_v1 }
 0x1df   : > { %3711 = vmatpush1.bf16.msra.mxu1 %v7408_v58  ;;  %3742 = vmatprep.mubr.bf16.mxu1 %v9174_v4 }
 0x1e0   : > { %3712 = vmatprep.subr.bf16.mxu1 %v7425_v60  ;;  %v679_v60 = vld [vmem:[%s8918_s16 + $0x8a0] sm:$0xff] }
 0x1e1   : > { %v7429_v0 = vcombine.high %v679_v60, %v687_v61 }
 0x1e3   : > { %3713 = vmatpush1.bf16.msra.mxu1 %v7424_v3  ;;  %3884 = vmatprep.subr.bf16.mxu0 %v7429_v0 }
 0x1e4   : > { %3714 = vmatprep.subr.bf16.mxu1 %v7441_v7  ;;  %v7428_v7 = vcombine.low %v679_v60, %v687_v61 }
 0x1e6   : > { %3885 = vmatpush1.bf16.msra.mxu0 %v7428_v7  ;;  %v751_v7 = vld [vmem:[%s8918_s16 + $0xae0] sm:$0xff] }
 0x1e7   : > { %3715 = vmatpush1.bf16.msra.mxu1 %v7440_v15 }
 0x1e8   : > { %3716 = vmatprep.subr.bf16.mxu1 %v7457_v18  ;;  %v695_v18 = vld [vmem:[%s8918_s16 + $0x920] sm:$0xff] }
 0x1e9   : > { %v7445_v23 = vcombine.high %v695_v18, %v703_v19 }
 0x1eb   : > { %3717 = vmatpush1.bf16.msra.mxu1 %v7456_v25  ;;  %3886 = vmatprep.subr.bf16.mxu0 %v7445_v23  ;;  %v767_v23 = vld [vmem:[%s8918_s16 + $0xb60] sm:$0xff] }
 0x1ec   : > { %3718 = vmatprep.subr.bf16.mxu1 %v7473_v9  ;;  %v7444_v9 = vcombine.low %v695_v18, %v703_v19  ;;  %v869_v18 = vld [vmem:[%s8918_s16 + $0xe90] sm:$0xff] }
 0x1ee   : > { %3887 = vmatpush1.bf16.msra.mxu0 %v7444_v9 }
 0x1ef   : > { %3719 = vmatpush1.bf16.msra.mxu1 %v7472_v29 }
 0x1f0   : > { %3720 = vmatprep.subr.bf16.mxu1 %v7489_v31  ;;  %v711_v31 = vld [vmem:[%s8918_s16 + $0x9a0] sm:$0xff] }
 0x1f1   : > { %v9195_v42 = vpop.f32.mrb[0].mxu1  ;;  %v7461_v35 = vcombine.high %v711_v31, %v719_v32 }
 0x1f2   : > { %v9199_v45 = vpop.f32.mrb[1].mxu1  ;;  %v4311_v51 = vmul.f32 %v9195_v42, %v9195_v42 }
 0x1f3   : > { %v9201_v47 = vpop.f32.mrb[2].mxu1  ;;  %3721 = vmatpush1.bf16.msra.mxu1 %v7488_v37  ;;  %v4312_v56 = vmul.f32 %v9199_v45, %v9199_v45  ;;  %3888 = vmatprep.subr.bf16.mxu0 %v7461_v35  ;;  %v909_v35 = vld [vmem:[%s8918_s16 + $0xfd0] sm:$0xff] }
 0x1f4   : > { %v4183_v52 = vadd.f32 %v9201_v47, %v9195_v42  ;;  %v4327_v53 = vmul.f32 %v9201_v47, %v9201_v47  ;;  %v9209_v54 = vpop.f32.mrb[3].mxu1  ;;  %3722 = vmatprep.subr.bf16.mxu1 %v7505_v39  ;;  %v7460_v39 = vcombine.low %v711_v31, %v719_v32 }
 0x1f5   : > { %v4190_v57 = vadd.f32 %v9209_v54, %v9199_v45  ;;  %v4328_v58 = vmul.f32 %v9209_v54, %v9209_v54 }
 0x1f6   : > { %v4184_v62 = vrot.slane %v4183_v52, 4  ;;  %v4343_v63 = vadd.f32 %v4327_v53, %v4311_v51  ;;  %v735_v51 = vld [vmem:[%s8918_s16 + $0xa60] sm:$0xff]  ;;  %3889 = vmatpush1.bf16.msra.mxu0 %v7460_v39 }
 0x1f7   : > { %v4191_v2 = vrot.slane %v4190_v57, 4  ;;  %v4350_v3 = vadd.f32 %v4328_v58, %v4312_v56  ;;  %3723 = vmatpush1.bf16.msra.mxu1 %v7504_v48  ;;  %v7477_v55 = vcombine.high %v727_v50, %v735_v51  ;;  %v7568_v58 = vcombine.low %v821_v10, %v829_v30  ;;  %v893_v10 = vld [vmem:[%s8918_s16 + $0xf50] sm:$0xff] }
 0x1f8   : > { %v4185_v8 = vadd.f32 %v4184_v62, %v4183_v52  ;;  %v4344_v11 = vrot.slane %v4343_v63, 4  ;;  %3724 = vmatprep.subr.bf16.mxu1 %v7521_v49  ;;  %v845_v49 = vld [vmem:[%s8918_s16 + $0xdd0] sm:$0xff]  ;;  %v7476_v59 = vcombine.low %v727_v50, %v735_v51 }
 0x1f9   : > { %v4192_v14 = vadd.f32 %v4191_v2, %v4190_v57  ;;  %v4351_v15 = vrot.slane %v4350_v3, 4  ;;  %v7585_v62 = vcombine.high %v837_v44, %v845_v49  ;;  %3890 = vmatprep.subr.bf16.mxu0 %v7477_v55  ;;  %v7584_v13 = vcombine.low %v837_v44, %v845_v49  ;;  %v414_v44 = vld [vmem:[%s8918_s16 + $0x58] sm:$0xff] }
 0x1fa   : > { %v4186_v20 = vrot.slane %v4185_v8, 2  ;;  %v4345_v21 = vadd.f32 %v4344_v11, %v4343_v63  ;;  %v853_v63 = vld [vmem:[%s8918_s16 + $0xe10] sm:$0xff]  ;;  %3891 = vmatpush1.bf16.msra.mxu0 %v7476_v59  ;;  %v422_v59 = vld [vmem:[%s8918_s16 + $0x98] sm:$0xff] }
 0x1fb   : > { %v4193_v24 = vrot.slane %v4192_v14, 2  ;;  %v4352_v25 = vadd.f32 %v4351_v15, %v4350_v3  ;;  %3725 = vmatpush1.bf16.msra.mxu1 %v7520_v5  ;;  %v861_v3 = vld [vmem:[%s8918_s16 + $0xe50] sm:$0xff]  ;;  %v743_v5 = vld [vmem:[%s8918_s16 + $0xaa0] sm:$0xff] }
 0x1fc   : > { %v4187_v17 = vadd.f32 %v4186_v20, %v4185_v8  ;;  %v4346_v6 = vrot.slane %v4345_v21, 2  ;;  %3726 = vmatprep.subr.bf16.mxu1 %v7537_v12  ;;  %v7493_v11 = vcombine.high %v743_v5, %v751_v7  ;;  %v7601_v16 = vcombine.high %v853_v63, %v861_v3  ;;  %v877_v20 = vld [vmem:[%s8918_s16 + $0xed0] sm:$0xff] }
 0x1fd   : > { %v4194_v28 = vadd.f32 %v4193_v24, %v4192_v14  ;;  %v4353_v29 = vrot.slane %v4352_v25, 2  ;;  %v7492_v14 = vcombine.low %v743_v5, %v751_v7  ;;  %v7600_v9 = vcombine.low %v853_v63, %v861_v3  ;;  %v438_v5 = vld [vmem:[%s8918_s16 + $0x118] sm:$0xff] }
 0x1fe   : > { %v4188_v33 = vrot.slane %v4187_v17, 1  ;;  %v4347_v34 = vadd.f32 %v4346_v6, %v4345_v21  ;;  %3892 = vmatprep.subr.bf16.mxu0 %v7493_v11  ;;  %v759_v21 = vld [vmem:[%s8918_s16 + $0xb20] sm:$0xff]  ;;  %v7617_v6 = vcombine.high %v869_v18, %v877_v20  ;;  %v7616_v31 = vcombine.low %v869_v18, %v877_v20  ;;  %v446_v7 = vld [vmem:[%s8918_s16 + $0x158] sm:$0xff] }
 0x1ff   : > { %v4195_v36 = vrot.slane %v4194_v28, 1  ;;  %v4354_v37 = vadd.f32 %v4353_v29, %v4352_v25  ;;  %3727 = vmatpush1.bf16.msra.mxu1 %v7536_v26  ;;  %3893 = vmatpush1.bf16.msra.mxu0 %v7492_v14  ;;  %v7509_v25 = vcombine.high %v759_v21, %v767_v23  ;;  %v783_v29 = vld [vmem:[%s8918_s16 + $0xbe0] sm:$0xff]  ;;  %v454_v18 = vld [vmem:[%s8918_s16 + $0x198] sm:$0xff] }
 0x200   : > { %v4189_v40 = vadd.f32 %v4188_v33, %v4187_v17  ;;  %v4348_v41 = vrot.slane %v4347_v34, 1  ;;  %3728 = vmatprep.subr.bf16.mxu1 %v7553_v27  ;;  %v7508_v17 = vcombine.low %v759_v21, %v767_v23  ;;  %v885_v27 = vld [vmem:[%s8918_s16 + $0xf10] sm:$0xff]  ;;  %v847_v11 = vld [vmem:[%s8918_s16 + $0xde0] sm:$0xff] }
 0x201   : > { %v4196_v46 = vadd.f32 %v4195_v36, %v4194_v28  ;;  %v4355_v48 = vrot.slane %v4354_v37, 1  ;;  %3894 = vmatprep.subr.bf16.mxu0 %v7509_v25  ;;  %v775_v28 = vld [vmem:[%s8918_s16 + $0xba0] sm:$0xff]  ;;  %v7633_v33 = vcombine.high %v885_v27, %v893_v10  ;;  %v7632_v39 = vcombine.low %v885_v27, %v893_v10 }
 0x202   : > { %v9235_v52 = vmul.f32 0.0625, %v4189_v40  ;;  %v4349_v53 = vadd.f32 %v4348_v41, %v4347_v34  ;;  %v7525_v30 = vcombine.high %v775_v28, %v783_v29  ;;  %v7524_v32 = vcombine.low %v775_v28, %v783_v29  ;;  %v901_v34 = vld [vmem:[%s8918_s16 + $0xf90] sm:$0xff]  ;;  %v791_v36 = vld [vmem:[%s8918_s16 + $0xc20] sm:$0xff] }
 0x203   : > { %v9237_v56 = vmul.f32 0.0625, %v4196_v46  ;;  %v4356_v57 = vadd.f32 %v4355_v48, %v4354_v37  ;;  %3729 = vmatpush1.bf16.msra.mxu1 %v7552_v38  ;;  %3895 = vmatpush1.bf16.msra.mxu0 %v7508_v17  ;;  %v799_v37 = vld [vmem:[%s8918_s16 + $0xc60] sm:$0xff]  ;;  %v7649_v41 = vcombine.high %v901_v34, %v909_v35  ;;  %v478_v17 = vld [vmem:[%s8918_s16 + $0x258] sm:$0xff] }
 0x204   : > { %v4455_v60 = vmul.f32 0.0625, %v4349_v53  ;;  %v4471_v61 = vmul.f32 %v9235_v52, %v9235_v52  ;;  %3730 = vmatprep.subr.bf16.mxu1 %v7569_v43  ;;  %3896 = vmatprep.subr.bf16.mxu0 %v7525_v30  ;;  %v7541_v38 = vcombine.high %v791_v36, %v799_v37  ;;  %v7540_v40 = vcombine.low %v791_v36, %v799_v37  ;;  %v406_v43 = vld [vmem:[%s8918_s16 + $0x18] sm:$0xff]  ;;  %v807_v46 = vld [vmem:[%s8918_s16 + $0xca0] sm:$0xff] }
 0x205   : > { %v4456_v0 = vmul.f32 0.0625, %v4356_v57  ;;  %v4472_v2 = vmul.f32 %v9237_v56, %v9237_v56  ;;  %v815_v48 = vld [vmem:[%s8918_s16 + $0xce0] sm:$0xff]  ;;  %v7648_v53 = vcombine.low %v901_v34, %v909_v35 }
 0x206   : > { %v4487_v8 = vsub.f32 %v4455_v60, %v4471_v61  ;;  %v7557_v50 = vcombine.high %v807_v46, %v815_v48  ;;  %v7556_v55 = vcombine.low %v807_v46, %v815_v48  ;;  %v430_v60 = vld [vmem:[%s8918_s16 + $0xd8] sm:$0xff]  ;;  %v823_v61 = vld [vmem:[%s8918_s16 + $0xd20] sm:$0xff] }
 0x207   : > { %v4488_v12 = vsub.f32 %v4456_v0, %v4472_v2  ;;  %3731 = vmatpush1.bf16.msra.mxu1 %v7568_v58  ;;  %3897 = vmatpush1.bf16.msra.mxu0 %v7524_v32  ;;  %v7155_v58 = vcombine.high %v406_v43, %v414_v44  ;;  %v7154_v0 = vcombine.low %v406_v43, %v414_v44  ;;  %v855_v20 = vld [vmem:[%s8918_s16 + $0xe20] sm:$0xff]  ;;  %v494_v32 = vld [vmem:[%s8918_s16 + $0x2d8] sm:$0xff] }
 0x208   : > { %v4503_v15 = vmax.f32 %v4487_v8, 0.0  ;;  %3732 = vmatprep.subr.bf16.mxu1 %v7585_v62  ;;  %3898 = vmatprep.subr.bf16.mxu0 %v7541_v38  ;;  %v831_v62 = vld [vmem:[%s8918_s16 + $0xd60] sm:$0xff]  ;;  %v7171_v3 = vcombine.high %v422_v59, %v430_v60  ;;  %v7170_v14 = vcombine.low %v422_v59, %v430_v60  ;;  %v417_v59 = vld [vmem:[%s8918_s16 + $0x70] sm:$0xff] }
 0x209   : > { %v4504_v19 = vmax.f32 %v4488_v12, 0.0  ;;  %v7573_v63 = vcombine.high %v823_v61, %v831_v62  ;;  %v7572_v2 = vcombine.low %v823_v61, %v831_v62  ;;  %v839_v8 = vld [vmem:[%s8918_s16 + $0xda0] sm:$0xff]  ;;  %v9280_v12 = vld [vmem:[%s10274_s0 + $0x8] ss:$16 sps:$4 sm:$0xff]  }
 0x20a   : > { %v4521_v24 = vadd.f32 1e-05, %v4503_v15  ;;  %v7588_v15 = vcombine.low %v839_v8, %v847_v11  ;;  %v863_v21 = vld [vmem:[%s8918_s16 + $0xe60] sm:$0xff] }
 0x20b   : > { %v4522_v26 = vadd.f32 1e-05, %v4504_v19  ;;  %3733 = vmatpush1.bf16.msra.mxu1 %v7584_v13  ;;  %3899 = vmatpush1.bf16.msra.mxu0 %v7540_v40  ;;  %v7589_v13 = vcombine.high %v839_v8, %v847_v11  ;;  %v462_v19 = vld [vmem:[%s8918_s16 + $0x1d8] sm:$0xff]  ;;  %v7605_v23 = vcombine.high %v855_v20, %v863_v21  ;;  %v7604_v25 = vcombine.low %v855_v20, %v863_v21  ;;  %v879_v27 = vld [vmem:[%s8918_s16 + $0xee0] sm:$0xff] }
 0x20c   : > { %8451 = vrsqrt.f32 %v4521_v24  ;;  %3734 = vmatprep.subr.bf16.mxu1 %v7601_v16  ;;  %3900 = vmatprep.subr.bf16.mxu0 %v7557_v50  ;;  %v7187_v16 = vcombine.high %v438_v5, %v446_v7  ;;  %v7186_v24 = vcombine.low %v438_v5, %v446_v7  ;;  %v7202_v28 = vcombine.low %v454_v18, %v462_v19  ;;  %v895_v34 = vld [vmem:[%s8918_s16 + $0xf60] sm:$0xff]  ;;  %v510_v40 = vld [vmem:[%s8918_s16 + $0x358] sm:$0xff]  ;;  %v433_v5 = vld [vmem:[%s8918_s16 + $0xf0] sm:$0xff] }
 0x20d   : > { %8453 = vrsqrt.f32 %v4522_v26  ;;  %v7203_v26 = vcombine.high %v454_v18, %v462_v19  ;;  %v911_v43 = vld [vmem:[%s8918_s16 + $0xfe0] sm:$0xff]  ;;  %v449_v18 = vld [vmem:[%s8918_s16 + $0x170] sm:$0xff] }
 0x20f   : > { %3735 = vmatpush1.bf16.msra.mxu1 %v7600_v9  ;;  %3901 = vmatpush1.bf16.msra.mxu0 %v7556_v55  ;;  %v470_v9 = vld [vmem:[%s8918_s16 + $0x218] sm:$0xff] }
 0x210   : > { %3736 = vmatprep.subr.bf16.mxu1 %v7617_v6  ;;  %3902 = vmatprep.subr.bf16.mxu0 %v7573_v63  ;;  %v871_v6 = vld [vmem:[%s8918_s16 + $0xea0] sm:$0xff]  ;;  %v7219_v30 = vcombine.high %v470_v9, %v478_v17  ;;  %v7218_v36 = vcombine.low %v470_v9, %v478_v17  ;;  %v526_v55 = vld [vmem:[%s8918_s16 + $0x3d8] sm:$0xff] }
 0x211   : > { %v7621_v10 = vcombine.high %v871_v6, %v879_v27  ;;  %v7620_v29 = vcombine.low %v871_v6, %v879_v27 }
 0x213   : > { %3737 = vmatpush1.bf16.msra.mxu1 %v7616_v31  ;;  %3903 = vmatpush1.bf16.msra.mxu0 %v7572_v2  ;;  %v486_v31 = vld [vmem:[%s8918_s16 + $0x298] sm:$0xff] }
 0x214   : > { %3738 = vmatprep.subr.bf16.mxu1 %v7633_v33  ;;  %3904 = vmatprep.subr.bf16.mxu0 %v7589_v13  ;;  %v887_v33 = vld [vmem:[%s8918_s16 + $0xf20] sm:$0xff]  ;;  %v7235_v38 = vcombine.high %v486_v31, %v494_v32  ;;  %v7234_v46 = vcombine.low %v486_v31, %v494_v32  ;;  %v542_v2 = vld [vmem:[%s8918_s16 + $0x458] sm:$0xff] }
 0x215   : > { %v7637_v35 = vcombine.high %v887_v33, %v895_v34  ;;  %v7636_v37 = vcombine.low %v887_v33, %v895_v34 }
 0x216   : > { %v9263_v49 = vpop.eup %8451 }
 0x217   : > { %v9265_v51 = vpop.eup %8453  ;;  %3739 = vmatpush1.bf16.msra.mxu1 %v7632_v39  ;;  %3905 = vmatpush1.bf16.msra.mxu0 %v7588_v15  ;;  %v502_v39 = vld [vmem:[%s8918_s16 + $0x318] sm:$0xff] }
 0x218   : > { %v4569_v57 = vcombine.low %v9263_v49, %v9265_v51  ;;  %3740 = vmatprep.subr.bf16.mxu1 %v7649_v41  ;;  %3906 = vmatprep.subr.bf16.mxu0 %v7605_v23  ;;  %v903_v41 = vld [vmem:[%s8918_s16 + $0xfa0] sm:$0xff]  ;;  %v7251_v50 = vcombine.high %v502_v39, %v510_v40  ;;  %v7250_v61 = vcombine.low %v502_v39, %v510_v40  ;;  %v558_v15 = vld [vmem:[%s8918_s16 + $0x4d8] sm:$0xff]  ;;  %v448_v49 = vld [vmem:[%s8918_s16 + $0x168] sm:$0xff] }
 0x219   : > { %v7653_v44 = vcombine.high %v903_v41, %v911_v43  ;;  %v7652_v48 = vcombine.low %v903_v41, %v911_v43  ;;  %v566_v23 = vld [vmem:[%s8918_s16 + $0x518] sm:$0xff]  ;;  %v841_v51 = vld [vmem:[%s8918_s16 + $0xdb0] sm:$0xff] }
 0x21b   : > { %3741 = vmatpush1.bf16.msra.mxu1 %v7648_v53  ;;  %3907 = vmatpush1.bf16.msra.mxu0 %v7604_v25  ;;  %v518_v53 = vld [vmem:[%s8918_s16 + $0x398] sm:$0xff]  ;;  %v457_v25 = vld [vmem:[%s8918_s16 + $0x1b0] sm:$0xff] }
 0x21c   : > { %3753 = vmatprep.subr.bf16.mxu1 %v7155_v58  ;;  %3908 = vmatprep.subr.bf16.mxu0 %v7621_v10  ;;  %v409_v58 = vld [vmem:[%s8918_s16 + $0x30] sm:$0xff]  ;;  %v7267_v63 = vcombine.high %v518_v53, %v526_v55  ;;  %v7266_v8 = vcombine.low %v518_v53, %v526_v55  ;;  %v582_v10 = vld [vmem:[%s8918_s16 + $0x598] sm:$0xff] }
 0x21d   : > { %v7161_v60 = vcombine.high %v409_v58, %v417_v59  ;;  %v7160_v62 = vcombine.low %v409_v58, %v417_v59 }
 0x21e   : > { %3743 = vmatmul.mubr.bf16.vlgmr.msra.gmra.mrb[8].mxu1 %v9280_v12 }
 0x21f   : > { %3754 = vmatpush1.bf16.msra.mxu1 %v7154_v0  ;;  %3785 = vmatprep.mubr.bf16.mxu1 %v9106_v22  ;;  %v534_v0 = vld [vmem:[%s8918_s16 + $0x418] sm:$0xff] }
 0x220   : > { %3755 = vmatprep.subr.bf16.mxu1 %v7171_v3  ;;  %3909 = vmatpush1.bf16.msra.mxu0 %v7620_v29  ;;  %v425_v3 = vld [vmem:[%s8918_s16 + $0xb0] sm:$0xff]  ;;  %v7283_v13 = vcombine.high %v534_v0, %v542_v2  ;;  %v7282_v20 = vcombine.low %v534_v0, %v542_v2 }
 0x221   : > { %3910 = vmatprep.subr.bf16.mxu0 %v7637_v35  ;;  %v7177_v7 = vcombine.high %v425_v3, %v433_v5  ;;  %v7176_v11 = vcombine.low %v425_v3, %v433_v5  ;;  %v473_v29 = vld [vmem:[%s8918_s16 + $0x230] sm:$0xff]  ;;  %v598_v35 = vld [vmem:[%s8918_s16 + $0x618] sm:$0xff] }
 0x223   : > { %3756 = vmatpush1.bf16.msra.mxu1 %v7170_v14  ;;  %v550_v14 = vld [vmem:[%s8918_s16 + $0x498] sm:$0xff] }
 0x224   : > { %3757 = vmatprep.subr.bf16.mxu1 %v7187_v16  ;;  %3911 = vmatpush1.bf16.msra.mxu0 %v7636_v37  ;;  %v441_v16 = vld [vmem:[%s8918_s16 + $0x130] sm:$0xff]  ;;  %v7299_v21 = vcombine.high %v550_v14, %v558_v15  ;;  %v7298_v17 = vcombine.low %v550_v14, %v558_v15 }
 0x225   : > { %3912 = vmatprep.subr.bf16.mxu0 %v7653_v44  ;;  %v7193_v19 = vcombine.high %v441_v16, %v449_v18  ;;  %v489_v37 = vld [vmem:[%s8918_s16 + $0x2b0] sm:$0xff]  ;;  %v614_v44 = vld [vmem:[%s8918_s16 + $0x698] sm:$0xff] }
 0x227   : > { %3758 = vmatpush1.bf16.msra.mxu1 %v7186_v24  ;;  %v574_v24 = vld [vmem:[%s8918_s16 + $0x558] sm:$0xff] }
 0x228   : > { %3759 = vmatprep.subr.bf16.mxu1 %v7203_v26  ;;  %3913 = vmatpush1.bf16.msra.mxu0 %v7652_v48  ;;  %v465_v26 = vld [vmem:[%s8918_s16 + $0x1f0] sm:$0xff]  ;;  %v7315_v27 = vcombine.high %v566_v23, %v574_v24  ;;  %v7314_v32 = vcombine.low %v566_v23, %v574_v24 }
 0x229   : > { %4011 = vmatprep.subr.bf16.mxu0 %v7161_v60  ;;  %v7209_v9 = vcombine.high %v457_v25, %v465_v26  ;;  %v7208_v6 = vcombine.low %v457_v25, %v465_v26  ;;  %v505_v48 = vld [vmem:[%s8918_s16 + $0x330] sm:$0xff]  ;;  %v630_v60 = vld [vmem:[%s8918_s16 + $0x718] sm:$0xff] }
 0x22b   : > { %3760 = vmatpush1.bf16.msra.mxu1 %v7202_v28  ;;  %3915 = vmatmul.mubr.bf16.vlgmr.msra.gmra.mrb[0].mxu0 %v9280_v12  ;;  %v590_v28 = vld [vmem:[%s8918_s16 + $0x5d8] sm:$0xff] }
 0x22c   : > { %3761 = vmatprep.subr.bf16.mxu1 %v7219_v30  ;;  %4012 = vmatpush1.bf16.msra.mxu0 %v7160_v62  ;;  %v481_v30 = vld [vmem:[%s8918_s16 + $0x270] sm:$0xff]  ;;  %v7331_v34 = vcombine.high %v582_v10, %v590_v28  ;;  %v7330_v40 = vcombine.low %v582_v10, %v590_v28 }
 0x22d   : > { %4043 = vmatprep.mubr.bf16.mxu0 %v9106_v22  ;;  %4013 = vmatprep.subr.bf16.mxu0 %v7177_v7  ;;  %v7192_v22 = vcombine.low %v441_v16, %v449_v18  ;;  %v7225_v31 = vcombine.high %v473_v29, %v481_v30  ;;  %v7224_v33 = vcombine.low %v473_v29, %v481_v30  ;;  %v521_v62 = vld [vmem:[%s8918_s16 + $0x3b0] sm:$0xff]  ;;  %v646_v7 = vld [vmem:[%s8918_s16 + $0x798] sm:$0xff] }
 0x22f   : > { %3762 = vmatpush1.bf16.msra.mxu1 %v7218_v36  ;;  %v606_v36 = vld [vmem:[%s8918_s16 + $0x658] sm:$0xff] }
 0x230   : > { %3763 = vmatprep.subr.bf16.mxu1 %v7235_v38  ;;  %4014 = vmatpush1.bf16.msra.mxu0 %v7176_v11  ;;  %v497_v38 = vld [vmem:[%s8918_s16 + $0x2f0] sm:$0xff]  ;;  %v7347_v43 = vcombine.high %v598_v35, %v606_v36  ;;  %v7346_v55 = vcombine.low %v598_v35, %v606_v36 }
 0x231   : > { %4015 = vmatprep.subr.bf16.mxu0 %v7193_v19  ;;  %v7241_v39 = vcombine.high %v489_v37, %v497_v38  ;;  %v7240_v41 = vcombine.low %v489_v37, %v497_v38  ;;  %v537_v11 = vld [vmem:[%s8918_s16 + $0x430] sm:$0xff]  ;;  %v662_v19 = vld [vmem:[%s8918_s16 + $0x818] sm:$0xff] }
 0x233   : > { %3764 = vmatpush1.bf16.msra.mxu1 %v7234_v46  ;;  %v622_v46 = vld [vmem:[%s8918_s16 + $0x6d8] sm:$0xff] }
 0x234   : > { %3765 = vmatprep.subr.bf16.mxu1 %v7251_v50  ;;  %4016 = vmatpush1.bf16.msra.mxu0 %v7192_v22  ;;  %v513_v50 = vld [vmem:[%s8918_s16 + $0x370] sm:$0xff]  ;;  %v7363_v59 = vcombine.high %v614_v44, %v622_v46  ;;  %v7362_v2 = vcombine.low %v614_v44, %v622_v46 }
 0x235   : > { %4017 = vmatprep.subr.bf16.mxu0 %v7209_v9  ;;  %v7257_v53 = vcombine.high %v505_v48, %v513_v50  ;;  %v7256_v58 = vcombine.low %v505_v48, %v513_v50  ;;  %v553_v22 = vld [vmem:[%s8918_s16 + $0x4b0] sm:$0xff]  ;;  %v678_v9 = vld [vmem:[%s8918_s16 + $0x898] sm:$0xff] }
 0x236   : > { %v726_v48 = vld [vmem:[%s8918_s16 + $0xa18] sm:$0xff] }
 0x237   : > { %3766 = vmatpush1.bf16.msra.mxu1 %v7250_v61  ;;  %v638_v61 = vld [vmem:[%s8918_s16 + $0x758] sm:$0xff] }
 0x238   : > { %3767 = vmatprep.subr.bf16.mxu1 %v7267_v63  ;;  %4018 = vmatpush1.bf16.msra.mxu0 %v7208_v6  ;;  %v529_v63 = vld [vmem:[%s8918_s16 + $0x3f0] sm:$0xff]  ;;  %v7379_v5 = vcombine.high %v630_v60, %v638_v61  ;;  %v7378_v15 = vcombine.low %v630_v60, %v638_v61  ;;  %v734_v50 = vld [vmem:[%s8918_s16 + $0xa58] sm:$0xff] }
 0x239   : > { %4019 = vmatprep.subr.bf16.mxu0 %v7225_v31  ;;  %v7273_v0 = vcombine.high %v521_v62, %v529_v63  ;;  %v7272_v3 = vcombine.low %v521_v62, %v529_v63  ;;  %v569_v6 = vld [vmem:[%s8918_s16 + $0x530] sm:$0xff]  ;;  %v694_v31 = vld [vmem:[%s8918_s16 + $0x918] sm:$0xff]  ;;  %v7475_v61 = vcombine.high %v726_v48, %v734_v50 }
 0x23a   : > { %v742_v62 = vld [vmem:[%s8918_s16 + $0xa98] sm:$0xff] }
 0x23b   : > { %3768 = vmatpush1.bf16.msra.mxu1 %v7266_v8  ;;  %v654_v8 = vld [vmem:[%s8918_s16 + $0x7d8] sm:$0xff] }
 0x23c   : > { %3769 = vmatprep.subr.bf16.mxu1 %v7283_v13  ;;  %4020 = vmatpush1.bf16.msra.mxu0 %v7224_v33  ;;  %v545_v13 = vld [vmem:[%s8918_s16 + $0x470] sm:$0xff]  ;;  %v7395_v18 = vcombine.high %v646_v7, %v654_v8  ;;  %v7394_v24 = vcombine.low %v646_v7, %v654_v8  ;;  %v750_v63 = vld [vmem:[%s8918_s16 + $0xad8] sm:$0xff] }
 0x23d   : > { %4021 = vmatprep.subr.bf16.mxu0 %v7241_v39  ;;  %v7289_v14 = vcombine.high %v537_v11, %v545_v13  ;;  %v7288_v16 = vcombine.low %v537_v11, %v545_v13  ;;  %v585_v33 = vld [vmem:[%s8918_s16 + $0x5b0] sm:$0xff]  ;;  %v710_v39 = vld [vmem:[%s8918_s16 + $0x998] sm:$0xff]  ;;  %v7491_v8 = vcombine.high %v742_v62, %v750_v63 }
 0x23e   : > { %v758_v11 = vld [vmem:[%s8918_s16 + $0xb18] sm:$0xff] }
 0x23f   : > { %3770 = vmatpush1.bf16.msra.mxu1 %v7282_v20  ;;  %v670_v20 = vld [vmem:[%s8918_s16 + $0x858] sm:$0xff] }
 0x240   : > { %3771 = vmatprep.subr.bf16.mxu1 %v7299_v21  ;;  %4022 = vmatpush1.bf16.msra.mxu0 %v7240_v41  ;;  %v561_v21 = vld [vmem:[%s8918_s16 + $0x4f0] sm:$0xff]  ;;  %v7411_v26 = vcombine.high %v662_v19, %v670_v20  ;;  %v7410_v28 = vcombine.low %v662_v19, %v670_v20  ;;  %v766_v13 = vld [vmem:[%s8918_s16 + $0xb58] sm:$0xff] }
 0x241   : > { %4023 = vmatprep.subr.bf16.mxu0 %v7257_v53  ;;  %v7305_v23 = vcombine.high %v553_v22, %v561_v21  ;;  %v7304_v25 = vcombine.low %v553_v22, %v561_v21  ;;  %v601_v41 = vld [vmem:[%s8918_s16 + $0x630] sm:$0xff]  ;;  %v7507_v20 = vcombine.high %v758_v11, %v766_v13  ;;  %v774_v22 = vld [vmem:[%s8918_s16 + $0xb98] sm:$0xff] }
 0x242   : > { %v617_v53 = vld [vmem:[%s8918_s16 + $0x6b0] sm:$0xff]  ;;  %v782_v21 = vld [vmem:[%s8918_s16 + $0xbd8] sm:$0xff] }
 0x243   : > { %3772 = vmatpush1.bf16.msra.mxu1 %v7298_v17  ;;  %v686_v17 = vld [vmem:[%s8918_s16 + $0x8d8] sm:$0xff] }
 0x244   : > { %3773 = vmatprep.subr.bf16.mxu1 %v7315_v27  ;;  %4024 = vmatpush1.bf16.msra.mxu0 %v7256_v58  ;;  %v577_v27 = vld [vmem:[%s8918_s16 + $0x570] sm:$0xff]  ;;  %v7427_v30 = vcombine.high %v678_v9, %v686_v17  ;;  %v7426_v36 = vcombine.low %v678_v9, %v686_v17 }
 0x245   : > { %4025 = vmatprep.subr.bf16.mxu0 %v7273_v0  ;;  %v7321_v10 = vcombine.high %v569_v6, %v577_v27  ;;  %v7320_v29 = vcombine.low %v569_v6, %v577_v27  ;;  %v633_v0 = vld [vmem:[%s8918_s16 + $0x730] sm:$0xff]  ;;  %v7506_v6 = vcombine.low %v758_v11, %v766_v13  ;;  %v7523_v27 = vcombine.high %v774_v22, %v782_v21 }
 0x247   : > { %3774 = vmatpush1.bf16.msra.mxu1 %v7314_v32  ;;  %v702_v32 = vld [vmem:[%s8918_s16 + $0x958] sm:$0xff] }
 0x248   : > { %3775 = vmatprep.subr.bf16.mxu1 %v7331_v34  ;;  %4026 = vmatpush1.bf16.msra.mxu0 %v7272_v3  ;;  %v593_v34 = vld [vmem:[%s8918_s16 + $0x5f0] sm:$0xff]  ;;  %v7443_v38 = vcombine.high %v694_v31, %v702_v32  ;;  %v7442_v44 = vcombine.low %v694_v31, %v702_v32  ;;  %v790_v32 = vld [vmem:[%s8918_s16 + $0xc18] sm:$0xff] }
 0x249   : > { %4027 = vmatprep.subr.bf16.mxu0 %v7289_v14  ;;  %v7337_v35 = vcombine.high %v585_v33, %v593_v34  ;;  %v7336_v37 = vcombine.low %v585_v33, %v593_v34  ;;  %v649_v14 = vld [vmem:[%s8918_s16 + $0x7b0] sm:$0xff] }
 0x24b   : > { %3776 = vmatpush1.bf16.msra.mxu1 %v7330_v40  ;;  %v718_v40 = vld [vmem:[%s8918_s16 + $0x9d8] sm:$0xff] }
 0x24c   : > { %3777 = vmatprep.subr.bf16.mxu1 %v7347_v43  ;;  %4028 = vmatpush1.bf16.msra.mxu0 %v7288_v16  ;;  %v609_v43 = vld [vmem:[%s8918_s16 + $0x670] sm:$0xff] }
 0x24d   : > { %4029 = vmatprep.subr.bf16.mxu0 %v7305_v23  ;;  %v7352_v46 = vcombine.low %v601_v41, %v609_v43 }
 0x24f   : > { %3778 = vmatpush1.bf16.msra.mxu1 %v7346_v55  ;;  %v625_v55 = vld [vmem:[%s8918_s16 + $0x6f0] sm:$0xff] }
 0x250   : > { %3779 = vmatprep.subr.bf16.mxu1 %v7363_v59  ;;  %4030 = vmatpush1.bf16.msra.mxu0 %v7304_v25  ;;  %v7369_v58 = vcombine.high %v617_v53, %v625_v55  ;;  %v7458_v59 = vcombine.low %v710_v39, %v718_v40  ;;  %v7368_v60 = vcombine.low %v617_v53, %v625_v55  ;;  %v673_v25 = vld [vmem:[%s8918_s16 + $0x870] sm:$0xff] }
 0x251   : > { %4031 = vmatprep.subr.bf16.mxu0 %v7321_v10 }
 0x253   : > { %3780 = vmatpush1.bf16.msra.mxu1 %v7362_v2  ;;  %v641_v2 = vld [vmem:[%s8918_s16 + $0x770] sm:$0xff] }
 0x254   : > { %3781 = vmatprep.subr.bf16.mxu1 %v7379_v5  ;;  %4032 = vmatpush1.bf16.msra.mxu0 %v7320_v29  ;;  %v7385_v3 = vcombine.high %v633_v0, %v641_v2  ;;  %v7474_v5 = vcombine.low %v726_v48, %v734_v50  ;;  %v7384_v7 = vcombine.low %v633_v0, %v641_v2 }
 0x255   : > { %4033 = vmatprep.subr.bf16.mxu0 %v7337_v35 }
 0x257   : > { %3782 = vmatpush1.bf16.msra.mxu1 %v7378_v15  ;;  %v657_v15 = vld [vmem:[%s8918_s16 + $0x7f0] sm:$0xff] }
 0x258   : > { %3783 = vmatprep.subr.bf16.mxu1 %v7395_v18  ;;  %4034 = vmatpush1.bf16.msra.mxu0 %v7336_v37  ;;  %v7401_v16 = vcombine.high %v649_v14, %v657_v15  ;;  %v7490_v18 = vcombine.low %v742_v62, %v750_v63  ;;  %v7400_v19 = vcombine.low %v649_v14, %v657_v15  ;;  %v9397_v37 = vld [vmem:[%s10274_s0] ss:$16 sps:$4 sm:$0xff]  }
 0x259   : > { %v697_v62 = vld [vmem:[%s8918_s16 + $0x930] sm:$0xff] }
 0x25a   : > { %v705_v63 = vld [vmem:[%s8918_s16 + $0x970] sm:$0xff] }
 0x25b   : > { %3784 = vmatpush1.bf16.msra.mxu1 %v7394_v24  ;;  %v665_v24 = vld [vmem:[%s8918_s16 + $0x830] sm:$0xff]  ;;  %v7448_v11 = vcombine.low %v697_v62, %v705_v63 }
 0x25c   : > { %3796 = vmatprep.subr.bf16.mxu1 %v7411_v26  ;;  %v7417_v9 = vcombine.high %v665_v24, %v673_v25  ;;  %v7416_v10 = vcombine.low %v665_v24, %v673_v25 }
 0x25e   : > { %3786 = vmatmul.mubr.bf16.vlgmr.msra.gmra.mrb[12].mxu1 %v9168_v1  ;;  %v7353_v1 = vcombine.high %v601_v41, %v609_v43 }
 0x25f   : > { %3797 = vmatpush1.bf16.msra.mxu1 %v7410_v28  ;;  %3828 = vmatprep.mubr.bf16.mxu1 %v9174_v4  ;;  %v7459_v4 = vcombine.high %v710_v39, %v718_v40  ;;  %v689_v39 = vld [vmem:[%s8918_s16 + $0x8f0] sm:$0xff] }
 0x260   : > { %3798 = vmatprep.subr.bf16.mxu1 %v7427_v30  ;;  %4035 = vmatprep.subr.bf16.mxu0 %v7353_v1  ;;  %v9405_v1 = vld [vmem:[%s10274_s0 + $0xc] ss:$16 sps:$4 sm:$0xff]  }
 0x261   : > { %4036 = vmatpush1.bf16.msra.mxu0 %v7352_v46 }
 0x262   : > { %4037 = vmatprep.subr.bf16.mxu0 %v7369_v58  ;;  %v806_v58 = vld [vmem:[%s8918_s16 + $0xc98] sm:$0xff] }
 0x263   : > { %3799 = vmatpush1.bf16.msra.mxu1 %v7426_v36  ;;  %v798_v36 = vld [vmem:[%s8918_s16 + $0xc58] sm:$0xff] }
 0x264   : > { %3800 = vmatprep.subr.bf16.mxu1 %v7443_v38  ;;  %v681_v38 = vld [vmem:[%s8918_s16 + $0x8b0] sm:$0xff]  ;;  %v7539_v55 = vcombine.high %v790_v32, %v798_v36 }
 0x265   : > { %4038 = vmatpush1.bf16.msra.mxu0 %v7368_v60  ;;  %v7433_v43 = vcombine.high %v681_v38, %v689_v39  ;;  %v7432_v48 = vcombine.low %v681_v38, %v689_v39  ;;  %v729_v38 = vld [vmem:[%s8918_s16 + $0xa30] sm:$0xff] }
 0x266   : > { %4039 = vmatprep.subr.bf16.mxu0 %v7385_v3  ;;  %v7449_v3 = vcombine.high %v697_v62, %v705_v63  ;;  %v737_v39 = vld [vmem:[%s8918_s16 + $0xa70] sm:$0xff] }
 0x267   : > { %3801 = vmatpush1.bf16.msra.mxu1 %v7442_v44  ;;  %v745_v62 = vld [vmem:[%s8918_s16 + $0xab0] sm:$0xff] }
 0x268   : > { %3802 = vmatprep.subr.bf16.mxu1 %v7459_v4  ;;  %v7522_v4 = vcombine.low %v774_v22, %v782_v21  ;;  %v713_v22 = vld [vmem:[%s8918_s16 + $0x9b0] sm:$0xff] }
 0x269   : > { %4040 = vmatpush1.bf16.msra.mxu0 %v7384_v7  ;;  %v721_v21 = vld [vmem:[%s8918_s16 + $0x9f0] sm:$0xff] }
 0x26a   : > { %4041 = vmatprep.subr.bf16.mxu0 %v7401_v16  ;;  %v822_v16 = vld [vmem:[%s8918_s16 + $0xd18] sm:$0xff]  ;;  %v753_v63 = vld [vmem:[%s8918_s16 + $0xaf0] sm:$0xff] }
 0x26b   : > { %3803 = vmatpush1.bf16.msra.mxu1 %v7458_v59 }
 0x26c   : > { %3804 = vmatprep.subr.bf16.mxu1 %v7475_v61  ;;  %v814_v61 = vld [vmem:[%s8918_s16 + $0xcd8] sm:$0xff] }
 0x26d   : > { %4042 = vmatpush1.bf16.msra.mxu0 %v7400_v19  ;;  %v7555_v15 = vcombine.high %v806_v58, %v814_v61 }
 0x26e   : > { %4054 = vmatprep.subr.bf16.mxu0 %v7417_v9  ;;  %v7465_v9 = vcombine.high %v713_v22, %v721_v21 }
 0x26f   : > { %3805 = vmatpush1.bf16.msra.mxu1 %v7474_v5 }
 0x270   : > { %3806 = vmatprep.subr.bf16.mxu1 %v7491_v8  ;;  %4044 = vmatmul.mubr.bf16.vlgmr.msra.gmra.mrb[4].mxu0 %v9397_v37  ;;  %v7538_v8 = vcombine.low %v790_v32, %v798_v36  ;;  %v846_v36 = vld [vmem:[%s8918_s16 + $0xdd8] sm:$0xff] }
 0x271   : > { %v9370_v23 = vpop.f32.mrb[4].mxu1  ;;  %4055 = vmatpush1.bf16.msra.mxu0 %v7416_v10  ;;  %4086 = vmatprep.mubr.bf16.mxu0 %v9405_v1  ;;  %v7554_v10 = vcombine.low %v806_v58, %v814_v61  ;;  %v854_v58 = vld [vmem:[%s8918_s16 + $0xe18] sm:$0xff] }
 0x272   : > { %v9374_v26 = vpop.f32.mrb[5].mxu1  ;;  %v4313_v28 = vmul.f32 %v9370_v23, %v9370_v23  ;;  %4056 = vmatprep.subr.bf16.mxu0 %v7433_v43  ;;  %v7481_v43 = vcombine.high %v729_v38, %v737_v39  ;;  %v862_v61 = vld [vmem:[%s8918_s16 + $0xe58] sm:$0xff] }
 0x273   : > { %v9376_v17 = vpop.f32.mrb[6].mxu1  ;;  %3807 = vmatpush1.bf16.msra.mxu1 %v7490_v18  ;;  %v4314_v33 = vmul.f32 %v9374_v26, %v9374_v26 }
 0x274   : > { %v4197_v29 = vadd.f32 %v9376_v17, %v9370_v23  ;;  %v4329_v30 = vmul.f32 %v9376_v17, %v9376_v17  ;;  %v9384_v31 = vpop.f32.mrb[7].mxu1  ;;  %3808 = vmatprep.subr.bf16.mxu1 %v7507_v20  ;;  %v830_v20 = vld [vmem:[%s8918_s16 + $0xd58] sm:$0xff] }
 0x275   : > { %v4204_v34 = vadd.f32 %v9384_v31, %v9374_v26  ;;  %v4330_v35 = vmul.f32 %v9384_v31, %v9384_v31  ;;  %4057 = vmatpush1.bf16.msra.mxu0 %v7432_v48  ;;  %v7571_v32 = vcombine.high %v822_v16, %v830_v20  ;;  %v7480_v48 = vcombine.low %v729_v38, %v737_v39  ;;  %v910_v38 = vld [vmem:[%s8918_s16 + $0xfd8] sm:$0xff]  ;;  %v793_v39 = vld [vmem:[%s8918_s16 + $0xc30] sm:$0xff] }
 0x276   : > { %v4198_v40 = vrot.slane %v4197_v29, 4  ;;  %v4357_v41 = vadd.f32 %v4329_v30, %v4313_v28  ;;  %4058 = vmatprep.subr.bf16.mxu0 %v7449_v3  ;;  %v7464_v28 = vcombine.low %v713_v22, %v721_v21  ;;  %v7602_v21 = vcombine.low %v854_v58, %v862_v61 }
 0x277   : > { %v4205_v44 = vrot.slane %v4204_v34, 4  ;;  %v4364_v46 = vadd.f32 %v4330_v35, %v4314_v33  ;;  %3809 = vmatpush1.bf16.msra.mxu1 %v7506_v6  ;;  %v838_v33 = vld [vmem:[%s8918_s16 + $0xd98] sm:$0xff] }
 0x278   : > { %v4199_v50 = vadd.f32 %v4198_v40, %v4197_v29  ;;  %v4358_v53 = vrot.slane %v4357_v41, 4  ;;  %3810 = vmatprep.subr.bf16.mxu1 %v7523_v27 }
 0x279   : > { %v4206_v59 = vadd.f32 %v4205_v44, %v4204_v34  ;;  %v4365_v60 = vrot.slane %v4364_v46, 4  ;;  %4059 = vmatpush1.bf16.msra.mxu0 %v7448_v11  ;;  %v7603_v11 = vcombine.high %v854_v58, %v862_v61  ;;  %v416_v58 = vld [vmem:[%s8918_s16 + $0x68] sm:$0xff] }
 0x27a   : > { %v4200_v0 = vrot.slane %v4199_v50, 2  ;;  %v4359_v2 = vadd.f32 %v4358_v53, %v4357_v41  ;;  %4060 = vmatprep.subr.bf16.mxu0 %v7465_v9  ;;  %v886_v9 = vld [vmem:[%s8918_s16 + $0xf18] sm:$0xff] }
 0x27b   : > { %v4207_v5 = vrot.slane %v4206_v59, 2  ;;  %v4366_v7 = vadd.f32 %v4365_v60, %v4364_v46  ;;  %3811 = vmatpush1.bf16.msra.mxu1 %v7522_v4  ;;  %v7570_v4 = vcombine.low %v822_v16, %v830_v20  ;;  %v761_v16 = vld [vmem:[%s8918_s16 + $0xb30] sm:$0xff] }
 0x27c   : > { %v4201_v13 = vadd.f32 %v4200_v0, %v4199_v50  ;;  %v4360_v14 = vrot.slane %v4359_v2, 2  ;;  %3812 = vmatprep.subr.bf16.mxu1 %v7539_v55  ;;  %v7587_v55 = vcombine.high %v838_v33, %v846_v36 }
 0x27d   : > { %v4208_v18 = vadd.f32 %v4207_v5, %v4206_v59  ;;  %v4367_v19 = vrot.slane %v4366_v7, 2  ;;  %4061 = vmatpush1.bf16.msra.mxu0 %v7464_v28  ;;  %v7586_v5 = vcombine.low %v838_v33, %v846_v36  ;;  %v8683_v28 = vmov 1966171168   ;;  %v902_v36 = vld [vmem:[%s8918_s16 + $0xf98] sm:$0xff] }
 0x27e   : > { %v4202_v24 = vrot.slane %v4201_v13, 1  ;;  %v4361_v25 = vadd.f32 %v4360_v14, %v4359_v2  ;;  %4062 = vmatprep.subr.bf16.mxu0 %v7481_v43  ;;  %v7497_v2 = vcombine.high %v745_v62, %v753_v63 }
 0x27f   : > { %v4209_v6 = vrot.slane %v4208_v18, 1  ;;  %v4368_v27 = vadd.f32 %v4367_v19, %v4366_v7  ;;  %3813 = vmatpush1.bf16.msra.mxu1 %v7538_v8  ;;  %v7496_v7 = vcombine.low %v745_v62, %v753_v63 }
 0x280   : > { %v4203_v29 = vadd.f32 %v4202_v24, %v4201_v13  ;;  %v4362_v30 = vrot.slane %v4361_v25, 1  ;;  %3814 = vmatprep.subr.bf16.mxu1 %v7555_v15  ;;  %v870_v13 = vld [vmem:[%s8918_s16 + $0xe98] sm:$0xff] }
 0x281   : > { %v4210_v34 = vadd.f32 %v4209_v6, %v4208_v18  ;;  %v4369_v35 = vrot.slane %v4368_v27, 1  ;;  %4063 = vmatpush1.bf16.msra.mxu0 %v7480_v48  ;;  %v878_v15 = vld [vmem:[%s8918_s16 + $0xed8] sm:$0xff]  ;;  %v769_v18 = vld [vmem:[%s8918_s16 + $0xb70] sm:$0xff] }
 0x282   : > { %v9420_v40 = vmul.f32 0.0625, %v4203_v29  ;;  %v4363_v41 = vadd.f32 %v4362_v30, %v4361_v25  ;;  %4064 = vmatprep.subr.bf16.mxu0 %v7497_v2  ;;  %v7513_v20 = vcombine.high %v761_v16, %v769_v18  ;;  %v7512_v24 = vcombine.low %v761_v16, %v769_v18  ;;  %v894_v6 = vld [vmem:[%s8918_s16 + $0xf58] sm:$0xff] }
 0x283   : > { %v9422_v44 = vmul.f32 0.0625, %v4210_v34  ;;  %v4370_v46 = vadd.f32 %v4369_v35, %v4368_v27  ;;  %3815 = vmatpush1.bf16.msra.mxu1 %v7554_v10  ;;  %v7619_v25 = vcombine.high %v870_v13, %v878_v15  ;;  %v777_v27 = vld [vmem:[%s8918_s16 + $0xbb0] sm:$0xff]  ;;  %v4574_v29 = vunpack.c.l.s4 %v8683_v28  ;;  %v456_v28 = vld [vmem:[%s8918_s16 + $0x1a8] sm:$0xff] }
 0x284   : > { %v4457_v50 = vmul.f32 0.0625, %v4363_v41  ;;  %v4473_v53 = vmul.f32 %v9420_v40, %v9420_v40  ;;  %3816 = vmatprep.subr.bf16.mxu1 %v7571_v32  ;;  %v785_v10 = vld [vmem:[%s8918_s16 + $0xbf0] sm:$0xff]  ;;  %v4576_v30 = vlaneseq  ;;  %v7618_v33 = vcombine.low %v870_v13, %v878_v15 }
 0x285   : > { %v4458_v59 = vmul.f32 0.0625, %v4370_v46  ;;  %v4474_v60 = vmul.f32 %v9422_v44, %v9422_v44  ;;  %4065 = vmatpush1.bf16.msra.mxu0 %v7496_v7  ;;  %v7529_v32 = vcombine.high %v777_v27, %v785_v10  ;;  %v7528_v34 = vcombine.low %v777_v27, %v785_v10  ;;  %v801_v41 = vld [vmem:[%s8918_s16 + $0xc70] sm:$0xff] }
 0x286   : > { %v4489_v0 = vsub.f32 %v4457_v50, %v4473_v53  ;;  %4066 = vmatprep.subr.bf16.mxu0 %v7513_v20  ;;  %v7635_v35 = vcombine.high %v886_v9, %v894_v6  ;;  %v4575_v43 = vunpack.c.0.s8 %v4574_v29  ;;  %v9444_v46 = vshrl.u32 %v4576_v30, 7  ;;  %v825_v13 = vld [vmem:[%s8918_s16 + $0xd30] sm:$0xff] }
 0x287   : > { %v4490_v3 = vsub.f32 %v4458_v59, %v4474_v60  ;;  %3817 = vmatpush1.bf16.msra.mxu1 %v7570_v4  ;;  %v7545_v4 = vcombine.high %v793_v39, %v801_v41  ;;  %v7634_v48 = vcombine.low %v886_v9, %v894_v6  ;;  %v7544_v50 = vcombine.low %v793_v39, %v801_v41  ;;  %v809_v59 = vld [vmem:[%s8918_s16 + $0xcb0] sm:$0xff] }
 0x288   : > { %v4505_v8 = vmax.f32 %v4489_v0, 0.0  ;;  %3818 = vmatprep.subr.bf16.mxu1 %v7587_v55  ;;  %v7651_v53 = vcombine.high %v902_v36, %v910_v38  ;;  %v408_v55 = vld [vmem:[%s8918_s16 + $0x28] sm:$0xff]  ;;  %v817_v60 = vld [vmem:[%s8918_s16 + $0xcf0] sm:$0xff]  ;;  %v9451_v62 = vsub.s32 %v4575_v43, %v9444_v46  ;;  %v7650_v2 = vcombine.low %v902_v36, %v910_v38 }
 0x289   : > { %v4506_v14 = vmax.f32 %v4490_v3, 0.0  ;;  %4067 = vmatpush1.bf16.msra.mxu0 %v7512_v24  ;;  %v7561_v63 = vcombine.high %v809_v59, %v817_v60  ;;  %v7560_v3 = vcombine.low %v809_v59, %v817_v60  ;;  %v7159_v7 = vcombine.high %v408_v55, %v416_v58  ;;  %v440_v24 = vld [vmem:[%s8918_s16 + $0x128] sm:$0xff]  ;;  %v9476_v6 = vld [vmem:[%s10274_s0 + $0x4] ss:$16 sps:$4 sm:$0xff]  }
 0x28a   : > { %v4523_v19 = vadd.f32 1e-05, %v4505_v8  ;;  %4068 = vmatprep.subr.bf16.mxu0 %v7529_v32  ;;  %v424_v8 = vld [vmem:[%s8918_s16 + $0xa8] sm:$0xff]  ;;  %v9461_v15 = vrot.slane %v4569_v57, %v9451_v62  ;;  %v849_v57 = vld [vmem:[%s8918_s16 + $0xdf0] sm:$0xff]  ;;  %v7191_v10 = vcombine.high %v440_v24, %v448_v49 }
 0x28b   : > { %v4524_v22 = vadd.f32 1e-05, %v4506_v14  ;;  %3819 = vmatpush1.bf16.msra.mxu1 %v7586_v5  ;;  %v833_v14 = vld [vmem:[%s8918_s16 + $0xd70] sm:$0xff]  ;;  %v7592_v27 = vcombine.low %v841_v51, %v849_v57  ;;  %v472_v36 = vld [vmem:[%s8918_s16 + $0x228] sm:$0xff] }
 0x28c   : > { %8455 = vrsqrt.f32 %v4523_v19  ;;  %3820 = vmatprep.subr.bf16.mxu1 %v7603_v11  ;;  %v432_v11 = vld [vmem:[%s8918_s16 + $0xe8] sm:$0xff]  ;;  %v7577_v18 = vcombine.high %v825_v13, %v833_v14  ;;  %v7158_v19 = vcombine.low %v408_v55, %v416_v58  ;;  %v7576_v20 = vcombine.low %v825_v13, %v833_v14  ;;  %v857_v29 = vld [vmem:[%s8918_s16 + $0xe30] sm:$0xff] }
 0x28d   : > { %8457 = vrsqrt.f32 %v4524_v22  ;;  %4069 = vmatpush1.bf16.msra.mxu0 %v7528_v34  ;;  %v7174_v9 = vcombine.low %v424_v8, %v432_v11  ;;  %v865_v30 = vld [vmem:[%s8918_s16 + $0xe70] sm:$0xff]  ;;  %v480_v38 = vld [vmem:[%s8918_s16 + $0x268] sm:$0xff] }
 0x28e   : > { %4070 = vmatprep.subr.bf16.mxu0 %v7545_v4  ;;  %v7609_v32 = vcombine.high %v857_v29, %v865_v30  ;;  %v7608_v34 = vcombine.low %v857_v29, %v865_v30  ;;  %v873_v39 = vld [vmem:[%s8918_s16 + $0xeb0] sm:$0xff]  ;;  %v496_v55 = vld [vmem:[%s8918_s16 + $0x2e8] sm:$0xff] }
 0x28f   : > { %3821 = vmatpush1.bf16.msra.mxu1 %v7602_v21  ;;  %v7175_v21 = vcombine.high %v424_v8, %v432_v11  ;;  %v881_v41 = vld [vmem:[%s8918_s16 + $0xef0] sm:$0xff]  ;;  %v576_v29 = vld [vmem:[%s8918_s16 + $0x568] sm:$0xff] }
 0x290   : > { %3822 = vmatprep.subr.bf16.mxu1 %v7619_v25  ;;  %v7593_v25 = vcombine.high %v841_v51, %v849_v57  ;;  %v7625_v43 = vcombine.high %v873_v39, %v881_v41  ;;  %v889_v58 = vld [vmem:[%s8918_s16 + $0xf30] sm:$0xff]  ;;  %v9502_v51 = vld [vmem:[%s10274_s0 + $0x8] ss:$16 sps:$4 sm:$0xff]  }
 0x291   : > { %4071 = vmatpush1.bf16.msra.mxu0 %v7544_v50  ;;  %v7223_v50 = vcombine.high %v472_v36, %v480_v38  ;;  %v897_v59 = vld [vmem:[%s8918_s16 + $0xf70] sm:$0xff] }
 0x292   : > { %4072 = vmatprep.subr.bf16.mxu0 %v7561_v63  ;;  %v7641_v60 = vcombine.high %v889_v58, %v897_v59  ;;  %v7640_v63 = vcombine.low %v889_v58, %v897_v59  ;;  %v640_v58 = vld [vmem:[%s8918_s16 + $0x768] sm:$0xff] }
 0x293   : > { %3823 = vmatpush1.bf16.msra.mxu1 %v7618_v33  ;;  %v7190_v33 = vcombine.low %v440_v24, %v448_v49  ;;  %v536_v24 = vld [vmem:[%s8918_s16 + $0x428] sm:$0xff] }
 0x294   : > { %3824 = vmatprep.subr.bf16.mxu1 %v7635_v35  ;;  %v544_v49 = vld [vmem:[%s8918_s16 + $0x468] sm:$0xff] }
 0x295   : > { %4073 = vmatpush1.bf16.msra.mxu0 %v7560_v3  ;;  %v512_v3 = vld [vmem:[%s8918_s16 + $0x368] sm:$0xff] }
 0x296   : > { %v8456_v61 = vpop.eup %8455  ;;  %4074 = vmatprep.subr.bf16.mxu0 %v7577_v18  ;;  %v520_v18 = vld [vmem:[%s8918_s16 + $0x3a8] sm:$0xff] }
 0x297   : > { %v8458_v0 = vpop.eup %8457  ;;  %3825 = vmatpush1.bf16.msra.mxu1 %v7634_v48  ;;  %v7624_v48 = vcombine.low %v873_v39, %v881_v41  ;;  %v608_v39 = vld [vmem:[%s8918_s16 + $0x668] sm:$0xff] }
 0x298   : > { %v4570_v5 = vcombine.low %v8456_v61, %v8458_v0  ;;  %3826 = vmatprep.subr.bf16.mxu1 %v7651_v53  ;;  %v488_v53 = vld [vmem:[%s8918_s16 + $0x2a8] sm:$0xff]  ;;  %v7222_v61 = vcombine.low %v472_v36, %v480_v38 }
 0x299   : > { %4075 = vmatpush1.bf16.msra.mxu0 %v7576_v20  ;;  %v7239_v0 = vcombine.high %v488_v53, %v496_v55  ;;  %v7238_v11 = vcombine.low %v488_v53, %v496_v55  ;;  %v600_v38 = vld [vmem:[%s8918_s16 + $0x628] sm:$0xff] }
 0x29a   : > { %v9464_v16 = vrot.slane %v4570_v5, %v9451_v62  ;;  %4076 = vmatprep.subr.bf16.mxu0 %v7593_v25  ;;  %v905_v5 = vld [vmem:[%s8918_s16 + $0xfb0] sm:$0xff]  ;;  %v7287_v25 = vcombine.high %v536_v24, %v544_v49  ;;  %v632_v55 = vld [vmem:[%s8918_s16 + $0x728] sm:$0xff] }
 0x29b   : > { %3827 = vmatpush1.bf16.msra.mxu1 %v7650_v2  ;;  %v504_v2 = vld [vmem:[%s8918_s16 + $0x328] sm:$0xff] }
 0x29c   : > { %3925 = vmatprep.subr.bf16.mxu1 %v7159_v7  ;;  %v913_v7 = vld [vmem:[%s8918_s16 + $0xff0] sm:$0xff]  ;;  %v7255_v14 = vcombine.high %v504_v2, %v512_v3  ;;  %v7254_v20 = vcombine.low %v504_v2, %v512_v3  ;;  %v664_v3 = vld [vmem:[%s8918_s16 + $0x828] sm:$0xff] }
 0x29d   : > { %4077 = vmatpush1.bf16.msra.mxu0 %v7592_v27  ;;  %v7657_v8 = vcombine.high %v905_v5, %v913_v7  ;;  %v7656_v13 = vcombine.low %v905_v5, %v913_v7  ;;  %v560_v27 = vld [vmem:[%s8918_s16 + $0x4e8] sm:$0xff] }
 0x29e   : > { %3829 = vmatmul.mubr.bf16.vlgmr.msra.gmra.mrb[12].mxu1 %v9280_v12  ;;  %v464_v12 = vld [vmem:[%s8918_s16 + $0x1e8] sm:$0xff]  ;;  %4078 = vmatprep.subr.bf16.mxu0 %v7609_v32 }
 0x29f   : > { %3926 = vmatpush1.bf16.msra.mxu1 %v7158_v19  ;;  %3957 = vmatprep.mubr.bf16.mxu1 %v9476_v6  ;;  %v7207_v35 = vcombine.high %v456_v28, %v464_v12  ;;  %v7206_v4 = vcombine.low %v456_v28, %v464_v12  ;;  %v528_v19 = vld [vmem:[%s8918_s16 + $0x3e8] sm:$0xff] }
 0x2a0   : > { %3927 = vmatprep.subr.bf16.mxu1 %v7175_v21  ;;  %v7271_v21 = vcombine.high %v520_v18, %v528_v19  ;;  %v7270_v57 = vcombine.low %v520_v18, %v528_v19  ;;  %v568_v12 = vld [vmem:[%s8918_s16 + $0x528] sm:$0xff] }
 0x2a1   : > { %4079 = vmatpush1.bf16.msra.mxu0 %v7608_v34  ;;  %v7319_v32 = vcombine.high %v568_v12, %v576_v29  ;;  %v592_v34 = vld [vmem:[%s8918_s16 + $0x5e8] sm:$0xff] }
 0x2a2   : > { %4080 = vmatprep.subr.bf16.mxu0 %v7625_v43  ;;  %v7351_v43 = vcombine.high %v600_v38, %v608_v39  ;;  %v672_v5 = vld [vmem:[%s8918_s16 + $0x868] sm:$0xff] }
 0x2a3   : > { %3928 = vmatpush1.bf16.msra.mxu1 %v7174_v9  ;;  %v552_v9 = vld [vmem:[%s8918_s16 + $0x4a8] sm:$0xff] }
 0x2a4   : > { %3929 = vmatprep.subr.bf16.mxu1 %v7191_v10  ;;  %v7286_v10 = vcombine.low %v536_v24, %v544_v49  ;;  %v7303_v28 = vcombine.high %v552_v9, %v560_v27  ;;  %v7302_v30 = vcombine.low %v552_v9, %v560_v27  ;;  %v696_v19 = vld [vmem:[%s8918_s16 + $0x928] sm:$0xff] }
 0x2a5   : > { %4081 = vmatpush1.bf16.msra.mxu0 %v7624_v48  ;;  %v624_v48 = vld [vmem:[%s8918_s16 + $0x6e8] sm:$0xff] }
 0x2a6   : > { %4082 = vmatprep.subr.bf16.mxu0 %v7641_v60  ;;  %v7383_v60 = vcombine.high %v632_v55, %v640_v58  ;;  %v712_v49 = vld [vmem:[%s8918_s16 + $0x9a8] sm:$0xff] }
 0x2a7   : > { %3930 = vmatpush1.bf16.msra.mxu1 %v7190_v33  ;;  %v584_v33 = vld [vmem:[%s8918_s16 + $0x5a8] sm:$0xff] }
 0x2a8   : > { %3931 = vmatprep.subr.bf16.mxu1 %v7207_v35  ;;  %v7318_v35 = vcombine.low %v568_v12, %v576_v29  ;;  %v7335_v36 = vcombine.high %v584_v33, %v592_v34  ;;  %v7334_v41 = vcombine.low %v584_v33, %v592_v34  ;;  %v728_v27 = vld [vmem:[%s8918_s16 + $0xa28] sm:$0xff] }
 0x2a9   : > { %4083 = vmatpush1.bf16.msra.mxu0 %v7640_v63  ;;  %v656_v63 = vld [vmem:[%s8918_s16 + $0x7e8] sm:$0xff] }
 0x2aa   : > { %4084 = vmatprep.subr.bf16.mxu0 %v7657_v8  ;;  %v7415_v8 = vcombine.high %v664_v3, %v672_v5  ;;  %v752_v12 = vld [vmem:[%s8918_s16 + $0xae8] sm:$0xff] }
 0x2ab   : > { %3932 = vmatpush1.bf16.msra.mxu1 %v7206_v4  ;;  %v616_v4 = vld [vmem:[%s8918_s16 + $0x6a8] sm:$0xff] }
 0x2ac   : > { %3933 = vmatprep.subr.bf16.mxu1 %v7223_v50  ;;  %v7350_v50 = vcombine.low %v600_v38, %v608_v39  ;;  %v7367_v53 = vcombine.high %v616_v4, %v624_v48  ;;  %v7366_v59 = vcombine.low %v616_v4, %v624_v48  ;;  %v768_v33 = vld [vmem:[%s8918_s16 + $0xb68] sm:$0xff] }
 0x2ad   : > { %4085 = vmatpush1.bf16.msra.mxu0 %v7656_v13  ;;  %v688_v13 = vld [vmem:[%s8918_s16 + $0x8e8] sm:$0xff] }
 0x2ae   : > { %v776_v38 = vld [vmem:[%s8918_s16 + $0xba8] sm:$0xff] }
 0x2af   : > { %3934 = vmatpush1.bf16.msra.mxu1 %v7222_v61  ;;  %v648_v61 = vld [vmem:[%s8918_s16 + $0x7a8] sm:$0xff] }
 0x2b0   : > { %3935 = vmatprep.subr.bf16.mxu1 %v7239_v0  ;;  %4087 = vmatmul.mubr.bf16.vlgmr.msra.gmra.mrb[4].mxu0 %v9502_v51  ;;  %v7382_v0 = vcombine.low %v632_v55, %v640_v58  ;;  %v7399_v2 = vcombine.high %v648_v61, %v656_v63  ;;  %v7398_v7 = vcombine.low %v648_v61, %v656_v63  ;;  %v784_v39 = vld [vmem:[%s8918_s16 + $0xbe8] sm:$0xff] }
 0x2b1   : > { %v7527_v58 = vcombine.high %v776_v38, %v784_v39  ;;  %v792_v63 = vld [vmem:[%s8918_s16 + $0xc28] sm:$0xff] }
 0x2b3   : > { %3936 = vmatpush1.bf16.msra.mxu1 %v7238_v11  ;;  %v680_v11 = vld [vmem:[%s8918_s16 + $0x8a8] sm:$0xff] }
 0x2b4   : > { %3937 = vmatprep.subr.bf16.mxu1 %v7255_v14  ;;  %v7414_v14 = vcombine.low %v664_v3, %v672_v5  ;;  %v7431_v18 = vcombine.high %v680_v11, %v688_v13 }
 0x2b7   : > { %3938 = vmatpush1.bf16.msra.mxu1 %v7254_v20  ;;  %v704_v20 = vld [vmem:[%s8918_s16 + $0x968] sm:$0xff] }
 0x2b8   : > { %3939 = vmatprep.subr.bf16.mxu1 %v7271_v21  ;;  %v7430_v21 = vcombine.low %v680_v11, %v688_v13  ;;  %v7447_v24 = vcombine.high %v696_v19, %v704_v20 }
 0x2bb   : > { %3940 = vmatpush1.bf16.msra.mxu1 %v7270_v57  ;;  %v720_v57 = vld [vmem:[%s8918_s16 + $0x9e8] sm:$0xff] }
 0x2bc   : > { %3941 = vmatprep.subr.bf16.mxu1 %v7287_v25  ;;  %v7446_v25 = vcombine.low %v696_v19, %v704_v20  ;;  %v7463_v9 = vcombine.high %v712_v49, %v720_v57  ;;  %v808_v20 = vld [vmem:[%s8918_s16 + $0xca8] sm:$0xff] }
 0x2bf   : > { %3942 = vmatpush1.bf16.msra.mxu1 %v7286_v10  ;;  %v736_v10 = vld [vmem:[%s8918_s16 + $0xa68] sm:$0xff] }
 0x2c0   : > { %3943 = vmatprep.subr.bf16.mxu1 %v7303_v28  ;;  %v7479_v28 = vcombine.high %v728_v27, %v736_v10  ;;  %v7478_v29 = vcombine.low %v728_v27, %v736_v10 }
 0x2c3   : > { %3944 = vmatpush1.bf16.msra.mxu1 %v7302_v30 }
 0x2c4   : > { %3945 = vmatprep.subr.bf16.mxu1 %v7319_v32  ;;  %v760_v32 = vld [vmem:[%s8918_s16 + $0xb28] sm:$0xff] }
 0x2c5   : > { %v7510_v4 = vcombine.low %v760_v32, %v768_v33 }
 0x2c7   : > { %3946 = vmatpush1.bf16.msra.mxu1 %v7318_v35  ;;  %v7511_v35 = vcombine.high %v760_v32, %v768_v33  ;;  %v8067_v32 = vld [vmem:[%s8934_s10] ss:$8 sps:$4 sm:$0xff]  }
 0x2c8   : > { %3947 = vmatprep.subr.bf16.mxu1 %v7335_v36 }
 0x2cb   : > { %3948 = vmatpush1.bf16.msra.mxu1 %v7334_v41 }
 0x2cc   : > { %3949 = vmatprep.subr.bf16.mxu1 %v7351_v43 }
 0x2cf   : > { %3950 = vmatpush1.bf16.msra.mxu1 %v7350_v50 }
 0x2d0   : > { %3951 = vmatprep.subr.bf16.mxu1 %v7367_v53 }
 0x2d3   : > { %3952 = vmatpush1.bf16.msra.mxu1 %v7366_v59 }
 0x2d4   : > { %3953 = vmatprep.subr.bf16.mxu1 %v7383_v60 }
 0x2d7   : > { %3954 = vmatpush1.bf16.msra.mxu1 %v7382_v0  ;;  %v800_v0 = vld [vmem:[%s8918_s16 + $0xc68] sm:$0xff] }
 0x2d8   : > { %3955 = vmatprep.subr.bf16.mxu1 %v7399_v2 }
 0x2db   : > { %3956 = vmatpush1.bf16.msra.mxu1 %v7398_v7 }
 0x2dc   : > { %3968 = vmatprep.subr.bf16.mxu1 %v7415_v8  ;;  %v7526_v8 = vcombine.low %v776_v38, %v784_v39 }
 0x2de   : > { %3958 = vmatmul.mubr.bf16.vlgmr.msra.gmra.mrb[16].mxu1 %v9397_v37  ;;  %v7462_v37 = vcombine.low %v712_v49, %v720_v57 }
 0x2df   : > { %3969 = vmatpush1.bf16.msra.mxu1 %v7414_v14  ;;  %4000 = vmatprep.mubr.bf16.mxu1 %v9405_v1  ;;  %v744_v1 = vld [vmem:[%s8918_s16 + $0xaa8] sm:$0xff]  ;;  %v7543_v14 = vcombine.high %v792_v63, %v800_v0 }
 0x2e0   : > { %3970 = vmatprep.subr.bf16.mxu1 %v7431_v18  ;;  %v7495_v30 = vcombine.high %v744_v1, %v752_v12  ;;  %v7494_v34 = vcombine.low %v744_v1, %v752_v12 }
 0x2e3   : > { %3971 = vmatpush1.bf16.msra.mxu1 %v7430_v21  ;;  %v816_v21 = vld [vmem:[%s8918_s16 + $0xce8] sm:$0xff] }
 0x2e4   : > { %3972 = vmatprep.subr.bf16.mxu1 %v7447_v24  ;;  %v7558_v39 = vcombine.low %v808_v20, %v816_v21 }
 0x2e7   : > { %3973 = vmatpush1.bf16.msra.mxu1 %v7446_v25 }
 0x2e8   : > { %3974 = vmatprep.subr.bf16.mxu1 %v7463_v9  ;;  %v7542_v9 = vcombine.low %v792_v63, %v800_v0  ;;  %v8070_v63 = vld [vmem:[%s8934_s10 + $0x10] ss:$8 sps:$4 sm:$0xff]  }
 0x2eb   : > { %3975 = vmatpush1.bf16.msra.mxu1 %v7462_v37  ;;  %v7559_v37 = vcombine.high %v808_v20, %v816_v21  ;;  %v856_v20 = vld [vmem:[%s8918_s16 + $0xe28] sm:$0xff] }
 0x2ec   : > { %3976 = vmatprep.subr.bf16.mxu1 %v7479_v28  ;;  %v8069_v28 = vld [vmem:[%s8934_s10 + $0x4] ss:$8 sps:$4 sm:$0xff]  }
 0x2ed   : > { %6623 = vmatprep.subr.bf16.mxu0 %v8069_v28  ;;  %v864_v21 = vld [vmem:[%s8918_s16 + $0xe68] sm:$0xff] }
 0x2ee   : > { %6624 = vmatpush1.bf16.msra.mxu0 %v8067_v32  ;;  %v872_v28 = vld [vmem:[%s8918_s16 + $0xea8] sm:$0xff] }
 0x2ef   : > { %3977 = vmatpush1.bf16.msra.mxu1 %v7478_v29  ;;  %v824_v29 = vld [vmem:[%s8918_s16 + $0xd28] sm:$0xff] }
 0x2f0   : > { %3978 = vmatprep.subr.bf16.mxu1 %v7495_v30  ;;  %v832_v30 = vld [vmem:[%s8918_s16 + $0xd68] sm:$0xff] }
 0x2f1   : > { %v9535_v36 = vpop.f32.mrb[8].mxu1 }
 0x2f2   : > { %v9539_v41 = vpop.f32.mrb[9].mxu1  ;;  %v4315_v48 = vmul.f32 %v9535_v36, %v9535_v36 }
 0x2f3   : > { %v9541_v43 = vpop.f32.mrb[10].mxu1  ;;  %3979 = vmatpush1.bf16.msra.mxu1 %v7494_v34  ;;  %v4316_v59 = vmul.f32 %v9539_v41, %v9539_v41 }
 0x2f4   : > { %v4211_v50 = vadd.f32 %v9541_v43, %v9535_v36  ;;  %v4331_v53 = vmul.f32 %v9541_v43, %v9541_v43  ;;  %v9549_v55 = vpop.f32.mrb[11].mxu1  ;;  %3980 = vmatprep.subr.bf16.mxu1 %v7511_v35 }
 0x2f5   : > { %v4218_v60 = vadd.f32 %v9549_v55, %v9539_v41  ;;  %v4332_v61 = vmul.f32 %v9549_v55, %v9549_v55 }
 0x2f6   : > { %v4212_v2 = vrot.slane %v4211_v50, 4  ;;  %v4371_v3 = vadd.f32 %v4331_v53, %v4315_v48  ;;  %v8072_v53 = vld [vmem:[%s8934_s10 + $0x14] ss:$8 sps:$4 sm:$0xff]  }
 0x2f7   : > { %v4219_v5 = vrot.slane %v4218_v60, 4  ;;  %v4378_v7 = vadd.f32 %v4332_v61, %v4316_v59  ;;  %3981 = vmatpush1.bf16.msra.mxu1 %v7510_v4  ;;  %v848_v61 = vld [vmem:[%s8918_s16 + $0xde8] sm:$0xff]  ;;  %6625 = vmatprep.subr.bf16.mxu0 %v8072_v53 }
 0x2f8   : > { %v4213_v11 = vadd.f32 %v4212_v2, %v4211_v50  ;;  %v4372_v13 = vrot.slane %v4371_v3, 4  ;;  %3982 = vmatprep.subr.bf16.mxu1 %v7527_v58  ;;  %v7575_v50 = vcombine.high %v824_v29, %v832_v30  ;;  %6626 = vmatpush1.bf16.msra.mxu0 %v8070_v63 }
 0x2f9   : > { %v4220_v18 = vadd.f32 %v4219_v5, %v4218_v60  ;;  %v4379_v19 = vrot.slane %v4378_v7, 4  ;;  %v840_v60 = vld [vmem:[%s8918_s16 + $0xda8] sm:$0xff] }
 0x2fa   : > { %v4214_v24 = vrot.slane %v4213_v11, 2  ;;  %v4373_v49 = vadd.f32 %v4372_v13, %v4371_v3  ;;  %v7591_v13 = vcombine.high %v840_v60, %v848_v61 }
 0x2fb   : > { %v4221_v57 = vrot.slane %v4220_v18, 2  ;;  %v4380_v25 = vadd.f32 %v4379_v19, %v4378_v7  ;;  %3983 = vmatpush1.bf16.msra.mxu1 %v7526_v8  ;;  %v7574_v7 = vcombine.low %v824_v29, %v832_v30  ;;  %v8076_v29 = vld [vmem:[%s8934_s10 + $0x30] ss:$8 sps:$4 sm:$0xff]  }
 0x2fc   : > { %v4215_v27 = vadd.f32 %v4214_v24, %v4213_v11  ;;  %v4374_v10 = vrot.slane %v4373_v49, 2  ;;  %3984 = vmatprep.subr.bf16.mxu1 %v7543_v14  ;;  %v8075_v14 = vld [vmem:[%s8934_s10 + $0x24] ss:$8 sps:$4 sm:$0xff]   ;;  %v8073_v24 = vld [vmem:[%s8934_s10 + $0x20] ss:$8 sps:$4 sm:$0xff]  }
 0x2fd   : > { %v4222_v1 = vadd.f32 %v4221_v57, %v4220_v18  ;;  %v4381_v12 = vrot.slane %v4380_v25, 2  ;;  %6627 = vmatprep.subr.bf16.mxu0 %v8075_v14 }
 0x2fe   : > { %v4216_v33 = vrot.slane %v4215_v27, 1  ;;  %v4375_v34 = vadd.f32 %v4374_v10, %v4373_v49  ;;  %6628 = vmatpush1.bf16.msra.mxu0 %v8073_v24  ;;  %v8078_v10 = vld [vmem:[%s8934_s10 + $0x34] ss:$8 sps:$4 sm:$0xff]   ;;  %v8082_v24 = vld [vmem:[%s8934_s10 + $0x50] ss:$8 sps:$4 sm:$0xff]  }
 0x2ff   : > { %v4223_v35 = vrot.slane %v4222_v1, 1  ;;  %v4382_v38 = vadd.f32 %v4381_v12, %v4380_v25  ;;  %3985 = vmatpush1.bf16.msra.mxu1 %v7542_v9  ;;  %v7590_v25 = vcombine.low %v840_v60, %v848_v61  ;;  %v9584_v12 = vpop.f32.mrb[0].mxu0  ;;  %6629 = vmatprep.subr.bf16.mxu0 %v8078_v10  ;;  %v8079_v60 = vld [vmem:[%s8934_s10 + $0x40] ss:$8 sps:$4 sm:$0xff]  }
 0x300   : > { %v4217_v4 = vadd.f32 %v4216_v33, %v4215_v27  ;;  %v4376_v48 = vrot.slane %v4375_v34, 1  ;;  %3986 = vmatprep.subr.bf16.mxu1 %v7559_v37  ;;  %v7607_v27 = vcombine.high %v856_v20, %v864_v21  ;;  %10309 = vst [vmem:[#allocation15_spill] sm:$0xff] %v9584_v12  ;;  %v9587_v32 = vpop.f32.mrb[1].mxu0  ;;  %v4319_v53 = vmul.f32 %v9584_v12, %v9584_v12 }
 0x301   : > { %v4224_v58 = vadd.f32 %v4223_v35, %v4222_v1  ;;  %v4383_v59 = vrot.slane %v4382_v38, 1  ;;  %v880_v1 = vld [vmem:[%s8918_s16 + $0xee8] sm:$0xff]  ;;  %v9589_v35 = vpop.f32.mrb[2].mxu0 }
 0x302   : > { %v9569_v0 = vmul.f32 0.0625, %v4217_v4  ;;  %v4377_v2 = vadd.f32 %v4376_v48, %v4375_v34  ;;  %v7606_v34 = vcombine.low %v856_v20, %v864_v21  ;;  %10310 = vst [vmem:[#allocation16_spill] sm:$0xff] %v9589_v35  ;;  %6630 = vmatpush1.bf16.msra.mxu0 %v8076_v29  ;;  %v8081_v4 = vld [vmem:[%s8934_s10 + $0x44] ss:$8 sps:$4 sm:$0xff]   ;;  %v4335_v61 = vmul.f32 %v9589_v35, %v9589_v35 }
 0x303   : > { %v9571_v3 = vmul.f32 0.0625, %v4224_v58  ;;  %v4384_v5 = vadd.f32 %v4383_v59, %v4382_v38  ;;  %3987 = vmatpush1.bf16.msra.mxu1 %v7558_v39  ;;  %v7623_v38 = vcombine.high %v872_v28, %v880_v1  ;;  %v9591_v39 = vpop.f32.mrb[3].mxu0  ;;  %v888_v48 = vld [vmem:[%s8918_s16 + $0xf28] sm:$0xff]  ;;  %v4320_v58 = vmul.f32 %v9587_v32, %v9587_v32  ;;  %6631 = vmatprep.subr.bf16.mxu0 %v8081_v4 }
 0x304   : > { %v4459_v8 = vmul.f32 0.0625, %v4377_v2  ;;  %v4475_v11 = vmul.f32 %v9569_v0, %v9569_v0  ;;  %3988 = vmatprep.subr.bf16.mxu1 %v7575_v50  ;;  %10311 = vst [vmem:[#allocation17_spill] sm:$0xff] %v9591_v39  ;;  %v896_v50 = vld [vmem:[%s8918_s16 + $0xf68] sm:$0xff]  ;;  %v4239_v59 = vadd.f32 %v9589_v35, %v9584_v12  ;;  %v4246_v63 = vadd.f32 %v9591_v39, %v9587_v32 }
 0x305   : > { %v4460_v18 = vmul.f32 0.0625, %v4384_v5  ;;  %v4476_v19 = vmul.f32 %v9571_v3, %v9571_v3  ;;  %v4336_v2 = vmul.f32 %v9591_v39, %v9591_v39  ;;  %v7622_v5 = vcombine.low %v872_v28, %v880_v1  ;;  %v912_v20 = vld [vmem:[%s8918_s16 + $0xfe8] sm:$0xff]  ;;  %v418_v28 = vld [vmem:[%s8918_s16 + $0x78] sm:$0xff] }
 0x306   : > { %v4491_v49 = vsub.f32 %v4459_v8, %v4475_v11  ;;  %6632 = vmatpush1.bf16.msra.mxu0 %v8079_v60  ;;  %v7639_v8 = vcombine.high %v888_v48, %v896_v50  ;;  %v4399_v11 = vadd.f32 %v4335_v61, %v4319_v53 }
 0x307   : > { %v4492_v57 = vsub.f32 %v4460_v18, %v4476_v19  ;;  %3989 = vmatpush1.bf16.msra.mxu1 %v7574_v7  ;;  %v4240_v7 = vrot.slane %v4239_v59, 4  ;;  %v4406_v14 = vadd.f32 %v4336_v2, %v4320_v58  ;;  %v8084_v18 = vld [vmem:[%s8934_s10 + $0x54] ss:$8 sps:$4 sm:$0xff]   ;;  %v904_v19 = vld [vmem:[%s8918_s16 + $0xfa8] sm:$0xff] }
 0x308   : > { %v4507_v9 = vmax.f32 %v4491_v49, 0.0  ;;  %3990 = vmatprep.subr.bf16.mxu1 %v7591_v13  ;;  %v4247_v13 = vrot.slane %v4246_v63, 4  ;;  %v4400_v49 = vrot.slane %v4399_v11, 4  ;;  %6633 = vmatprep.subr.bf16.mxu0 %v8084_v18  ;;  %v7655_v10 = vcombine.high %v904_v19, %v912_v20  ;;  %v8088_v18 = vld [vmem:[%s8934_s10 + $0x70] ss:$8 sps:$4 sm:$0xff]  }
 0x309   : > { %v4508_v37 = vmax.f32 %v4492_v57, 0.0  ;;  %v4241_v21 = vadd.f32 %v4240_v7, %v4239_v59  ;;  %v7654_v59 = vcombine.low %v904_v19, %v912_v20 }
 0x30a   : > { %v4525_v30 = vadd.f32 1e-05, %v4507_v9  ;;  %v4248_v57 = vadd.f32 %v4247_v13, %v4246_v63  ;;  %v7638_v9 = vcombine.low %v888_v48, %v896_v50  ;;  %6634 = vmatpush1.bf16.msra.mxu0 %v8082_v24  ;;  %v4401_v1 = vadd.f32 %v4400_v49, %v4399_v11  ;;  %v426_v11 = vld [vmem:[%s8918_s16 + $0xb8] sm:$0xff] }
 0x30b   : > { %v4526_v33 = vadd.f32 1e-05, %v4508_v37  ;;  %3991 = vmatpush1.bf16.msra.mxu1 %v7590_v25  ;;  %v4407_v25 = vrot.slane %v4406_v14, 4  ;;  %v410_v37 = vld [vmem:[%s8918_s16 + $0x38] sm:$0xff] }
 0x30c   : > { %8459 = vrsqrt.f32 %v4525_v30  ;;  %3992 = vmatprep.subr.bf16.mxu1 %v7607_v27  ;;  %v4242_v27 = vrot.slane %v4241_v21, 2  ;;  %v4249_v29 = vrot.slane %v4248_v57, 2  ;;  %v4402_v53 = vrot.slane %v4401_v1, 2  ;;  %v434_v13 = vld [vmem:[%s8918_s16 + $0xf8] sm:$0xff] }
 0x30d   : > { %8461 = vrsqrt.f32 %v4526_v33  ;;  %v4408_v30 = vadd.f32 %v4407_v25, %v4406_v14  ;;  %v8087_v33 = vld [vmem:[%s8934_s10 + $0x64] ss:$8 sps:$4 sm:$0xff]   ;;  %v7163_v60 = vcombine.high %v410_v37, %v418_v28  ;;  %v7162_v24 = vcombine.low %v410_v37, %v418_v28 }
 0x30e   : > { %v4250_v58 = vadd.f32 %v4249_v29, %v4248_v57  ;;  %6635 = vmatprep.subr.bf16.mxu0 %v8087_v33  ;;  %v4403_v2 = vadd.f32 %v4402_v53, %v4401_v1  ;;  %v7179_v57 = vcombine.high %v426_v11, %v434_v13  ;;  %v442_v1 = vld [vmem:[%s8918_s16 + $0x138] sm:$0xff]  ;;  %v8091_v33 = vld [vmem:[%s8934_s10 + $0x80] ss:$8 sps:$4 sm:$0xff]  }
 0x30f   : > { %3993 = vmatpush1.bf16.msra.mxu1 %v7606_v34  ;;  %v4243_v34 = vadd.f32 %v4242_v27, %v4241_v21  ;;  %v4409_v48 = vrot.slane %v4408_v30, 2  ;;  %v450_v29 = vld [vmem:[%s8918_s16 + $0x178] sm:$0xff] }
 0x310   : > { %3994 = vmatprep.subr.bf16.mxu1 %v7623_v38  ;;  %v8085_v38 = vld [vmem:[%s8934_s10 + $0x60] ss:$8 sps:$4 sm:$0xff]   ;;  %v4404_v21 = vrot.slane %v4403_v2, 1  ;;  %v7195_v53 = vcombine.high %v442_v1, %v450_v29 }
 0x311   : > { %v4244_v61 = vrot.slane %v4243_v34, 1  ;;  %6636 = vmatpush1.bf16.msra.mxu0 %v8085_v38  ;;  %v4410_v7 = vadd.f32 %v4409_v48, %v4408_v30  ;;  %v7178_v38 = vcombine.low %v426_v11, %v434_v13  ;;  %v474_v11 = vld [vmem:[%s8918_s16 + $0x238] sm:$0xff] }
 0x312   : > { %v4405_v25 = vadd.f32 %v4404_v21, %v4403_v2  ;;  %v7194_v2 = vcombine.low %v442_v1, %v450_v29  ;;  %v482_v13 = vld [vmem:[%s8918_s16 + $0x278] sm:$0xff]  ;;  %v8105_v29 = vld [vmem:[%s8934_s10 + $0xc4] ss:$8 sps:$4 sm:$0xff]  }
 0x313   : > { %3995 = vmatpush1.bf16.msra.mxu1 %v7622_v5  ;;  %v4251_v5 = vrot.slane %v4250_v58, 1  ;;  %v4245_v14 = vadd.f32 %v4244_v61, %v4243_v34  ;;  %v4411_v20 = vrot.slane %v4410_v7, 1  ;;  %v8094_v61 = vld [vmem:[%s8934_s10 + $0x90] ss:$8 sps:$4 sm:$0xff]  }
 0x314   : > { %3996 = vmatprep.subr.bf16.mxu1 %v7639_v8  ;;  %v8090_v8 = vld [vmem:[%s8934_s10 + $0x74] ss:$8 sps:$4 sm:$0xff]   ;;  %v4463_v37 = vmul.f32 0.0625, %v4405_v25 }
 0x315   : > { %v4252_v19 = vadd.f32 %v4251_v5, %v4250_v58  ;;  %6637 = vmatprep.subr.bf16.mxu0 %v8090_v8  ;;  %v9627_v49 = vmul.f32 0.0625, %v4245_v14  ;;  %v4412_v27 = vadd.f32 %v4411_v20, %v4410_v7  ;;  %v8099_v8 = vld [vmem:[%s8934_s10 + $0xa4] ss:$8 sps:$4 sm:$0xff]   ;;  %v8097_v14 = vld [vmem:[%s8934_s10 + $0xa0] ss:$8 sps:$4 sm:$0xff]   ;;  %v7227_v20 = vcombine.high %v474_v11, %v482_v13  ;;  %v498_v25 = vld [vmem:[%s8918_s16 + $0x2f8] sm:$0xff] }
 0x316   : > { %v9617_v4 = vpop.eup %8459  ;;  %6638 = vmatpush1.bf16.msra.mxu0 %v8088_v18 }
 0x317   : > { %v9619_v50 = vpop.eup %8461  ;;  %3997 = vmatpush1.bf16.msra.mxu1 %v7638_v9  ;;  %v9629_v9 = vmul.f32 0.0625, %v4252_v19  ;;  %v4479_v30 = vmul.f32 %v9627_v49, %v9627_v49  ;;  %v4464_v28 = vmul.f32 0.0625, %v4412_v27  ;;  %v8100_v27 = vld [vmem:[%s8934_s10 + $0xb0] ss:$8 sps:$4 sm:$0xff]  }
 0x318   : > { %3998 = vmatprep.subr.bf16.mxu1 %v7655_v10  ;;  %v8093_v10 = vld [vmem:[%s8934_s10 + $0x84] ss:$8 sps:$4 sm:$0xff]  }
 0x319   : > { %v4480_v34 = vmul.f32 %v9629_v9, %v9629_v9  ;;  %6639 = vmatprep.subr.bf16.mxu0 %v8093_v10  ;;  %v4495_v58 = vsub.f32 %v4463_v37, %v4479_v30  ;;  %v7226_v10 = vcombine.low %v474_v11, %v482_v13  ;;  %v506_v30 = vld [vmem:[%s8918_s16 + $0x338] sm:$0xff]  ;;  %v8103_v37 = vld [vmem:[%s8934_s10 + $0xc0] ss:$8 sps:$4 sm:$0xff]  }
 0x31a   : > { %6640 = vmatpush1.bf16.msra.mxu0 %v8091_v33  ;;  %v514_v33 = vld [vmem:[%s8918_s16 + $0x378] sm:$0xff] }
 0x31b   : > { %3999 = vmatpush1.bf16.msra.mxu1 %v7654_v59  ;;  %v4496_v48 = vsub.f32 %v4464_v28, %v4480_v34  ;;  %v458_v59 = vld [vmem:[%s8918_s16 + $0x1b8] sm:$0xff]  ;;  %v4511_v7 = vmax.f32 %v4495_v58, 0.0  ;;  %v7259_v34 = vcombine.high %v506_v30, %v514_v33 }
 0x31c   : > { %4097 = vmatprep.subr.bf16.mxu1 %v7163_v60  ;;  %v466_v60 = vld [vmem:[%s8918_s16 + $0x1f8] sm:$0xff] }
 0x31d   : > { %v7211_v5 = vcombine.high %v458_v59, %v466_v60  ;;  %v4529_v18 = vadd.f32 1e-05, %v4511_v7  ;;  %v7210_v19 = vcombine.low %v458_v59, %v466_v60  ;;  %v530_v58 = vld [vmem:[%s8918_s16 + $0x3f8] sm:$0xff]  ;;  %v7258_v60 = vcombine.low %v506_v30, %v514_v33 }
 0x31e   : > { %4001 = vmatmul.mubr.bf16.vlgmr.msra.gmra.mrb[16].mxu1 %v9502_v51  ;;  %v8096_v51 = vld [vmem:[%s8934_s10 + $0x94] ss:$8 sps:$4 sm:$0xff]  }
 0x31f   : > { %4098 = vmatpush1.bf16.msra.mxu1 %v7162_v24  ;;  %4129 = vmatprep.mubr.bf16.mxu1 %v9476_v6  ;;  %v4512_v6 = vmax.f32 %v4496_v48, 0.0  ;;  %8463 = vrsqrt.f32 %v4529_v18  ;;  %v8102_v24 = vld [vmem:[%s8934_s10 + $0xb4] ss:$8 sps:$4 sm:$0xff]   ;;  %v8106_v48 = vld [vmem:[%s8934_s10 + $0xd0] ss:$8 sps:$4 sm:$0xff]  }
 0x320   : > { %4099 = vmatprep.subr.bf16.mxu1 %v7179_v57  ;;  %6641 = vmatprep.subr.bf16.mxu0 %v8096_v51  ;;  %v490_v57 = vld [vmem:[%s8918_s16 + $0x2b8] sm:$0xff] }
 0x321   : > { %6642 = vmatpush1.bf16.msra.mxu0 %v8094_v61  ;;  %v4530_v21 = vadd.f32 1e-05, %v4512_v6  ;;  %v7243_v1 = vcombine.high %v490_v57, %v498_v25  ;;  %v7242_v28 = vcombine.low %v490_v57, %v498_v25  ;;  %v538_v7 = vld [vmem:[%s8918_s16 + $0x438] sm:$0xff] }
 0x322   : > { %6643 = vmatprep.subr.bf16.mxu0 %v8099_v8  ;;  %v546_v6 = vld [vmem:[%s8918_s16 + $0x478] sm:$0xff]  ;;  %v8109_v8 = vld [vmem:[%s8934_s10 + $0xe0] ss:$8 sps:$4 sm:$0xff]  }
 0x323   : > { %4100 = vmatpush1.bf16.msra.mxu1 %v7178_v38  ;;  %8465 = vrsqrt.f32 %v4530_v21  ;;  %v8108_v38 = vld [vmem:[%s8934_s10 + $0xd4] ss:$8 sps:$4 sm:$0xff]   ;;  %v8112_v18 = vld [vmem:[%s8934_s10 + $0xf0] ss:$8 sps:$4 sm:$0xff]  }
 0x324   : > { %4101 = vmatprep.subr.bf16.mxu1 %v7195_v53  ;;  %v522_v53 = vld [vmem:[%s8918_s16 + $0x3b8] sm:$0xff] }
 0x325   : > { %6644 = vmatpush1.bf16.msra.mxu0 %v8097_v14  ;;  %v7275_v61 = vcombine.high %v522_v53, %v530_v58  ;;  %v7274_v11 = vcombine.low %v522_v53, %v530_v58  ;;  %v8114_v13 = vld [vmem:[%s8934_s10 + $0xf4] ss:$8 sps:$4 sm:$0xff]   ;;  %v7291_v14 = vcombine.high %v538_v7, %v546_v6 }
 0x326   : > { %6645 = vmatprep.subr.bf16.mxu0 %v8102_v24  ;;  %v554_v21 = vld [vmem:[%s8918_s16 + $0x4b8] sm:$0xff] }
 0x327   : > { %4102 = vmatpush1.bf16.msra.mxu1 %v7194_v2  ;;  %v570_v57 = vld [vmem:[%s8918_s16 + $0x538] sm:$0xff] }
 0x328   : > { %4103 = vmatprep.subr.bf16.mxu1 %v7211_v5  ;;  %v8111_v5 = vld [vmem:[%s8934_s10 + $0xe4] ss:$8 sps:$4 sm:$0xff]   ;;  %v578_v25 = vld [vmem:[%s8918_s16 + $0x578] sm:$0xff] }
 0x329   : > { %6646 = vmatpush1.bf16.msra.mxu0 %v8100_v27  ;;  %v9661_v51 = vpop.eup %8463  ;;  %v8117_v27 = vld [vmem:[%s8934_s10 + $0x104] ss:$8 sps:$4 sm:$0xff]   ;;  %v594_v30 = vld [vmem:[%s8918_s16 + $0x5f8] sm:$0xff]  ;;  %v7322_v33 = vcombine.low %v570_v57, %v578_v25 }
 0x32a   : > { %6647 = vmatprep.subr.bf16.mxu0 %v8105_v29  ;;  %v586_v29 = vld [vmem:[%s8918_s16 + $0x5b8] sm:$0xff] }
 0x32b   : > { %4104 = vmatpush1.bf16.msra.mxu1 %v7210_v19  ;;  %v562_v19 = vld [vmem:[%s8918_s16 + $0x4f8] sm:$0xff] }
 0x32c   : > { %4105 = vmatprep.subr.bf16.mxu1 %v7227_v20  ;;  %v7290_v20 = vcombine.low %v538_v7, %v546_v6  ;;  %v7307_v24 = vcombine.high %v554_v21, %v562_v19  ;;  %v618_v58 = vld [vmem:[%s8918_s16 + $0x6b8] sm:$0xff] }
 0x32d   : > { %6648 = vmatpush1.bf16.msra.mxu0 %v8103_v37  ;;  %v9663_v59 = vpop.eup %8465  ;;  %v7339_v37 = vcombine.high %v586_v29, %v594_v30  ;;  %v642_v7 = vld [vmem:[%s8918_s16 + $0x778] sm:$0xff] }
 0x32e   : > { %6649 = vmatprep.subr.bf16.mxu0 %v8108_v38  ;;  %v7338_v38 = vcombine.low %v586_v29, %v594_v30  ;;  %v706_v29 = vld [vmem:[%s8918_s16 + $0x978] sm:$0xff]  ;;  %v8491_v30 = vld [vmem:[%s10274_s0] ss:$16 sps:$4 sm:$0xff]  }
 0x32f   : > { %4106 = vmatpush1.bf16.msra.mxu1 %v7226_v10  ;;  %v7306_v10 = vcombine.low %v554_v21, %v562_v19  ;;  %v666_v21 = vld [vmem:[%s8918_s16 + $0x838] sm:$0xff] }
 0x330   : > { %4107 = vmatprep.subr.bf16.mxu1 %v7243_v1  ;;  %v7323_v1 = vcombine.high %v570_v57, %v578_v25  ;;  %v674_v19 = vld [vmem:[%s8918_s16 + $0x878] sm:$0xff] }
 0x331   : > { %6650 = vmatpush1.bf16.msra.mxu0 %v8106_v48  ;;  %v626_v48 = vld [vmem:[%s8918_s16 + $0x6f8] sm:$0xff] }
 0x332   : > { %6651 = vmatprep.subr.bf16.mxu0 %v8111_v5  ;;  %v634_v5 = vld [vmem:[%s8918_s16 + $0x738] sm:$0xff]  ;;  %v7370_v6 = vcombine.low %v618_v58, %v626_v48 }
 0x333   : > { %4108 = vmatpush1.bf16.msra.mxu1 %v7242_v28  ;;  %v602_v28 = vld [vmem:[%s8918_s16 + $0x638] sm:$0xff] }
 0x334   : > { %4109 = vmatprep.subr.bf16.mxu1 %v7259_v34  ;;  %v610_v34 = vld [vmem:[%s8918_s16 + $0x678] sm:$0xff] }
 0x335   : > { %6652 = vmatpush1.bf16.msra.mxu0 %v8109_v8  ;;  %v7355_v53 = vcombine.high %v602_v28, %v610_v34  ;;  %v7387_v8 = vcombine.high %v634_v5, %v642_v7  ;;  %v682_v57 = vld [vmem:[%s8918_s16 + $0x8b8] sm:$0xff] }
 0x336   : > { %6653 = vmatprep.subr.bf16.mxu0 %v8114_v13  ;;  %v658_v13 = vld [vmem:[%s8918_s16 + $0x7f8] sm:$0xff] }
 0x337   : > { %4110 = vmatpush1.bf16.msra.mxu1 %v7258_v60  ;;  %v7354_v60 = vcombine.low %v602_v28, %v610_v34  ;;  %v690_v25 = vld [vmem:[%s8918_s16 + $0x8f8] sm:$0xff] }
 0x338   : > { %4111 = vmatprep.subr.bf16.mxu1 %v7275_v61  ;;  %v7371_v61 = vcombine.high %v618_v58, %v626_v48  ;;  %v714_v34 = vld [vmem:[%s8918_s16 + $0x9b8] sm:$0xff] }
 0x339   : > { %6654 = vmatpush1.bf16.msra.mxu0 %v8112_v18  ;;  %v730_v48 = vld [vmem:[%s8918_s16 + $0xa38] sm:$0xff] }
 0x33a   : > { %6666 = vmatprep.subr.bf16.mxu0 %v8117_v27  ;;  %v7418_v27 = vcombine.low %v666_v21, %v674_v19 }
 0x33b   : > { %4112 = vmatpush1.bf16.msra.mxu1 %v7274_v11  ;;  %v650_v11 = vld [vmem:[%s8918_s16 + $0x7b8] sm:$0xff] }
 0x33c   : > { %4113 = vmatprep.subr.bf16.mxu1 %v7291_v14  ;;  %v7386_v14 = vcombine.low %v634_v5, %v642_v7  ;;  %v7403_v18 = vcombine.high %v650_v11, %v658_v13  ;;  %v746_v7 = vld [vmem:[%s8918_s16 + $0xab8] sm:$0xff] }
 0x33f   : > { %4114 = vmatpush1.bf16.msra.mxu1 %v7290_v20  ;;  %v7402_v20 = vcombine.low %v650_v11, %v658_v13  ;;  %v762_v13 = vld [vmem:[%s8918_s16 + $0xb38] sm:$0xff] }
 0x340   : > { %4115 = vmatprep.subr.bf16.mxu1 %v7307_v24  ;;  %v7419_v24 = vcombine.high %v666_v21, %v674_v19 }
 0x343   : > { %4116 = vmatpush1.bf16.msra.mxu1 %v7306_v10  ;;  %v7435_v10 = vcombine.high %v682_v57, %v690_v25 }
 0x344   : > { %4117 = vmatprep.subr.bf16.mxu1 %v7323_v1  ;;  %v698_v1 = vld [vmem:[%s8918_s16 + $0x938] sm:$0xff] }
 0x345   : > { %v7451_v28 = vcombine.high %v698_v1, %v706_v29 }
 0x347   : > { %4118 = vmatpush1.bf16.msra.mxu1 %v7322_v33  ;;  %v7434_v33 = vcombine.low %v682_v57, %v690_v25 }
 0x348   : > { %4119 = vmatprep.subr.bf16.mxu1 %v7339_v37  ;;  %v8492_v37 = vld [vmem:[%s10274_s0 + $0xc] ss:$16 sps:$4 sm:$0xff]  }
 0x34b   : > { %4120 = vmatpush1.bf16.msra.mxu1 %v7338_v38  ;;  %v722_v38 = vld [vmem:[%s8918_s16 + $0x9f8] sm:$0xff] }
 0x34c   : > { %4121 = vmatprep.subr.bf16.mxu1 %v7355_v53  ;;  %v7450_v53 = vcombine.low %v698_v1, %v706_v29  ;;  %v7467_v58 = vcombine.high %v714_v34, %v722_v38 }
 0x34f   : > { %4122 = vmatpush1.bf16.msra.mxu1 %v7354_v60  ;;  %v738_v60 = vld [vmem:[%s8918_s16 + $0xa78] sm:$0xff] }
 0x350   : > { %4123 = vmatprep.subr.bf16.mxu1 %v7371_v61  ;;  %v7466_v61 = vcombine.low %v714_v34, %v722_v38  ;;  %v7483_v5 = vcombine.high %v730_v48, %v738_v60  ;;  %v794_v38 = vld [vmem:[%s8918_s16 + $0xc38] sm:$0xff] }
 0x353   : > { %4124 = vmatpush1.bf16.msra.mxu1 %v7370_v6  ;;  %v754_v6 = vld [vmem:[%s8918_s16 + $0xaf8] sm:$0xff] }
 0x354   : > { %4125 = vmatprep.subr.bf16.mxu1 %v7387_v8  ;;  %v7482_v8 = vcombine.low %v730_v48, %v738_v60  ;;  %v7499_v11 = vcombine.high %v746_v7, %v754_v6 }
 0x357   : > { %4126 = vmatpush1.bf16.msra.mxu1 %v7386_v14  ;;  %v770_v14 = vld [vmem:[%s8918_s16 + $0xb78] sm:$0xff] }
 0x358   : > { %4127 = vmatprep.subr.bf16.mxu1 %v7403_v18  ;;  %v7498_v18 = vcombine.low %v746_v7, %v754_v6  ;;  %v7515_v21 = vcombine.high %v762_v13, %v770_v14 }
 0x35b   : > { %4128 = vmatpush1.bf16.msra.mxu1 %v7402_v20  ;;  %v778_v20 = vld [vmem:[%s8918_s16 + $0xbb8] sm:$0xff] }
 0x35c   : > { %4140 = vmatprep.subr.bf16.mxu1 %v7419_v24  ;;  %v786_v24 = vld [vmem:[%s8918_s16 + $0xbf8] sm:$0xff] }
 0x35e   : > { %4130 = vmatmul.mubr.bf16.vlgmr.msra.gmra.mrb[20].mxu1 %v8491_v30 }
 0x35f   : > { %4141 = vmatpush1.bf16.msra.mxu1 %v7418_v27  ;;  %4172 = vmatprep.mubr.bf16.mxu1 %v8492_v37  ;;  %v7514_v27 = vcombine.low %v762_v13, %v770_v14  ;;  %v810_v14 = vld [vmem:[%s8918_s16 + $0xcb8] sm:$0xff] }
 0x360   : > { %4142 = vmatprep.subr.bf16.mxu1 %v7435_v10 }
 0x363   : > { %4143 = vmatpush1.bf16.msra.mxu1 %v7434_v33  ;;  %v7531_v33 = vcombine.high %v778_v20, %v786_v24 }
 0x364   : > { %4144 = vmatprep.subr.bf16.mxu1 %v7451_v28 }
 0x367   : > { %4145 = vmatpush1.bf16.msra.mxu1 %v7450_v53  ;;  %v802_v53 = vld [vmem:[%s8918_s16 + $0xc78] sm:$0xff] }
 0x368   : > { %4146 = vmatprep.subr.bf16.mxu1 %v7467_v58 }
 0x36b   : > { %4147 = vmatpush1.bf16.msra.mxu1 %v7466_v61 }
 0x36c   : > { %4148 = vmatprep.subr.bf16.mxu1 %v7483_v5  ;;  %v7530_v5 = vcombine.low %v778_v20, %v786_v24 }
 0x36f   : > { %4149 = vmatpush1.bf16.msra.mxu1 %v7482_v8  ;;  %v7547_v8 = vcombine.high %v794_v38, %v802_v53 }
 0x370   : > { %4150 = vmatprep.subr.bf16.mxu1 %v7499_v11 }
 0x371   : > { %v9708_v19 = vpop.f32.mrb[12].mxu1 }
 0x372   : > { %v9712_v57 = vpop.f32.mrb[13].mxu1  ;;  %v4317_v10 = vmul.f32 %v9708_v19, %v9708_v19 }
 0x373   : > { %v9714_v25 = vpop.f32.mrb[14].mxu1  ;;  %4151 = vmatpush1.bf16.msra.mxu1 %v7498_v18  ;;  %v4318_v37 = vmul.f32 %v9712_v57, %v9712_v57  ;;  %v818_v18 = vld [vmem:[%s8918_s16 + $0xcf8] sm:$0xff] }
 0x374   : > { %v4225_v1 = vadd.f32 %v9714_v25, %v9708_v19  ;;  %v4333_v29 = vmul.f32 %v9714_v25, %v9714_v25  ;;  %v9722_v30 = vpop.f32.mrb[15].mxu1  ;;  %4152 = vmatprep.subr.bf16.mxu1 %v7515_v21  ;;  %v7563_v20 = vcombine.high %v810_v14, %v818_v18 }
 0x375   : > { %v4232_v28 = vadd.f32 %v9722_v30, %v9712_v57  ;;  %v4334_v34 = vmul.f32 %v9722_v30, %v9722_v30 }
 0x376   : > { %v4226_v58 = vrot.slane %v4225_v1, 4  ;;  %v4385_v48 = vadd.f32 %v4333_v29, %v4317_v10  ;;  %v7546_v10 = vcombine.low %v794_v38, %v802_v53 }
 0x377   : > { %v4233_v60 = vrot.slane %v4232_v28, 4  ;;  %v4392_v61 = vadd.f32 %v4334_v34, %v4318_v37  ;;  %4153 = vmatpush1.bf16.msra.mxu1 %v7514_v27 }
 0x378   : > { %v4227_v7 = vadd.f32 %v4226_v58, %v4225_v1  ;;  %v4386_v6 = vrot.slane %v4385_v48, 4  ;;  %4154 = vmatprep.subr.bf16.mxu1 %v7531_v33  ;;  %v826_v1 = vld [vmem:[%s8918_s16 + $0xd38] sm:$0xff] }
 0x379   : > { %v4234_v11 = vadd.f32 %v4233_v60, %v4232_v28  ;;  %v4393_v13 = vrot.slane %v4392_v61, 4  ;;  %v834_v33 = vld [vmem:[%s8918_s16 + $0xd78] sm:$0xff] }
 0x37a   : > { %v4228_v21 = vrot.slane %v4227_v7, 2  ;;  %v4387_v2 = vadd.f32 %v4386_v6, %v4385_v48  ;;  %v7562_v48 = vcombine.low %v810_v14, %v818_v18  ;;  %v7579_v38 = vcombine.high %v826_v1, %v834_v33 }
 0x37b   : > { %v4235_v22 = vrot.slane %v4234_v11, 2  ;;  %v4394_v63 = vadd.f32 %v4393_v13, %v4392_v61  ;;  %4155 = vmatpush1.bf16.msra.mxu1 %v7530_v5 }
 0x37c   : > { %v4229_v29 = vadd.f32 %v4228_v21, %v4227_v7  ;;  %v4388_v37 = vrot.slane %v4387_v2, 2  ;;  %4156 = vmatprep.subr.bf16.mxu1 %v7547_v8  ;;  %v850_v7 = vld [vmem:[%s8918_s16 + $0xdf8] sm:$0xff] }
 0x37d   : > { %v4236_v24 = vadd.f32 %v4235_v22, %v4234_v11  ;;  %v4395_v27 = vrot.slane %v4394_v63, 2  ;;  %v842_v22 = vld [vmem:[%s8918_s16 + $0xdb8] sm:$0xff] }
 0x37e   : > { %v4230_v28 = vrot.slane %v4229_v29, 1  ;;  %v4389_v34 = vadd.f32 %v4388_v37, %v4387_v2  ;;  %v7595_v18 = vcombine.high %v842_v22, %v850_v7  ;;  %v858_v37 = vld [vmem:[%s8918_s16 + $0xe38] sm:$0xff] }
 0x37f   : > { %v4237_v58 = vrot.slane %v4236_v24, 1  ;;  %v4396_v60 = vadd.f32 %v4395_v27, %v4394_v63  ;;  %4157 = vmatpush1.bf16.msra.mxu1 %v7546_v10  ;;  %v7578_v63 = vcombine.low %v826_v1, %v834_v33 }
 0x380   : > { %v4231_v6 = vadd.f32 %v4230_v28, %v4229_v29  ;;  %v4390_v61 = vrot.slane %v4389_v34, 1  ;;  %4158 = vmatprep.subr.bf16.mxu1 %v7563_v20  ;;  %v866_v20 = vld [vmem:[%s8918_s16 + $0xe78] sm:$0xff]  ;;  %v7594_v28 = vcombine.low %v842_v22, %v850_v7 }
 0x381   : > { %v4238_v53 = vadd.f32 %v4237_v58, %v4236_v24  ;;  %v4397_v5 = vrot.slane %v4396_v60, 1  ;;  %v7611_v33 = vcombine.high %v858_v37, %v866_v20  ;;  %v874_v58 = vld [vmem:[%s8918_s16 + $0xeb8] sm:$0xff] }
 0x382   : > { %v9738_v8 = vmul.f32 0.0625, %v4231_v6  ;;  %v4391_v11 = vadd.f32 %v4390_v61, %v4389_v34  ;;  %v7610_v61 = vcombine.low %v858_v37, %v866_v20 }
 0x383   : > { %v9740_v13 = vmul.f32 0.0625, %v4238_v53  ;;  %v4398_v2 = vadd.f32 %v4397_v5, %v4396_v60  ;;  %4159 = vmatpush1.bf16.msra.mxu1 %v7562_v48  ;;  %v882_v60 = vld [vmem:[%s8918_s16 + $0xef8] sm:$0xff]  ;;  %v9752_v22 = vpop.f32.mrb[4].mxu0 }
 0x384   : > { %v4461_v21 = vmul.f32 0.0625, %v4391_v11  ;;  %v4477_v14 = vmul.f32 %v9738_v8, %v9738_v8  ;;  %4160 = vmatprep.subr.bf16.mxu1 %v7579_v38  ;;  %v7627_v38 = vcombine.high %v874_v58, %v882_v60  ;;  %v890_v53 = vld [vmem:[%s8918_s16 + $0xf38] sm:$0xff]  ;;  %10312 = vst [vmem:[#allocation18_spill] sm:$0xff] %v9752_v22  ;;  %v9754_v7 = vpop.f32.mrb[5].mxu0  ;;  %v7626_v11 = vcombine.low %v874_v58, %v882_v60 }
 0x385   : > { %v4462_v10 = vmul.f32 0.0625, %v4398_v2  ;;  %v4478_v29 = vmul.f32 %v9740_v13, %v9740_v13  ;;  %v898_v5 = vld [vmem:[%s8918_s16 + $0xf78] sm:$0xff]  ;;  %10313 = vst [vmem:[#allocation19_spill] sm:$0xff] %v9754_v7  ;;  %v9756_v2 = vpop.f32.mrb[6].mxu0 }
 0x386   : > { %v4493_v24 = vsub.f32 %v4461_v21, %v4477_v14  ;;  %10314 = vst [vmem:[#allocation20_spill] sm:$0xff] %v9756_v2  ;;  %v9758_v21 = vpop.f32.mrb[7].mxu0  ;;  %v906_v14 = vld [vmem:[%s8918_s16 + $0xfb8] sm:$0xff]  ;;  %v4267_v37 = vadd.f32 %v9756_v2, %v9752_v22  ;;  %v4339_v20 = vmul.f32 %v9756_v2, %v9756_v2 }
 0x387   : > { %v4494_v27 = vsub.f32 %v4462_v10, %v4478_v29  ;;  %4161 = vmatpush1.bf16.msra.mxu1 %v7578_v63  ;;  %v7643_v63 = vcombine.high %v890_v53, %v898_v5  ;;  %v4323_v10 = vmul.f32 %v9752_v22, %v9752_v22  ;;  %v4324_v29 = vmul.f32 %v9754_v7, %v9754_v7 }
 0x388   : > { %v4509_v1 = vmax.f32 %v4493_v24, 0.0  ;;  %4162 = vmatprep.subr.bf16.mxu1 %v7595_v18  ;;  %v914_v18 = vld [vmem:[%s8918_s16 + $0xff8] sm:$0xff]  ;;  %v4274_v24 = vadd.f32 %v9758_v21, %v9754_v7 }
 0x389   : > { %v4510_v34 = vmax.f32 %v4494_v27, 0.0  ;;  %v4340_v27 = vmul.f32 %v9758_v21, %v9758_v21  ;;  %v7658_v35 = vcombine.low %v906_v14, %v914_v18 }
 0x38a   : > { %v4527_v48 = vadd.f32 1e-05, %v4509_v1  ;;  %v4268_v1 = vrot.slane %v4267_v37, 4  ;;  %v4275_v58 = vrot.slane %v4274_v24, 4 }
 0x38b   : > { %v4528_v6 = vadd.f32 1e-05, %v4510_v34  ;;  %4163 = vmatpush1.bf16.msra.mxu1 %v7594_v28  ;;  %v7642_v28 = vcombine.low %v890_v53, %v898_v5  ;;  %v7659_v34 = vcombine.high %v906_v14, %v914_v18  ;;  %v4434_v60 = vadd.f32 %v4340_v27, %v4324_v29 }
 0x38c   : > { %8467 = vrsqrt.f32 %v4527_v48  ;;  %4164 = vmatprep.subr.bf16.mxu1 %v7611_v33  ;;  %v4427_v33 = vadd.f32 %v4339_v20, %v4323_v10  ;;  %v4269_v48 = vadd.f32 %v4268_v1, %v4267_v37  ;;  %v9784_v1 = vsub.s32 0, %v9444_v46 }
 0x38d   : > { %8469 = vrsqrt.f32 %v4528_v6  ;;  %v4435_v22 = vrot.slane %v4434_v60, 4 }
 0x38e   : > { %v4428_v6 = vrot.slane %v4427_v33, 4  ;;  %v4270_v7 = vrot.slane %v4269_v48, 2 }
 0x38f   : > { %4165 = vmatpush1.bf16.msra.mxu1 %v7610_v61  ;;  %v4436_v53 = vadd.f32 %v4435_v22, %v4434_v60  ;;  %v9801_v60 = vsub.s32 4, %v9444_v46 }
 0x390   : > { %4166 = vmatprep.subr.bf16.mxu1 %v7627_v38  ;;  %v4276_v38 = vadd.f32 %v4275_v58, %v4274_v24  ;;  %v4429_v12 = vadd.f32 %v4428_v6, %v4427_v33  ;;  %v4271_v5 = vadd.f32 %v4270_v7, %v4269_v48  ;;  %v9798_v58 = vsub.s32 3, %v9444_v46 }
 0x391   : > { %v4437_v24 = vrot.slane %v4436_v53, 2 }
 0x392   : > { %v4430_v10 = vrot.slane %v4429_v12, 2  ;;  %v4272_v27 = vrot.slane %v4271_v5, 1 }
 0x393   : > { %4167 = vmatpush1.bf16.msra.mxu1 %v7626_v11  ;;  %v4277_v11 = vrot.slane %v4276_v38, 2 }
 0x394   : > { %4168 = vmatprep.subr.bf16.mxu1 %v7643_v63  ;;  %v10315_v63 = vcombine.low %v9617_v4, %v9619_v50  ;;  %v4431_v14 = vadd.f32 %v4430_v10, %v4429_v12  ;;  %v9787_v4 = vsub.s32 1, %v9444_v46  ;;  %v9791_v12 = vsub.s32 2, %v9444_v46 }
 0x395   : > { %v4278_v20 = vadd.f32 %v4277_v11, %v4276_v38  ;;  %v9806_v38 = vsub.s32 5, %v9444_v46  ;;  %v9814_v10 = vsub.s32 7, %v9444_v46 }
 0x396   : > { %v8468_v61 = vpop.eup %8467  ;;  %v4593_v29 = vrot.slane %v10315_v63, %v9451_v62  ;;  %v4432_v50 = vrot.slane %v4431_v14, 1 }
 0x397   : > { %v8470_v2 = vpop.eup %8469  ;;  %4169 = vmatpush1.bf16.msra.mxu1 %v7642_v28  ;;  %v4279_v18 = vrot.slane %v4278_v20, 1  ;;  %v4438_v28 = vadd.f32 %v4437_v24, %v4436_v53 }
 0x398   : > { %v4572_v39 = vcombine.low %v8468_v61, %v8470_v2  ;;  %4170 = vmatprep.subr.bf16.mxu1 %v7659_v34  ;;  %v10316_v2 = vcombine.low %v9461_v15, %v9464_v16  ;;  %v8493_v15 = vld [vmem:[%s10274_s0 + $0x8] ss:$16 sps:$4 sm:$0xff]   ;;  %v4519_v34 = vld [vmem:[%s8926_s11] sm:$0xff]  ;;  %v4433_v6 = vadd.f32 %v4432_v50, %v4431_v14 }
 0x399   : > { %v4280_v16 = vadd.f32 %v4279_v18, %v4278_v20  ;;  %v4439_v33 = vrot.slane %v4438_v28, 1 }
 0x39a   : > { %v4600_v37 = vrot.slane %v4572_v39, %v9451_v62  ;;  %v4609_v22 = vrot.slane %v10316_v2, %v9451_v62  ;;  %v4273_v39 = vadd.f32 %v4272_v27, %v4271_v5  ;;  %v9811_v5 = vsub.s32 6, %v9444_v46 }
 0x39b   : > { %4171 = vmatpush1.bf16.msra.mxu1 %v7658_v35  ;;  %v9808_v11 = vmul.f32 0.0625, %v4280_v16  ;;  %v4440_v53 = vadd.f32 %v4439_v33, %v4438_v28  ;;  %v4467_v63 = vmul.f32 0.0625, %v4433_v6 }
 0x39c   : > { %v4602_v7 = vcombine.low %v4593_v29, %v4600_v37  ;;  %v9803_v48 = vmul.f32 0.0625, %v4273_v39 }
 0x39d   : > { %v4468_v24 = vmul.f32 0.0625, %v4440_v53  ;;  %v4484_v27 = vmul.f32 %v9808_v11, %v9808_v11 }
 0x39e   : > { %v4616_v35 = vrot.slane %v4602_v7, %v9451_v62  ;;  %4173 = vmatmul.mubr.bf16.vlgmr.msra.gmra.mrb[20].mxu1 %v8493_v15  ;;  %v4483_v29 = vmul.f32 %v9803_v48, %v9803_v48 }
 0x3a0   : > { %v4617_v61 = vcombine.low %v4609_v22, %v4616_v35  ;;  %v4499_v20 = vsub.f32 %v4467_v63, %v4483_v29 }
 0x3a2   : > { %v4669_v37 = vmul.f32 %v4617_v61, %v4519_v34 }
 0x3a4   : > { %v4678_v14 = vrot.slane %v4669_v37, %v9784_v1  ;;  %v4682_v2 = vrot.slane %v4669_v37, %v9787_v4  ;;  %v4686_v22 = vrot.slane %v4669_v37, %v9791_v12  ;;  %v4690_v7 = vrot.slane %v4669_v37, %v9798_v58 }
 0x3a5   : > { %v4694_v46 = vrot.slane %v4669_v37, %v9801_v60  ;;  %v4698_v18 = vrot.slane %v4669_v37, %v9806_v38  ;;  %v4702_v28 = vrot.slane %v4669_v37, %v9811_v5  ;;  %v4706_v39 = vrot.slane %v4669_v37, %v9814_v10 }
 0x3a6   : > { %v4755_v50 = vmul.f32 %v4678_v14, %v9235_v52  ;;  %v4756_v35 = vmul.f32 %v4682_v2, %v9237_v56  ;;  %v4757_v15 = vmul.f32 %v4686_v22, %v9420_v40  ;;  %v4758_v16 = vmul.f32 %v4690_v7, %v9422_v44 }
 0x3a7   : > { %v4759_v33 = vmul.f32 %v4694_v46, %v9569_v0  ;;  %v4760_v34 = vmul.f32 %v4698_v18, %v9571_v3  ;;  %v4761_v6 = vmul.f32 %v4702_v28, %v9738_v8  ;;  %v4762_v61 = vmul.f32 %v4706_v39, %v9740_v13 }
 0x3a8   : > { %v4787_v53 = vcombine.low %v4755_v50, %v4756_v35  ;;  %v4788_v63 = vcombine.low %v4757_v15, %v4758_v16  ;;  %v4912_v29 = vmul.f32 %v4706_v39, %v9722_v30  ;;  %v4890_v52 = vmul.f32 %v4682_v2, %v9199_v45 }
 0x3a9   : > { %v4789_v37 = vcombine.low %v4759_v33, %v4760_v34  ;;  %v4790_v56 = vcombine.low %v4761_v6, %v4762_v61  ;;  %v4906_v40 = vmul.f32 %v4682_v2, %v9209_v54  ;;  %v4889_v44 = vmul.f32 %v4678_v14, %v9195_v42 }
 0x3aa   : > { %v4797_v0 = vrot.slane %v4787_v53, %v9451_v62  ;;  %v4804_v3 = vrot.slane %v4788_v63, %v9451_v62  ;;  %v4905_v8 = vmul.f32 %v4678_v14, %v9201_v47  ;;  %v4892_v13 = vmul.f32 %v4690_v7, %v9374_v26 }
 0x3ab   : > { %v4811_v50 = vrot.slane %v4789_v37, %v9451_v62  ;;  %v4818_v30 = vrot.slane %v4790_v56, %v9451_v62  ;;  %v4908_v45 = vmul.f32 %v4690_v7, %v9384_v31  ;;  %v4891_v35 = vmul.f32 %v4686_v22, %v9370_v23 }
 0x3ac   : > { %v4819_v15 = vcombine.low %v4797_v0, %v4804_v3  ;;  %v4907_v42 = vmul.f32 %v4686_v22, %v9376_v17  ;;  %v4894_v54 = vmul.f32 %v4698_v18, %v9539_v41  ;;  %v4910_v2 = vmul.f32 %v4698_v18, %v9549_v55  ;;  %v4671_v55 = vld [vmem:[%s8932_s13] sm:$0xff] }
 0x3ad   : > { %v4820_v16 = vcombine.low %v4811_v50, %v4818_v30  ;;  %v4515_v47 = vmax.f32 %v4499_v20, 0.0  ;;  %v4500_v14 = vsub.f32 %v4468_v24, %v4484_v27  ;;  %v4893_v26 = vmul.f32 %v4694_v46, %v9535_v36 }
 0x3ae   : > { %v4827_v33 = vrot.slane %v4819_v15, %v9451_v62  ;;  %v4909_v34 = vmul.f32 %v4694_v46, %v9541_v43  ;;  %v4896_v31 = vmul.f32 %v4706_v39, %v9712_v57  ;;  %v4895_v23 = vmul.f32 %v4702_v28, %v9708_v19 }
 0x3af   : > { %v4834_v7 = vrot.slane %v4820_v16, %v9451_v62  ;;  %v4533_v17 = vadd.f32 1e-05, %v4515_v47  ;;  %v4516_v22 = vmax.f32 %v4500_v14, 0.0  ;;  %v4911_v41 = vmul.f32 %v4702_v28, %v9714_v25 }
 0x3b1   : > { %v4835_v18 = vcombine.low %v4827_v33, %v4834_v7  ;;  %8471 = vrsqrt.f32 %v4533_v17  ;;  %v4534_v20 = vadd.f32 1e-05, %v4516_v22 }
 0x3b3   : > { %v4887_v24 = vsub.f32 %v4671_v55, %v4835_v18  ;;  %8473 = vrsqrt.f32 %v4534_v20 }
 0x3b5   : > { %v4954_v36 = vrot.slane %v4887_v24, %v9814_v10  ;;  %v4930_v43 = vrot.slane %v4887_v24, %v9787_v4  ;;  %v4926_v57 = vrot.slane %v4887_v24, %v9784_v1  ;;  %v4938_v19 = vrot.slane %v4887_v24, %v9798_v58 }
 0x3b6   : > { %v4934_v27 = vrot.slane %v4887_v24, %v9791_v12  ;;  %v4946_v46 = vrot.slane %v4887_v24, %v9806_v38  ;;  %v4942_v25 = vrot.slane %v4887_v24, %v9801_v60  ;;  %v4950_v28 = vrot.slane %v4887_v24, %v9811_v5 }
 0x3b7   : > { %v5026_v39 = vadd.f32 %v4954_v36, %v4912_v29  ;;  %v5004_v6 = vadd.f32 %v4930_v43, %v4890_v52  ;;  %v5020_v61 = vadd.f32 %v4930_v43, %v4906_v40  ;;  %v5003_v53 = vadd.f32 %v4926_v57, %v4889_v44  ;;  %v8115_v52 = vld [vmem:[%s8934_s10 + $0x100] ss:$8 sps:$4 sm:$0xff]  }
 0x3b8   : > { %v5019_v63 = vadd.f32 %v4926_v57, %v4905_v8  ;;  %v5006_v37 = vadd.f32 %v4938_v19, %v4892_v13  ;;  %v5022_v56 = vadd.f32 %v4938_v19, %v4908_v45  ;;  %v5005_v0 = vadd.f32 %v4934_v27, %v4891_v35  ;;  %v8120_v45 = vld [vmem:[%s8934_s10 + $0x114] ss:$8 sps:$4 sm:$0xff]  }
 0x3b9   : > { %v5036_v3 = vmax.f32 %v5004_v6, 0.0  ;;  %v5052_v50 = vmax.f32 %v5020_v61, 0.0  ;;  %v5035_v30 = vmax.f32 %v5003_v53, 0.0  ;;  %v5021_v15 = vadd.f32 %v4934_v27, %v4907_v42  ;;  %v8121_v61 = vld [vmem:[%s8934_s10 + $0x120] ss:$8 sps:$4 sm:$0xff]  }
 0x3ba   : > { %v5051_v16 = vmax.f32 %v5019_v63, 0.0  ;;  %v5038_v47 = vmax.f32 %v5006_v37, 0.0  ;;  %v5054_v14 = vmax.f32 %v5022_v56, 0.0  ;;  %v5037_v33 = vmax.f32 %v5005_v0, 0.0  ;;  %v8127_v63 = vld [vmem:[%s8934_s10 + $0x140] ss:$8 sps:$4 sm:$0xff]  }
 0x3bb   : > { %v9867_v7 = vpop.eup %8471  ;;  %v5072_v29 = vpack.c.bf16 %v5052_v50, %v5036_v3  ;;  %v5053_v40 = vmax.f32 %v5021_v15, 0.0  ;;  %v5008_v17 = vadd.f32 %v4946_v46, %v4894_v54  ;;  %v5024_v44 = vadd.f32 %v4946_v46, %v4910_v2  ;;  %v8132_v37 = vld [vmem:[%s8934_s10 + $0x154] ss:$8 sps:$4 sm:$0xff]   ;;  %v8130_v56 = vld [vmem:[%s8934_s10 + $0x150] ss:$8 sps:$4 sm:$0xff]  }
 0x3bc   : > { %v5071_v8 = vpack.c.bf16 %v5051_v16, %v5035_v30  ;;  %v5074_v13 = vpack.c.bf16 %v5054_v14, %v5038_v47  ;;  %v5007_v35 = vadd.f32 %v4942_v25, %v4893_v26  ;;  %v5023_v22 = vadd.f32 %v4942_v25, %v4909_v34  ;;  %v8118_v26 = vld [vmem:[%s8934_s10 + $0x110] ss:$8 sps:$4 sm:$0xff]   ;;  %v8135_v0 = vld [vmem:[%s8934_s10 + $0x164] ss:$8 sps:$4 sm:$0xff]   ;;  %v8133_v3 = vld [vmem:[%s8934_s10 + $0x160] ss:$8 sps:$4 sm:$0xff]  }
 0x3bd   : > { %v9871_v55 = vpop.eup %8473  ;;  %6655 = vmatprep.mubr.bf16.mxu0 %v5072_v29  ;;  %v9873_v42 = vpack.c.bf16 %v5053_v40, %v5037_v33  ;;  %v5040_v18 = vmax.f32 %v5008_v17, 0.0  ;;  %v5056_v20 = vmax.f32 %v5024_v44, 0.0  ;;  %v5010_v24 = vadd.f32 %v4954_v36, %v4896_v31  ;;  %v8123_v31 = vld [vmem:[%s8934_s10 + $0x124] ss:$8 sps:$4 sm:$0xff]   ;;  %v8138_v50 = vld [vmem:[%s8934_s10 + $0x174] ss:$8 sps:$4 sm:$0xff]  }
 0x3be   : > { %6656 = vmatmul.mubr.bf16.vlgmr.msra.gmra.mrb[8].mxu0 %v5071_v8  ;;  %v4620_v54 = vcombine.low %v9867_v7, %v9871_v55  ;;  %v5039_v2 = vmax.f32 %v5007_v35, 0.0  ;;  %v5055_v43 = vmax.f32 %v5023_v22, 0.0  ;;  %v5009_v57 = vadd.f32 %v4950_v28, %v4895_v23  ;;  %v8136_v30 = vld [vmem:[%s8934_s10 + $0x170] ss:$8 sps:$4 sm:$0xff]   ;;  %v8141_v15 = vld [vmem:[%s8934_s10 + $0x184] ss:$8 sps:$4 sm:$0xff]  }
 0x3bf   : > { %6667 = vmatpush1.bf16.msra.mxu0 %v8115_v52  ;;  %6698 = vmatprep.mubr.bf16.mxu0 %v5074_v13  ;;  %v9878_v34 = vpack.c.bf16 %v5056_v20, %v5040_v18  ;;  %v5042_v19 = vmax.f32 %v5010_v24, 0.0  ;;  %v5058_v27 = vmax.f32 %v5026_v39, 0.0  ;;  %v5025_v46 = vadd.f32 %v4950_v28, %v4911_v41  ;;  %v8126_v39 = vld [vmem:[%s8934_s10 + $0x134] ss:$8 sps:$4 sm:$0xff]   ;;  %v8124_v41 = vld [vmem:[%s8934_s10 + $0x130] ss:$8 sps:$4 sm:$0xff]  }
 0x3c0   : > { %6668 = vmatprep.subr.bf16.mxu0 %v8120_v45  ;;  %v9881_v36 = vpack.c.bf16 %v5055_v43, %v5039_v2  ;;  %v5041_v25 = vmax.f32 %v5009_v57, 0.0  ;;  %v8129_v28 = vld [vmem:[%s8934_s10 + $0x144] ss:$8 sps:$4 sm:$0xff]   ;;  %v8139_v16 = vld [vmem:[%s8934_s10 + $0x180] ss:$8 sps:$4 sm:$0xff]  }
 0x3c1   : > { %v9883_v6 = vpack.c.bf16 %v5058_v27, %v5042_v19  ;;  %v5057_v23 = vmax.f32 %v5025_v46, 0.0  ;;  %v8144_v47 = vld [vmem:[%s8934_s10 + $0x194] ss:$8 sps:$4 sm:$0xff]   ;;  %v8142_v14 = vld [vmem:[%s8934_s10 + $0x190] ss:$8 sps:$4 sm:$0xff]  }
 0x3c2   : > { %v8147_v33 = vld [vmem:[%s8934_s10 + $0x1a4] ss:$8 sps:$4 sm:$0xff]   ;;  %v8145_v29 = vld [vmem:[%s8934_s10 + $0x1a0] ss:$8 sps:$4 sm:$0xff]   ;;  %v8150_v52 = vld [vmem:[%s8934_s10 + $0x1b4] ss:$8 sps:$4 sm:$0xff]  }
 0x3c3   : > { %6669 = vmatpush1.bf16.msra.mxu0 %v8118_v26  ;;  %v9886_v53 = vpack.c.bf16 %v5057_v23, %v5041_v25  ;;  %v8148_v40 = vld [vmem:[%s8934_s10 + $0x1b0] ss:$8 sps:$4 sm:$0xff]   ;;  %v8153_v17 = vld [vmem:[%s8934_s10 + $0x1c4] ss:$8 sps:$4 sm:$0xff]   ;;  %v8151_v44 = vld [vmem:[%s8934_s10 + $0x1c0] ss:$8 sps:$4 sm:$0xff]  }
 0x3c4   : > { %6670 = vmatprep.subr.bf16.mxu0 %v8123_v31  ;;  %v8156_v8 = vld [vmem:[%s8934_s10 + $0x1d4] ss:$8 sps:$4 sm:$0xff]   ;;  %v8154_v13 = vld [vmem:[%s8934_s10 + $0x1d0] ss:$8 sps:$4 sm:$0xff]   ;;  %v8159_v45 = vld [vmem:[%s8934_s10 + $0x1e4] ss:$8 sps:$4 sm:$0xff]  }
 0x3c5   : > { %v8157_v20 = vld [vmem:[%s8934_s10 + $0x1e0] ss:$8 sps:$4 sm:$0xff]   ;;  %v8162_v26 = vld [vmem:[%s8934_s10 + $0x1f4] ss:$8 sps:$4 sm:$0xff]   ;;  %v8286_v7 = vld [vmem:[%s8934_s10 + $0x490] ss:$8 sps:$4 sm:$0xff]  }
 0x3c7   : > { %6671 = vmatpush1.bf16.msra.mxu0 %v8121_v61 }
 0x3c8   : > { %6672 = vmatprep.subr.bf16.mxu0 %v8126_v39  ;;  %v8160_v39 = vld [vmem:[%s8934_s10 + $0x1f0] ss:$8 sps:$4 sm:$0xff]  }
 0x3cb   : > { %6673 = vmatpush1.bf16.msra.mxu0 %v8124_v41 }
 0x3cc   : > { %6674 = vmatprep.subr.bf16.mxu0 %v8129_v28 }
 0x3cf   : > { %6675 = vmatpush1.bf16.msra.mxu0 %v8127_v63  ;;  %v8165_v63 = vld [vmem:[%s8934_s10 + $0x204] ss:$8 sps:$4 sm:$0xff]  }
 0x3d0   : > { %6676 = vmatprep.subr.bf16.mxu0 %v8132_v37 }
 0x3d3   : > { %6677 = vmatpush1.bf16.msra.mxu0 %v8130_v56 }
 0x3d4   : > { %6678 = vmatprep.subr.bf16.mxu0 %v8135_v0 }
 0x3d7   : > { %6679 = vmatpush1.bf16.msra.mxu0 %v8133_v3 }
 0x3d8   : > { %6680 = vmatprep.subr.bf16.mxu0 %v8138_v50 }
 0x3db   : > { %6681 = vmatpush1.bf16.msra.mxu0 %v8136_v30 }
 0x3dc   : > { %6682 = vmatprep.subr.bf16.mxu0 %v8141_v15  ;;  %v8163_v15 = vld [vmem:[%s8934_s10 + $0x200] ss:$8 sps:$4 sm:$0xff]  }
 0x3df   : > { %6683 = vmatpush1.bf16.msra.mxu0 %v8139_v16 }
 0x3e0   : > { %6684 = vmatprep.subr.bf16.mxu0 %v8144_v47 }
 0x3e3   : > { %6685 = vmatpush1.bf16.msra.mxu0 %v8142_v14  ;;  %v8168_v14 = vld [vmem:[%s8934_s10 + $0x214] ss:$8 sps:$4 sm:$0xff]  }
 0x3e4   : > { %6686 = vmatprep.subr.bf16.mxu0 %v8147_v33 }
 0x3e7   : > { %6687 = vmatpush1.bf16.msra.mxu0 %v8145_v29 }
 0x3e8   : > { %6688 = vmatprep.subr.bf16.mxu0 %v8150_v52 }
 0x3eb   : > { %6689 = vmatpush1.bf16.msra.mxu0 %v8148_v40 }
 0x3ec   : > { %6690 = vmatprep.subr.bf16.mxu0 %v8153_v17 }
 0x3ef   : > { %6691 = vmatpush1.bf16.msra.mxu0 %v8151_v44 }
 0x3f0   : > { %6692 = vmatprep.subr.bf16.mxu0 %v8156_v8  ;;  %v8166_v8 = vld [vmem:[%s8934_s10 + $0x210] ss:$8 sps:$4 sm:$0xff]  }
 0x3f1   : > { %v9911_v35 = vpop.f32.mrb[16].mxu1 }
 0x3f2   : > { %v9913_v22 = vpop.f32.mrb[17].mxu1  ;;  %v4321_v24 = vmul.f32 %v9911_v35, %v9911_v35 }
 0x3f3   : > { %6693 = vmatpush1.bf16.msra.mxu0 %v8154_v13  ;;  %v9915_v18 = vpop.f32.mrb[18].mxu1  ;;  %v4322_v19 = vmul.f32 %v9913_v22, %v9913_v22 }
 0x3f4   : > { %v4253_v2 = vadd.f32 %v9915_v18, %v9911_v35  ;;  %v4337_v43 = vmul.f32 %v9915_v18, %v9915_v18  ;;  %v9924_v57 = vpop.f32.mrb[19].mxu1  ;;  %6694 = vmatprep.subr.bf16.mxu0 %v8159_v45 }
 0x3f5   : > { %v4260_v27 = vadd.f32 %v9924_v57, %v9913_v22  ;;  %v4338_v46 = vmul.f32 %v9924_v57, %v9924_v57 }
 0x3f6   : > { %v4254_v31 = vrot.slane %v4253_v2, 4  ;;  %v4413_v25 = vadd.f32 %v4337_v43, %v4321_v24 }
 0x3f7   : > { %v4261_v23 = vrot.slane %v4260_v27, 4  ;;  %v4420_v61 = vadd.f32 %v4338_v46, %v4322_v19  ;;  %6695 = vmatpush1.bf16.msra.mxu0 %v8157_v20  ;;  %v8171_v20 = vld [vmem:[%s8934_s10 + $0x224] ss:$8 sps:$4 sm:$0xff]  }
 0x3f8   : > { %v4255_v41 = vadd.f32 %v4254_v31, %v4253_v2  ;;  %v4414_v28 = vrot.slane %v4413_v25, 4  ;;  %6696 = vmatprep.subr.bf16.mxu0 %v8162_v26  ;;  %v8174_v31 = vld [vmem:[%s8934_s10 + $0x234] ss:$8 sps:$4 sm:$0xff]  }
 0x3f9   : > { %v4262_v37 = vadd.f32 %v4261_v23, %v4260_v27  ;;  %v4421_v56 = vrot.slane %v4420_v61, 4  ;;  %v8169_v27 = vld [vmem:[%s8934_s10 + $0x220] ss:$8 sps:$4 sm:$0xff]  }
 0x3fa   : > { %v4256_v0 = vrot.slane %v4255_v41, 2  ;;  %v4415_v3 = vadd.f32 %v4414_v28, %v4413_v25 }
 0x3fb   : > { %v4263_v50 = vrot.slane %v4262_v37, 2  ;;  %v4422_v30 = vadd.f32 %v4421_v56, %v4420_v61  ;;  %6697 = vmatpush1.bf16.msra.mxu0 %v8160_v39 }
 0x3fc   : > { %v4257_v16 = vadd.f32 %v4256_v0, %v4255_v41  ;;  %v4416_v47 = vrot.slane %v4415_v3, 2  ;;  %6709 = vmatprep.subr.bf16.mxu0 %v8165_v63  ;;  %v8172_v41 = vld [vmem:[%s8934_s10 + $0x230] ss:$8 sps:$4 sm:$0xff]   ;;  %v8177_v63 = vld [vmem:[%s8934_s10 + $0x244] ss:$8 sps:$4 sm:$0xff]  }
 0x3fd   : > { %v4264_v33 = vadd.f32 %v4263_v50, %v4262_v37  ;;  %v4423_v29 = vrot.slane %v4422_v30, 2  ;;  %v8180_v50 = vld [vmem:[%s8934_s10 + $0x254] ss:$8 sps:$4 sm:$0xff]  }
 0x3fe   : > { %v4258_v52 = vrot.slane %v4257_v16, 1  ;;  %v4417_v40 = vadd.f32 %v4416_v47, %v4415_v3  ;;  %6699 = vmatmul.mubr.bf16.vlgmr.msra.gmra.mrb[8].mxu0 %v9873_v42  ;;  %v8175_v3 = vld [vmem:[%s8934_s10 + $0x240] ss:$8 sps:$4 sm:$0xff]   ;;  %v8186_v47 = vld [vmem:[%s8934_s10 + $0x274] ss:$8 sps:$4 sm:$0xff]  }
 0x3ff   : > { %v4265_v17 = vrot.slane %v4264_v33, 1  ;;  %v4424_v44 = vadd.f32 %v4423_v29, %v4422_v30  ;;  %6710 = vmatpush1.bf16.msra.mxu0 %v8163_v15  ;;  %6741 = vmatprep.mubr.bf16.mxu0 %v9878_v34  ;;  %v8178_v30 = vld [vmem:[%s8934_s10 + $0x250] ss:$8 sps:$4 sm:$0xff]   ;;  %v8183_v15 = vld [vmem:[%s8934_s10 + $0x264] ss:$8 sps:$4 sm:$0xff]  }
 0x400   : > { %v4259_v13 = vadd.f32 %v4258_v52, %v4257_v16  ;;  %v4418_v45 = vrot.slane %v4417_v40, 1  ;;  %6711 = vmatprep.subr.bf16.mxu0 %v8168_v14  ;;  %v8181_v16 = vld [vmem:[%s8934_s10 + $0x260] ss:$8 sps:$4 sm:$0xff]   ;;  %v8184_v29 = vld [vmem:[%s8934_s10 + $0x270] ss:$8 sps:$4 sm:$0xff]  }
 0x401   : > { %v4266_v24 = vadd.f32 %v4265_v17, %v4264_v33  ;;  %v4425_v2 = vrot.slane %v4424_v44, 1  ;;  %v10317_v17 = vcombine.low %v9661_v51, %v9663_v59  ;;  %v8195_v51 = vld [vmem:[%s8934_s10 + $0x2a4] ss:$8 sps:$4 sm:$0xff]   ;;  %v8193_v59 = vld [vmem:[%s8934_s10 + $0x2a0] ss:$8 sps:$4 sm:$0xff]  }
 0x402   : > { %v9941_v43 = vmul.f32 0.0625, %v4259_v13  ;;  %v4419_v26 = vadd.f32 %v4418_v45, %v4417_v40  ;;  %v8189_v40 = vld [vmem:[%s8934_s10 + $0x284] ss:$8 sps:$4 sm:$0xff]   ;;  %v8187_v13 = vld [vmem:[%s8934_s10 + $0x280] ss:$8 sps:$4 sm:$0xff]  }
 0x403   : > { %v9943_v19 = vmul.f32 0.0625, %v4266_v24  ;;  %v4426_v42 = vadd.f32 %v4425_v2, %v4424_v44  ;;  %6712 = vmatpush1.bf16.msra.mxu0 %v8166_v8  ;;  %v9965_v44 = vrot.slane %v10317_v17, %v9451_v62  ;;  %v8190_v24 = vld [vmem:[%s8934_s10 + $0x290] ss:$8 sps:$4 sm:$0xff]   ;;  %v8198_v2 = vld [vmem:[%s8934_s10 + $0x2b4] ss:$8 sps:$4 sm:$0xff]  }
 0x404   : > { %v4465_v46 = vmul.f32 0.0625, %v4419_v26  ;;  %v4481_v34 = vmul.f32 %v9941_v43, %v9941_v43  ;;  %6713 = vmatprep.subr.bf16.mxu0 %v8171_v20  ;;  %v8192_v20 = vld [vmem:[%s8934_s10 + $0x294] ss:$8 sps:$4 sm:$0xff]   ;;  %v8196_v26 = vld [vmem:[%s8934_s10 + $0x2b0] ss:$8 sps:$4 sm:$0xff]  }
 0x405   : > { %v4466_v25 = vmul.f32 0.0625, %v4426_v42  ;;  %v4482_v23 = vmul.f32 %v9943_v19, %v9943_v19  ;;  %v8201_v42 = vld [vmem:[%s8934_s10 + $0x2c4] ss:$8 sps:$4 sm:$0xff]  }
 0x406   : > { %v4497_v61 = vsub.f32 %v4465_v46, %v4481_v34  ;;  %v8204_v46 = vld [vmem:[%s8934_s10 + $0x2d4] ss:$8 sps:$4 sm:$0xff]   ;;  %v8202_v34 = vld [vmem:[%s8934_s10 + $0x2d0] ss:$8 sps:$4 sm:$0xff]   ;;  %v8243_v17 = vld [vmem:[%s8934_s10 + $0x3a4] ss:$8 sps:$4 sm:$0xff]  }
 0x407   : > { %v4498_v39 = vsub.f32 %v4466_v25, %v4482_v23  ;;  %6714 = vmatpush1.bf16.msra.mxu0 %v8169_v27  ;;  %v8199_v27 = vld [vmem:[%s8934_s10 + $0x2c0] ss:$8 sps:$4 sm:$0xff]   ;;  %v8210_v23 = vld [vmem:[%s8934_s10 + $0x2f4] ss:$8 sps:$4 sm:$0xff]  }
 0x408   : > { %v4513_v28 = vmax.f32 %v4497_v61, 0.0  ;;  %6715 = vmatprep.subr.bf16.mxu0 %v8174_v31  ;;  %v8207_v31 = vld [vmem:[%s8934_s10 + $0x2e4] ss:$8 sps:$4 sm:$0xff]   ;;  %v8205_v25 = vld [vmem:[%s8934_s10 + $0x2e0] ss:$8 sps:$4 sm:$0xff]  }
 0x409   : > { %v4514_v37 = vmax.f32 %v4498_v39, 0.0  ;;  %v8208_v61 = vld [vmem:[%s8934_s10 + $0x2f0] ss:$8 sps:$4 sm:$0xff]   ;;  %v8213_v39 = vld [vmem:[%s8934_s10 + $0x304] ss:$8 sps:$4 sm:$0xff]  }
 0x40a   : > { %v4531_v56 = vadd.f32 1e-05, %v4513_v28  ;;  %v8216_v28 = vld [vmem:[%s8934_s10 + $0x314] ss:$8 sps:$4 sm:$0xff]  }
 0x40b   : > { %v4532_v0 = vadd.f32 1e-05, %v4514_v37  ;;  %6716 = vmatpush1.bf16.msra.mxu0 %v8172_v41  ;;  %v8211_v41 = vld [vmem:[%s8934_s10 + $0x300] ss:$8 sps:$4 sm:$0xff]   ;;  %v8219_v37 = vld [vmem:[%s8934_s10 + $0x324] ss:$8 sps:$4 sm:$0xff]  }
 0x40c   : > { %8475 = vrsqrt.f32 %v4531_v56  ;;  %6717 = vmatprep.subr.bf16.mxu0 %v8177_v63  ;;  %v8214_v63 = vld [vmem:[%s8934_s10 + $0x310] ss:$8 sps:$4 sm:$0xff]   ;;  %v8217_v56 = vld [vmem:[%s8934_s10 + $0x320] ss:$8 sps:$4 sm:$0xff]  }
 0x40d   : > { %8477 = vrsqrt.f32 %v4532_v0  ;;  %v8222_v0 = vld [vmem:[%s8934_s10 + $0x334] ss:$8 sps:$4 sm:$0xff]  }
 0x40f   : > { %6718 = vmatpush1.bf16.msra.mxu0 %v8175_v3  ;;  %v8220_v3 = vld [vmem:[%s8934_s10 + $0x330] ss:$8 sps:$4 sm:$0xff]  }
 0x410   : > { %6719 = vmatprep.subr.bf16.mxu0 %v8180_v50  ;;  %v8223_v50 = vld [vmem:[%s8934_s10 + $0x340] ss:$8 sps:$4 sm:$0xff]  }
 0x413   : > { %6720 = vmatpush1.bf16.msra.mxu0 %v8178_v30  ;;  %v8226_v30 = vld [vmem:[%s8934_s10 + $0x350] ss:$8 sps:$4 sm:$0xff]  }
 0x414   : > { %6721 = vmatprep.subr.bf16.mxu0 %v8183_v15  ;;  %v8231_v15 = vld [vmem:[%s8934_s10 + $0x364] ss:$8 sps:$4 sm:$0xff]  }
 0x416   : > { %v8476_v14 = vpop.eup %8475 }
 0x417   : > { %v8478_v33 = vpop.eup %8477  ;;  %6722 = vmatpush1.bf16.msra.mxu0 %v8181_v16  ;;  %v8229_v16 = vld [vmem:[%s8934_s10 + $0x360] ss:$8 sps:$4 sm:$0xff]  }
 0x418   : > { %v4619_v52 = vcombine.low %v8476_v14, %v8478_v33  ;;  %6723 = vmatprep.subr.bf16.mxu0 %v8186_v47  ;;  %v8234_v47 = vld [vmem:[%s8934_s10 + $0x374] ss:$8 sps:$4 sm:$0xff]   ;;  %v8232_v14 = vld [vmem:[%s8934_s10 + $0x370] ss:$8 sps:$4 sm:$0xff]   ;;  %v8237_v33 = vld [vmem:[%s8934_s10 + $0x384] ss:$8 sps:$4 sm:$0xff]  }
 0x41a   : > { %v9968_v8 = vrot.slane %v4619_v52, %v9451_v62  ;;  %v8240_v52 = vld [vmem:[%s8934_s10 + $0x394] ss:$8 sps:$4 sm:$0xff]  }
 0x41b   : > { %6724 = vmatpush1.bf16.msra.mxu0 %v8184_v29  ;;  %v8235_v29 = vld [vmem:[%s8934_s10 + $0x380] ss:$8 sps:$4 sm:$0xff]  }
 0x41c   : > { %v4650_v45 = vcombine.low %v9965_v44, %v9968_v8  ;;  %6725 = vmatprep.subr.bf16.mxu0 %v8189_v40  ;;  %v8238_v40 = vld [vmem:[%s8934_s10 + $0x390] ss:$8 sps:$4 sm:$0xff]   ;;  %v8294_v8 = vld [vmem:[%s8934_s10 + $0x4b4] ss:$8 sps:$4 sm:$0xff]  }
 0x41f   : > { %6726 = vmatpush1.bf16.msra.mxu0 %v8187_v13  ;;  %v8241_v13 = vld [vmem:[%s8934_s10 + $0x3a0] ss:$8 sps:$4 sm:$0xff]  }
 0x420   : > { %6727 = vmatprep.subr.bf16.mxu0 %v8192_v20  ;;  %v8246_v20 = vld [vmem:[%s8934_s10 + $0x3b4] ss:$8 sps:$4 sm:$0xff]  }
 0x423   : > { %6728 = vmatpush1.bf16.msra.mxu0 %v8190_v24  ;;  %v8244_v24 = vld [vmem:[%s8934_s10 + $0x3b0] ss:$8 sps:$4 sm:$0xff]  }
 0x424   : > { %6729 = vmatprep.subr.bf16.mxu0 %v8195_v51  ;;  %v8249_v51 = vld [vmem:[%s8934_s10 + $0x3c4] ss:$8 sps:$4 sm:$0xff]  }
 0x427   : > { %6730 = vmatpush1.bf16.msra.mxu0 %v8193_v59  ;;  %v8247_v59 = vld [vmem:[%s8934_s10 + $0x3c0] ss:$8 sps:$4 sm:$0xff]  }
 0x428   : > { %6731 = vmatprep.subr.bf16.mxu0 %v8198_v2  ;;  %v8252_v2 = vld [vmem:[%s8934_s10 + $0x3d4] ss:$8 sps:$4 sm:$0xff]  }
 0x42b   : > { %6732 = vmatpush1.bf16.msra.mxu0 %v8196_v26  ;;  %v8250_v26 = vld [vmem:[%s8934_s10 + $0x3d0] ss:$8 sps:$4 sm:$0xff]  }
 0x42c   : > { %6733 = vmatprep.subr.bf16.mxu0 %v8201_v42  ;;  %v8255_v42 = vld [vmem:[%s8934_s10 + $0x3e4] ss:$8 sps:$4 sm:$0xff]  }
 0x42f   : > { %6734 = vmatpush1.bf16.msra.mxu0 %v8199_v27 }
 0x430   : > { %6735 = vmatprep.subr.bf16.mxu0 %v8204_v46 }
 0x433   : > { %6736 = vmatpush1.bf16.msra.mxu0 %v8202_v34 }
 0x434   : > { %6737 = vmatprep.subr.bf16.mxu0 %v8207_v31  ;;  %v8253_v31 = vld [vmem:[%s8934_s10 + $0x3e0] ss:$8 sps:$4 sm:$0xff]  }
 0x437   : > { %6738 = vmatpush1.bf16.msra.mxu0 %v8205_v25 }
 0x438   : > { %6739 = vmatprep.subr.bf16.mxu0 %v8210_v23 }
 0x43b   : > { %6740 = vmatpush1.bf16.msra.mxu0 %v8208_v61 }
 0x43c   : > { %6752 = vmatprep.subr.bf16.mxu0 %v8213_v39 }
 0x43e   : > { %6742 = vmatmul.mubr.bf16.vlgmr.msra.gmra.mrb[8].mxu0 %v9881_v36  ;;  %v8225_v36 = vld [vmem:[%s8934_s10 + $0x344] ss:$8 sps:$4 sm:$0xff]  }
 0x43f   : > { %6753 = vmatpush1.bf16.msra.mxu0 %v8211_v41  ;;  %6784 = vmatprep.mubr.bf16.mxu0 %v9883_v6  ;;  %v8228_v6 = vld [vmem:[%s8934_s10 + $0x354] ss:$8 sps:$4 sm:$0xff]  }
 0x440   : > { %6754 = vmatprep.subr.bf16.mxu0 %v8216_v28  ;;  %v8258_v41 = vld [vmem:[%s8934_s10 + $0x3f4] ss:$8 sps:$4 sm:$0xff]  }
 0x443   : > { %6755 = vmatpush1.bf16.msra.mxu0 %v8214_v63 }
 0x444   : > { %6756 = vmatprep.subr.bf16.mxu0 %v8219_v37 }
 0x447   : > { %6757 = vmatpush1.bf16.msra.mxu0 %v8217_v56 }
 0x448   : > { %6758 = vmatprep.subr.bf16.mxu0 %v8222_v0 }
 0x44b   : > { %6759 = vmatpush1.bf16.msra.mxu0 %v8220_v3 }
 0x44c   : > { %6760 = vmatprep.subr.bf16.mxu0 %v8225_v36 }
 0x44f   : > { %6761 = vmatpush1.bf16.msra.mxu0 %v8223_v50  ;;  %v8256_v50 = vld [vmem:[%s8934_s10 + $0x3f0] ss:$8 sps:$4 sm:$0xff]  }
 0x450   : > { %6762 = vmatprep.subr.bf16.mxu0 %v8228_v6 }
 0x453   : > { %6763 = vmatpush1.bf16.msra.mxu0 %v8226_v30 }
 0x454   : > { %6764 = vmatprep.subr.bf16.mxu0 %v8231_v15  ;;  %v8261_v15 = vld [vmem:[%s8934_s10 + $0x404] ss:$8 sps:$4 sm:$0xff]  }
 0x457   : > { %6765 = vmatpush1.bf16.msra.mxu0 %v8229_v16 }
 0x458   : > { %6766 = vmatprep.subr.bf16.mxu0 %v8234_v47 }
 0x45b   : > { %6767 = vmatpush1.bf16.msra.mxu0 %v8232_v14 }
 0x45c   : > { %6768 = vmatprep.subr.bf16.mxu0 %v8237_v33 }
 0x45f   : > { %6769 = vmatpush1.bf16.msra.mxu0 %v8235_v29 }
 0x460   : > { %6770 = vmatprep.subr.bf16.mxu0 %v8240_v52 }
 0x463   : > { %6771 = vmatpush1.bf16.msra.mxu0 %v8238_v40  ;;  %v8259_v40 = vld [vmem:[%s8934_s10 + $0x400] ss:$8 sps:$4 sm:$0xff]  }
 0x464   : > { %6772 = vmatprep.subr.bf16.mxu0 %v8243_v17 }
 0x467   : > { %6773 = vmatpush1.bf16.msra.mxu0 %v8241_v13 }
 0x468   : > { %6774 = vmatprep.subr.bf16.mxu0 %v8246_v20  ;;  %v8264_v20 = vld [vmem:[%s8934_s10 + $0x414] ss:$8 sps:$4 sm:$0xff]  }
 0x46b   : > { %6775 = vmatpush1.bf16.msra.mxu0 %v8244_v24 }
 0x46c   : > { %6776 = vmatprep.subr.bf16.mxu0 %v8249_v51 }
 0x46f   : > { %6777 = vmatpush1.bf16.msra.mxu0 %v8247_v59 }
 0x470   : > { %6778 = vmatprep.subr.bf16.mxu0 %v8252_v2 }
 0x471   : > { %v10018_v27 = vpop.f32.mrb[20].mxu1 }
 0x472   : > { %v10020_v46 = vpop.f32.mrb[21].mxu1  ;;  %v4325_v25 = vmul.f32 %v10018_v27, %v10018_v27 }
 0x473   : > { %6779 = vmatpush1.bf16.msra.mxu0 %v8250_v26  ;;  %v10022_v34 = vpop.f32.mrb[22].mxu1  ;;  %v4326_v28 = vmul.f32 %v10020_v46, %v10020_v46 }
 0x474   : > { %v4281_v23 = vadd.f32 %v10022_v34, %v10018_v27  ;;  %v4341_v61 = vmul.f32 %v10022_v34, %v10022_v34  ;;  %v10031_v39 = vpop.f32.mrb[23].mxu1  ;;  %6780 = vmatprep.subr.bf16.mxu0 %v8255_v42 }
 0x475   : > { %v4288_v63 = vadd.f32 %v10031_v39, %v10020_v46  ;;  %v4342_v37 = vmul.f32 %v10031_v39, %v10031_v39 }
 0x476   : > { %v4282_v56 = vrot.slane %v4281_v23, 4  ;;  %v4441_v0 = vadd.f32 %v4341_v61, %v4325_v25  ;;  %v8267_v61 = vld [vmem:[%s8934_s10 + $0x424] ss:$8 sps:$4 sm:$0xff]  }
 0x477   : > { %v4289_v3 = vrot.slane %v4288_v63, 4  ;;  %v4448_v36 = vadd.f32 %v4342_v37, %v4326_v28  ;;  %6781 = vmatpush1.bf16.msra.mxu0 %v8253_v31  ;;  %v8262_v31 = vld [vmem:[%s8934_s10 + $0x410] ss:$8 sps:$4 sm:$0xff]  }
 0x478   : > { %v4283_v6 = vadd.f32 %v4282_v56, %v4281_v23  ;;  %v4442_v30 = vrot.slane %v4441_v0, 4  ;;  %6782 = vmatprep.subr.bf16.mxu0 %v8258_v41 }
 0x479   : > { %v4290_v16 = vadd.f32 %v4289_v3, %v4288_v63  ;;  %v4449_v47 = vrot.slane %v4448_v36, 4 }
 0x47a   : > { %v4284_v14 = vrot.slane %v4283_v6, 2  ;;  %v4443_v33 = vadd.f32 %v4442_v30, %v4441_v0  ;;  %v8265_v0 = vld [vmem:[%s8934_s10 + $0x420] ss:$8 sps:$4 sm:$0xff]  }
 0x47b   : > { %v4291_v29 = vrot.slane %v4290_v16, 2  ;;  %v4450_v52 = vadd.f32 %v4449_v47, %v4448_v36  ;;  %6783 = vmatpush1.bf16.msra.mxu0 %v8256_v50  ;;  %v8270_v50 = vld [vmem:[%s8934_s10 + $0x434] ss:$8 sps:$4 sm:$0xff]   ;;  %v8268_v47 = vld [vmem:[%s8934_s10 + $0x430] ss:$8 sps:$4 sm:$0xff]  }
 0x47c   : > { %v4285_v17 = vadd.f32 %v4284_v14, %v4283_v6  ;;  %v4444_v13 = vrot.slane %v4443_v33, 2  ;;  %6795 = vmatprep.subr.bf16.mxu0 %v8261_v15 }
 0x47d   : > { %v4292_v24 = vadd.f32 %v4291_v29, %v4290_v16  ;;  %v4451_v51 = vrot.slane %v4450_v52, 2 }
 0x47e   : > { %v4286_v59 = vrot.slane %v4285_v17, 1  ;;  %v4445_v2 = vadd.f32 %v4444_v13, %v4443_v33  ;;  %6785 = vmatmul.mubr.bf16.vlgmr.msra.gmra.mrb[8].mxu0 %v9886_v53  ;;  %v8273_v33 = vld [vmem:[%s8934_s10 + $0x444] ss:$8 sps:$4 sm:$0xff]   ;;  %v8276_v13 = vld [vmem:[%s8934_s10 + $0x454] ss:$8 sps:$4 sm:$0xff]  }
 0x47f   : > { %v4293_v26 = vrot.slane %v4292_v24, 1  ;;  %v4452_v42 = vadd.f32 %v4451_v51, %v4450_v52  ;;  %6796 = vmatpush1.bf16.msra.mxu0 %v8259_v40  ;;  %v8277_v51 = vld [vmem:[%s8934_s10 + $0x460] ss:$8 sps:$4 sm:$0xff]  }
 0x480   : > { %v4287_v25 = vadd.f32 %v4286_v59, %v4285_v17  ;;  %v4446_v23 = vrot.slane %v4445_v2, 1  ;;  %6797 = vmatprep.subr.bf16.mxu0 %v8264_v20  ;;  %v8271_v17 = vld [vmem:[%s8934_s10 + $0x440] ss:$8 sps:$4 sm:$0xff]   ;;  %v8274_v20 = vld [vmem:[%s8934_s10 + $0x450] ss:$8 sps:$4 sm:$0xff]  }
 0x481   : > { %v4294_v41 = vadd.f32 %v4293_v26, %v4292_v24  ;;  %v4453_v28 = vrot.slane %v4452_v42, 1  ;;  %v8279_v24 = vld [vmem:[%s8934_s10 + $0x464] ss:$8 sps:$4 sm:$0xff]   ;;  %v8282_v59 = vld [vmem:[%s8934_s10 + $0x474] ss:$8 sps:$4 sm:$0xff]  }
 0x482   : > { %v10047_v63 = vmul.f32 0.0625, %v4287_v25  ;;  %v4447_v37 = vadd.f32 %v4446_v23, %v4445_v2  ;;  %v8285_v25 = vld [vmem:[%s8934_s10 + $0x484] ss:$8 sps:$4 sm:$0xff]   ;;  %v4642_v23 = vrot.slane %v4620_v54, %v9451_v62 }
 0x483   : > { %v10049_v56 = vmul.f32 0.0625, %v4294_v41  ;;  %v4454_v53 = vadd.f32 %v4453_v28, %v4452_v42  ;;  %6798 = vmatpush1.bf16.msra.mxu0 %v8262_v31  ;;  %v8280_v42 = vld [vmem:[%s8934_s10 + $0x470] ss:$8 sps:$4 sm:$0xff]   ;;  %v8283_v41 = vld [vmem:[%s8934_s10 + $0x480] ss:$8 sps:$4 sm:$0xff]  }
 0x484   : > { %v4469_v3 = vmul.f32 0.0625, %v4447_v37  ;;  %v4485_v36 = vmul.f32 %v10047_v63, %v10047_v63  ;;  %6799 = vmatprep.subr.bf16.mxu0 %v8267_v61  ;;  %v8288_v37 = vld [vmem:[%s8934_s10 + $0x494] ss:$8 sps:$4 sm:$0xff]   ;;  %v8291_v54 = vld [vmem:[%s8934_s10 + $0x4a4] ss:$8 sps:$4 sm:$0xff]  }
 0x485   : > { %v4470_v6 = vmul.f32 0.0625, %v4454_v53  ;;  %v4486_v30 = vmul.f32 %v10049_v56, %v10049_v56  ;;  %v4658_v53 = vrot.slane %v4650_v45, %v9451_v62 }
 0x486   : > { %v4501_v15 = vsub.f32 %v4469_v3, %v4485_v36  ;;  %v4520_v3 = vld [vmem:[%s8926_s11 + $0x8] sm:$0xff]  ;;  %s7923_s11 = sshll.u32 %s10334_s21, 5 }
 0x487   : > { %v4502_v16 = vsub.f32 %v4470_v6, %v4486_v30  ;;  %6800 = vmatpush1.bf16.msra.mxu0 %v8265_v0  ;;  %s390_s20 = scalar_lea.vmem %s10279_s5, %s7923_s11 }
 0x488   : > { %v4517_v14 = vmax.f32 %v4501_v15, 0.0  ;;  %6801 = vmatprep.subr.bf16.mxu0 %v8270_v50  ;;  %v8289_v50 = vld [vmem:[%s8934_s10 + $0x4a0] ss:$8 sps:$4 sm:$0xff]  }
 0x489   : > { %v4518_v29 = vmax.f32 %v4502_v16, 0.0 }
 0x48a   : > { %v4535_v52 = vadd.f32 1e-05, %v4517_v14 }
 0x48b   : > { %v4536_v40 = vadd.f32 1e-05, %v4518_v29  ;;  %6802 = vmatpush1.bf16.msra.mxu0 %v8268_v47 }
 0x48c   : > { %8479 = vrsqrt.f32 %v4535_v52  ;;  %6803 = vmatprep.subr.bf16.mxu0 %v8273_v33 }
 0x48d   : > { %8481 = vrsqrt.f32 %v4536_v40 }
 0x48f   : > { %6804 = vmatpush1.bf16.msra.mxu0 %v8271_v17 }
 0x490   : > { %6805 = vmatprep.subr.bf16.mxu0 %v8276_v13 }
 0x493   : > { %6806 = vmatpush1.bf16.msra.mxu0 %v8274_v20 }
 0x494   : > { %6807 = vmatprep.subr.bf16.mxu0 %v8279_v24 }
 0x496   : > { %v8480_v2 = vpop.eup %8479 }
 0x497   : > { %v8482_v26 = vpop.eup %8481  ;;  %6808 = vmatpush1.bf16.msra.mxu0 %v8277_v51  ;;  %v8292_v51 = vld [vmem:[%s8934_s10 + $0x4b0] ss:$8 sps:$4 sm:$0xff]  }
 0x498   : > { %v4621_v31 = vcombine.low %v8480_v2, %v8482_v26  ;;  %6809 = vmatprep.subr.bf16.mxu0 %v8282_v59  ;;  %v10318_v26 = vld [vmem:[#allocation17_spill] sm:$0xff] }
 0x49a   : > { %v4649_v61 = vrot.slane %v4621_v31, %v9451_v62 }
 0x49b   : > { %6810 = vmatpush1.bf16.msra.mxu0 %v8280_v42  ;;  %v10319_v42 = vld [vmem:[#allocation15_spill] sm:$0xff] }
 0x49c   : > { %v4651_v28 = vcombine.low %v4642_v23, %v4649_v61  ;;  %6811 = vmatprep.subr.bf16.mxu0 %v8285_v25  ;;  %v10320_v25 = vld [vmem:[#allocation16_spill] sm:$0xff] }
 0x49e   : > { %v4665_v0 = vrot.slane %v4651_v28, %v9451_v62 }
 0x49f   : > { %6812 = vmatpush1.bf16.msra.mxu0 %v8283_v41 }
 0x4a0   : > { %v4666_v55 = vcombine.low %v4658_v53, %v4665_v0  ;;  %6813 = vmatprep.subr.bf16.mxu0 %v8288_v37  ;;  %v8300_v0 = vld [vmem:[%s8934_s10 + $0x4d4] ss:$8 sps:$4 sm:$0xff]  }
 0x4a2   : > { %v4670_v36 = vmul.f32 %v4666_v55, %v4520_v3 }
 0x4a3   : > { %6814 = vmatpush1.bf16.msra.mxu0 %v8286_v7  ;;  %v10321_v7 = vld [vmem:[#allocation19_spill] sm:$0xff] }
 0x4a4   : > { %v4710_v6 = vrot.slane %v4670_v36, %v9784_v1  ;;  %v4714_v30 = vrot.slane %v4670_v36, %v9787_v4  ;;  %v4718_v15 = vrot.slane %v4670_v36, %v9791_v12  ;;  %v4722_v44 = vrot.slane %v4670_v36, %v9798_v58  ;;  %6815 = vmatprep.subr.bf16.mxu0 %v8291_v54 }
 0x4a5   : > { %v4726_v45 = vrot.slane %v4670_v36, %v9801_v60  ;;  %v4730_v16 = vrot.slane %v4670_v36, %v9806_v38  ;;  %v4734_v47 = vrot.slane %v4670_v36, %v9811_v5  ;;  %v4738_v14 = vrot.slane %v4670_v36, %v9814_v10  ;;  %v10322_v36 = vld [vmem:[#allocation18_spill] sm:$0xff] }
 0x4a6   : > { %v4763_v33 = vmul.f32 %v4710_v6, %v9627_v49  ;;  %v4764_v29 = vmul.f32 %v4714_v30, %v9629_v9  ;;  %v4765_v52 = vmul.f32 %v4718_v15, %v9941_v43  ;;  %v4766_v40 = vmul.f32 %v4722_v44, %v9943_v19  ;;  %v8297_v9 = vld [vmem:[%s8934_s10 + $0x4c4] ss:$8 sps:$4 sm:$0xff]  }
 0x4a7   : > { %v4767_v17 = vmul.f32 %v4726_v45, %v9803_v48  ;;  %v4768_v13 = vmul.f32 %v4730_v16, %v9808_v11  ;;  %v4769_v20 = vmul.f32 %v4734_v47, %v10047_v63  ;;  %v4770_v24 = vmul.f32 %v4738_v14, %v10049_v56  ;;  %6816 = vmatpush1.bf16.msra.mxu0 %v8289_v50 }
 0x4a8   : > { %v4836_v59 = vcombine.low %v4763_v33, %v4764_v29  ;;  %v4837_v2 = vcombine.low %v4765_v52, %v4766_v40  ;;  %v4920_v49 = vmul.f32 %v4738_v14, %v10031_v39  ;;  %6817 = vmatprep.subr.bf16.mxu0 %v8294_v8  ;;  %v4898_v43 = vmul.f32 %v4714_v30, %v9587_v32  ;;  %v8295_v32 = vld [vmem:[%s8934_s10 + $0x4c0] ss:$8 sps:$4 sm:$0xff]  }
 0x4a9   : > { %v4838_v19 = vcombine.low %v4767_v17, %v4768_v13  ;;  %v4839_v48 = vcombine.low %v4769_v20, %v4770_v24  ;;  %v4914_v11 = vmul.f32 %v4714_v30, %v10318_v26  ;;  %v4897_v63 = vmul.f32 %v4710_v6, %v10319_v42  ;;  %v8304_v20 = vld [vmem:[%s8934_s10 + $0x4f0] ss:$8 sps:$4 sm:$0xff]   ;;  %v8307_v26 = vld [vmem:[%s8934_s10 + $0x500] ss:$8 sps:$4 sm:$0xff]  }
 0x4aa   : > { %v4846_v56 = vrot.slane %v4836_v59, %v9451_v62  ;;  %v4853_v31 = vrot.slane %v4837_v2, %v9451_v62  ;;  %v4913_v23 = vmul.f32 %v4710_v6, %v10320_v25  ;;  %v4900_v61 = vmul.f32 %v4722_v44, %v9913_v22  ;;  %v10323_v6 = vld [vmem:[#allocation20_spill] sm:$0xff]  ;;  %v8312_v25 = vld [vmem:[%s8934_s10 + $0x514] ss:$8 sps:$4 sm:$0xff]  }
 0x4ab   : > { %v4860_v39 = vrot.slane %v4838_v19, %v9451_v62  ;;  %v4867_v41 = vrot.slane %v4839_v48, %v9451_v62  ;;  %6818 = vmatpush1.bf16.msra.mxu0 %v8292_v51  ;;  %v4916_v28 = vmul.f32 %v4722_v44, %v9924_v57  ;;  %v4899_v37 = vmul.f32 %v4718_v15, %v9911_v35 }
 0x4ac   : > { %v4868_v53 = vcombine.low %v4846_v56, %v4853_v31  ;;  %6819 = vmatprep.subr.bf16.mxu0 %v8297_v9  ;;  %v4915_v3 = vmul.f32 %v4718_v15, %v9915_v18  ;;  %v4902_v22 = vmul.f32 %v4730_v16, %v10321_v7  ;;  %v4918_v55 = vmul.f32 %v4730_v16, %v9758_v21  ;;  %v8298_v15 = vld [vmem:[%s8934_s10 + $0x4d0] ss:$8 sps:$4 sm:$0xff]   ;;  %v8303_v16 = vld [vmem:[%s8934_s10 + $0x4e4] ss:$8 sps:$4 sm:$0xff]  }
 0x4ad   : > { %v4869_v54 = vcombine.low %v4860_v39, %v4867_v41  ;;  %v4901_v50 = vmul.f32 %v4726_v45, %v10322_v36  ;;  %v4917_v57 = vmul.f32 %v4726_v45, %v10323_v6  ;;  %v4904_v35 = vmul.f32 %v4738_v14, %v10020_v46  ;;  %v4672_v21 = vld [vmem:[%s8932_s13 + $0x8] sm:$0xff] }
 0x4ae   : > { %v4876_v30 = vrot.slane %v4868_v53, %v9451_v62  ;;  %v4903_v44 = vmul.f32 %v4734_v47, %v10018_v27  ;;  %v4919_v8 = vmul.f32 %v4734_v47, %v10022_v34  ;;  %v8301_v45 = vld [vmem:[%s8934_s10 + $0x4e0] ss:$8 sps:$4 sm:$0xff]   ;;  %v8306_v46 = vld [vmem:[%s8934_s10 + $0x4f4] ss:$8 sps:$4 sm:$0xff]   ;;  %v8310_v7 = vld [vmem:[%s8934_s10 + $0x510] ss:$8 sps:$4 sm:$0xff]  }
 0x4af   : > { %v4883_v18 = vrot.slane %v4869_v54, %v9451_v62  ;;  %6820 = vmatpush1.bf16.msra.mxu0 %v8295_v32  ;;  %v8315_v36 = vld [vmem:[%s8934_s10 + $0x524] ss:$8 sps:$4 sm:$0xff]  }
 0x4b0   : > { %6821 = vmatprep.subr.bf16.mxu0 %v8300_v0 }
 0x4b1   : > { %v4884_v33 = vcombine.low %v4876_v30, %v4883_v18  ;;  %v8316_v18 = vld [vmem:[%s8934_s10 + $0x530] ss:$8 sps:$4 sm:$0xff]  }
 0x4b3   : > { %v4888_v29 = vsub.f32 %v4672_v21, %v4884_v33  ;;  %6822 = vmatpush1.bf16.msra.mxu0 %v8298_v15  ;;  %v8321_v15 = vld [vmem:[%s8934_s10 + $0x544] ss:$8 sps:$4 sm:$0xff]   ;;  %v8319_v21 = vld [vmem:[%s8934_s10 + $0x540] ss:$8 sps:$4 sm:$0xff]   ;;  %v8322_v33 = vld [vmem:[%s8934_s10 + $0x550] ss:$8 sps:$4 sm:$0xff]  }
 0x4b4   : > { %6823 = vmatprep.subr.bf16.mxu0 %v8303_v16  ;;  %v8324_v16 = vld [vmem:[%s8934_s10 + $0x554] ss:$8 sps:$4 sm:$0xff]  }
 0x4b5   : > { %v4986_v14 = vrot.slane %v4888_v29, %v9814_v10  ;;  %v4962_v27 = vrot.slane %v4888_v29, %v9787_v4  ;;  %v4958_v34 = vrot.slane %v4888_v29, %v9784_v1  ;;  %v4970_v62 = vrot.slane %v4888_v29, %v9798_v58  ;;  %v8309_v4 = vld [vmem:[%s8934_s10 + $0x504] ss:$8 sps:$4 sm:$0xff]  }
 0x4b6   : > { %v4966_v47 = vrot.slane %v4888_v29, %v9791_v12  ;;  %v4978_v52 = vrot.slane %v4888_v29, %v9806_v38  ;;  %v4974_v40 = vrot.slane %v4888_v29, %v9801_v60  ;;  %v4982_v17 = vrot.slane %v4888_v29, %v9811_v5  ;;  %v8327_v29 = vld [vmem:[%s8934_s10 + $0x564] ss:$8 sps:$4 sm:$0xff]  }
 0x4b7   : > { %v5034_v13 = vadd.f32 %v4986_v14, %v4920_v49  ;;  %6824 = vmatpush1.bf16.msra.mxu0 %v8301_v45  ;;  %v5012_v24 = vadd.f32 %v4962_v27, %v4898_v43  ;;  %v5028_v51 = vadd.f32 %v4962_v27, %v4914_v11  ;;  %v5011_v10 = vadd.f32 %v4958_v34, %v4897_v63  ;;  %v8325_v45 = vld [vmem:[%s8934_s10 + $0x560] ss:$8 sps:$4 sm:$0xff]   ;;  %v8333_v27 = vld [vmem:[%s8934_s10 + $0x584] ss:$8 sps:$4 sm:$0xff]  }
 0x4b8   : > { %6825 = vmatprep.subr.bf16.mxu0 %v8306_v46  ;;  %v5027_v1 = vadd.f32 %v4958_v34, %v4913_v23  ;;  %v5014_v59 = vadd.f32 %v4970_v62, %v4900_v61  ;;  %v5030_v58 = vadd.f32 %v4970_v62, %v4916_v28  ;;  %v5013_v2 = vadd.f32 %v4966_v47, %v4899_v37  ;;  %v8330_v46 = vld [vmem:[%s8934_s10 + $0x574] ss:$8 sps:$4 sm:$0xff]   ;;  %v8331_v34 = vld [vmem:[%s8934_s10 + $0x580] ss:$8 sps:$4 sm:$0xff]  }
 0x4b9   : > { %v5066_v12 = vmax.f32 %v5034_v13, 0.0  ;;  %v5044_v9 = vmax.f32 %v5012_v24, 0.0  ;;  %v5060_v38 = vmax.f32 %v5028_v51, 0.0  ;;  %v5043_v60 = vmax.f32 %v5011_v10, 0.0  ;;  %v8336_v62 = vld [vmem:[%s8934_s10 + $0x594] ss:$8 sps:$4 sm:$0xff]  }
 0x4ba   : > { %v5059_v19 = vmax.f32 %v5027_v1, 0.0  ;;  %v5046_v5 = vmax.f32 %v5014_v59, 0.0  ;;  %v5062_v49 = vmax.f32 %v5030_v58, 0.0  ;;  %v5029_v48 = vadd.f32 %v4966_v47, %v4915_v3  ;;  %v8334_v47 = vld [vmem:[%s8934_s10 + $0x590] ss:$8 sps:$4 sm:$0xff]  }
 0x4bb   : > { %6826 = vmatpush1.bf16.msra.mxu0 %v8304_v20  ;;  %v5080_v43 = vpack.c.bf16 %v5060_v38, %v5044_v9  ;;  %v5045_v11 = vmax.f32 %v5013_v2, 0.0  ;;  %v5016_v42 = vadd.f32 %v4978_v52, %v4902_v22  ;;  %v5032_v63 = vadd.f32 %v4978_v52, %v4918_v55  ;;  %v8339_v52 = vld [vmem:[%s8934_s10 + $0x5a4] ss:$8 sps:$4 sm:$0xff]   ;;  %v8340_v13 = vld [vmem:[%s8934_s10 + $0x5b0] ss:$8 sps:$4 sm:$0xff]  }
 0x4bc   : > { %6838 = vmatprep.subr.bf16.mxu0 %v8309_v4  ;;  %v5079_v56 = vpack.c.bf16 %v5059_v19, %v5043_v60  ;;  %v5082_v31 = vpack.c.bf16 %v5062_v49, %v5046_v5  ;;  %v5061_v23 = vmax.f32 %v5029_v48, 0.0  ;;  %v5015_v61 = vadd.f32 %v4974_v40, %v4901_v50  ;;  %v8345_v20 = vld [vmem:[%s8934_s10 + $0x5c4] ss:$8 sps:$4 sm:$0xff]   ;;  %v8343_v24 = vld [vmem:[%s8934_s10 + $0x5c0] ss:$8 sps:$4 sm:$0xff]  }
 0x4bd   : > { %6827 = vmatprep.mubr.bf16.mxu0 %v5080_v43  ;;  %v5048_v39 = vmax.f32 %v5016_v42, 0.0  ;;  %v5064_v41 = vmax.f32 %v5032_v63, 0.0  ;;  %v5031_v32 = vadd.f32 %v4974_v40, %v4917_v57  ;;  %v5018_v28 = vadd.f32 %v4986_v14, %v4904_v35  ;;  %v8328_v14 = vld [vmem:[%s8934_s10 + $0x570] ss:$8 sps:$4 sm:$0xff]   ;;  %v8337_v40 = vld [vmem:[%s8934_s10 + $0x5a0] ss:$8 sps:$4 sm:$0xff]  }
 0x4be   : > { %6828 = vmatmul.mubr.bf16.vlgmr.msra.gmra.mrb[8].mxu0 %v5079_v56  ;;  %v10143_v37 = vpack.c.bf16 %v5061_v23, %v5045_v11  ;;  %v5047_v53 = vmax.f32 %v5015_v61, 0.0  ;;  %v5017_v0 = vadd.f32 %v4982_v17, %v4903_v44  ;;  %v5033_v3 = vadd.f32 %v4982_v17, %v4919_v8  ;;  %v8313_v44 = vld [vmem:[%s8934_s10 + $0x520] ss:$8 sps:$4 sm:$0xff]   ;;  %v8318_v8 = vld [vmem:[%s8934_s10 + $0x534] ss:$8 sps:$4 sm:$0xff]  }
 0x4bf   : > { %6839 = vmatpush1.bf16.msra.mxu0 %v8307_v26  ;;  %6870 = vmatprep.mubr.bf16.mxu0 %v5082_v31  ;;  %v10146_v22 = vpack.c.bf16 %v5064_v41, %v5048_v39  ;;  %v5063_v55 = vmax.f32 %v5031_v32, 0.0  ;;  %v5050_v54 = vmax.f32 %v5018_v28, 0.0  ;;  %v8342_v17 = vld [vmem:[%s8934_s10 + $0x5b4] ss:$8 sps:$4 sm:$0xff]   ;;  %v8346_v10 = vld [vmem:[%s8934_s10 + $0x5d0] ss:$8 sps:$4 sm:$0xff]  }
 0x4c0   : > { %6840 = vmatprep.subr.bf16.mxu0 %v8312_v25  ;;  %v5049_v50 = vmax.f32 %v5017_v0, 0.0  ;;  %v5065_v6 = vmax.f32 %v5033_v3, 0.0  ;;  %v8348_v51 = vld [vmem:[%s8934_s10 + $0x5d4] ss:$8 sps:$4 sm:$0xff]   ;;  %v8351_v4 = vld [vmem:[%s8934_s10 + $0x5e4] ss:$8 sps:$4 sm:$0xff]  }
 0x4c1   : > { %v10149_v57 = vpack.c.bf16 %v5063_v55, %v5047_v53  ;;  %v10151_v35 = vpack.c.bf16 %v5066_v12, %v5050_v54  ;;  %v8349_v1 = vld [vmem:[%s8934_s10 + $0x5e0] ss:$8 sps:$4 sm:$0xff]   ;;  %v8354_v59 = vld [vmem:[%s8934_s10 + $0x5f4] ss:$8 sps:$4 sm:$0xff]   ;;  %v8352_v58 = vld [vmem:[%s8934_s10 + $0x5f0] ss:$8 sps:$4 sm:$0xff]  }
 0x4c2   : > { %v10153_v30 = vpack.c.bf16 %v5065_v6, %v5049_v50  ;;  %v8357_v2 = vld [vmem:[%s8934_s10 + $0x604] ss:$8 sps:$4 sm:$0xff]   ;;  %v8355_v12 = vld [vmem:[%s8934_s10 + $0x600] ss:$8 sps:$4 sm:$0xff]   ;;  %v8360_v9 = vld [vmem:[%s8934_s10 + $0x614] ss:$8 sps:$4 sm:$0xff]  }
 0x4c3   : > { %6841 = vmatpush1.bf16.msra.mxu0 %v8310_v7  ;;  %v8358_v38 = vld [vmem:[%s8934_s10 + $0x610] ss:$8 sps:$4 sm:$0xff]   ;;  %v8363_v60 = vld [vmem:[%s8934_s10 + $0x624] ss:$8 sps:$4 sm:$0xff]   ;;  %v8361_v19 = vld [vmem:[%s8934_s10 + $0x620] ss:$8 sps:$4 sm:$0xff]  }
 0x4c4   : > { %6842 = vmatprep.subr.bf16.mxu0 %v8315_v36  ;;  %v8366_v5 = vld [vmem:[%s8934_s10 + $0x634] ss:$8 sps:$4 sm:$0xff]   ;;  %v8364_v49 = vld [vmem:[%s8934_s10 + $0x630] ss:$8 sps:$4 sm:$0xff]   ;;  %v8369_v48 = vld [vmem:[%s8934_s10 + $0x644] ss:$8 sps:$4 sm:$0xff]  }
 0x4c5   : > { %v8367_v43 = vld [vmem:[%s8934_s10 + $0x640] ss:$8 sps:$4 sm:$0xff]   ;;  %v8372_v26 = vld [vmem:[%s8934_s10 + $0x654] ss:$8 sps:$4 sm:$0xff]   ;;  %v8370_v11 = vld [vmem:[%s8934_s10 + $0x650] ss:$8 sps:$4 sm:$0xff]  }
 0x4c6   : > { %v8375_v42 = vld [vmem:[%s8934_s10 + $0x664] ss:$8 sps:$4 sm:$0xff]   ;;  %v8373_v63 = vld [vmem:[%s8934_s10 + $0x660] ss:$8 sps:$4 sm:$0xff]   ;;  %v8378_v56 = vld [vmem:[%s8934_s10 + $0x674] ss:$8 sps:$4 sm:$0xff]  }
 0x4c7   : > { %6843 = vmatpush1.bf16.msra.mxu0 %v8313_v44  ;;  %v8376_v31 = vld [vmem:[%s8934_s10 + $0x670] ss:$8 sps:$4 sm:$0xff]   ;;  %v8381_v25 = vld [vmem:[%s8934_s10 + $0x684] ss:$8 sps:$4 sm:$0xff]   ;;  %v8379_v23 = vld [vmem:[%s8934_s10 + $0x680] ss:$8 sps:$4 sm:$0xff]  }
 0x4c8   : > { %6844 = vmatprep.subr.bf16.mxu0 %v8318_v8  ;;  %v8384_v61 = vld [vmem:[%s8934_s10 + $0x694] ss:$8 sps:$4 sm:$0xff]   ;;  %v8382_v39 = vld [vmem:[%s8934_s10 + $0x690] ss:$8 sps:$4 sm:$0xff]   ;;  %v8387_v41 = vld [vmem:[%s8934_s10 + $0x6a4] ss:$8 sps:$4 sm:$0xff]  }
 0x4c9   : > { %v8385_v32 = vld [vmem:[%s8934_s10 + $0x6a0] ss:$8 sps:$4 sm:$0xff]   ;;  %v8390_v28 = vld [vmem:[%s8934_s10 + $0x6b4] ss:$8 sps:$4 sm:$0xff]   ;;  %v8393_v53 = vld [vmem:[%s8934_s10 + $0x6c4] ss:$8 sps:$4 sm:$0xff]  }
 0x4ca   : > { %v8391_v0 = vld [vmem:[%s8934_s10 + $0x6c0] ss:$8 sps:$4 sm:$0xff]   ;;  %v8396_v3 = vld [vmem:[%s8934_s10 + $0x6d4] ss:$8 sps:$4 sm:$0xff]   ;;  %v8394_v7 = vld [vmem:[%s8934_s10 + $0x6d0] ss:$8 sps:$4 sm:$0xff]  }
 0x4cb   : > { %6845 = vmatpush1.bf16.msra.mxu0 %v8316_v18  ;;  %v8397_v55 = vld [vmem:[%s8934_s10 + $0x6e0] ss:$8 sps:$4 sm:$0xff]   ;;  %v8402_v54 = vld [vmem:[%s8934_s10 + $0x6f4] ss:$8 sps:$4 sm:$0xff]   ;;  %v8400_v36 = vld [vmem:[%s8934_s10 + $0x6f0] ss:$8 sps:$4 sm:$0xff]  }
 0x4cc   : > { %6846 = vmatprep.subr.bf16.mxu0 %v8321_v15  ;;  %v8405_v50 = vld [vmem:[%s8934_s10 + $0x704] ss:$8 sps:$4 sm:$0xff]   ;;  %v8403_v6 = vld [vmem:[%s8934_s10 + $0x700] ss:$8 sps:$4 sm:$0xff]   ;;  %v8408_v44 = vld [vmem:[%s8934_s10 + $0x714] ss:$8 sps:$4 sm:$0xff]  }
 0x4cd   : > { %v8406_v8 = vld [vmem:[%s8934_s10 + $0x710] ss:$8 sps:$4 sm:$0xff]   ;;  %v8411_v18 = vld [vmem:[%s8934_s10 + $0x724] ss:$8 sps:$4 sm:$0xff]   ;;  %v8409_v15 = vld [vmem:[%s8934_s10 + $0x720] ss:$8 sps:$4 sm:$0xff]  }
 0x4cf   : > { %6847 = vmatpush1.bf16.msra.mxu0 %v8319_v21  ;;  %v8414_v21 = vld [vmem:[%s8934_s10 + $0x734] ss:$8 sps:$4 sm:$0xff]  }
 0x4d0   : > { %6848 = vmatprep.subr.bf16.mxu0 %v8324_v16  ;;  %v8412_v16 = vld [vmem:[%s8934_s10 + $0x730] ss:$8 sps:$4 sm:$0xff]  }
 0x4d3   : > { %6849 = vmatpush1.bf16.msra.mxu0 %v8322_v33  ;;  %v8415_v33 = vld [vmem:[%s8934_s10 + $0x740] ss:$8 sps:$4 sm:$0xff]  }
 0x4d4   : > { %6850 = vmatprep.subr.bf16.mxu0 %v8327_v29  ;;  %v8418_v29 = vld [vmem:[%s8934_s10 + $0x750] ss:$8 sps:$4 sm:$0xff]  }
 0x4d7   : > { %6851 = vmatpush1.bf16.msra.mxu0 %v8325_v45  ;;  %v8423_v45 = vld [vmem:[%s8934_s10 + $0x764] ss:$8 sps:$4 sm:$0xff]  }
 0x4d8   : > { %6852 = vmatprep.subr.bf16.mxu0 %v8330_v46  ;;  %v8421_v46 = vld [vmem:[%s8934_s10 + $0x760] ss:$8 sps:$4 sm:$0xff]  }
 0x4db   : > { %6853 = vmatpush1.bf16.msra.mxu0 %v8328_v14  ;;  %v8426_v14 = vld [vmem:[%s8934_s10 + $0x774] ss:$8 sps:$4 sm:$0xff]  }
 0x4dc   : > { %6854 = vmatprep.subr.bf16.mxu0 %v8333_v27  ;;  %v8424_v27 = vld [vmem:[%s8934_s10 + $0x770] ss:$8 sps:$4 sm:$0xff]  }
 0x4df   : > { %6855 = vmatpush1.bf16.msra.mxu0 %v8331_v34  ;;  %v8429_v34 = vld [vmem:[%s8934_s10 + $0x784] ss:$8 sps:$4 sm:$0xff]  }
 0x4e0   : > { %6856 = vmatprep.subr.bf16.mxu0 %v8336_v62  ;;  %v8427_v62 = vld [vmem:[%s8934_s10 + $0x780] ss:$8 sps:$4 sm:$0xff]  }
 0x4e3   : > { %6857 = vmatpush1.bf16.msra.mxu0 %v8334_v47  ;;  %v8432_v47 = vld [vmem:[%s8934_s10 + $0x794] ss:$8 sps:$4 sm:$0xff]  }
 0x4e4   : > { %6858 = vmatprep.subr.bf16.mxu0 %v8339_v52  ;;  %v8430_v52 = vld [vmem:[%s8934_s10 + $0x790] ss:$8 sps:$4 sm:$0xff]  }
 0x4e7   : > { %6859 = vmatpush1.bf16.msra.mxu0 %v8337_v40  ;;  %v8435_v40 = vld [vmem:[%s8934_s10 + $0x7a4] ss:$8 sps:$4 sm:$0xff]  }
 0x4e8   : > { %6860 = vmatprep.subr.bf16.mxu0 %v8342_v17  ;;  %v8433_v17 = vld [vmem:[%s8934_s10 + $0x7a0] ss:$8 sps:$4 sm:$0xff]  }
 0x4eb   : > { %6861 = vmatpush1.bf16.msra.mxu0 %v8340_v13  ;;  %v8438_v13 = vld [vmem:[%s8934_s10 + $0x7b4] ss:$8 sps:$4 sm:$0xff]  }
 0x4ec   : > { %6862 = vmatprep.subr.bf16.mxu0 %v8345_v20  ;;  %v8436_v20 = vld [vmem:[%s8934_s10 + $0x7b0] ss:$8 sps:$4 sm:$0xff]  }
 0x4ef   : > { %6863 = vmatpush1.bf16.msra.mxu0 %v8343_v24  ;;  %v8441_v24 = vld [vmem:[%s8934_s10 + $0x7c4] ss:$8 sps:$4 sm:$0xff]  }
 0x4f0   : > { %6864 = vmatprep.subr.bf16.mxu0 %v8348_v51  ;;  %v8439_v51 = vld [vmem:[%s8934_s10 + $0x7c0] ss:$8 sps:$4 sm:$0xff]  }
 0x4f3   : > { %6865 = vmatpush1.bf16.msra.mxu0 %v8346_v10  ;;  %v8444_v10 = vld [vmem:[%s8934_s10 + $0x7d4] ss:$8 sps:$4 sm:$0xff]  }
 0x4f4   : > { %6866 = vmatprep.subr.bf16.mxu0 %v8351_v4  ;;  %v8442_v4 = vld [vmem:[%s8934_s10 + $0x7d0] ss:$8 sps:$4 sm:$0xff]  }
 0x4f7   : > { %6867 = vmatpush1.bf16.msra.mxu0 %v8349_v1  ;;  %v8447_v1 = vld [vmem:[%s8934_s10 + $0x7e4] ss:$8 sps:$4 sm:$0xff]  }
 0x4f8   : > { %6868 = vmatprep.subr.bf16.mxu0 %v8354_v59  ;;  %v8445_v59 = vld [vmem:[%s8934_s10 + $0x7e0] ss:$8 sps:$4 sm:$0xff]  }
 0x4fb   : > { %6869 = vmatpush1.bf16.msra.mxu0 %v8352_v58  ;;  %v8450_v58 = vld [vmem:[%s8934_s10 + $0x7f4] ss:$8 sps:$4 sm:$0xff]  }
 0x4fc   : > { %6881 = vmatprep.subr.bf16.mxu0 %v8357_v2  ;;  %v8448_v2 = vld [vmem:[%s8934_s10 + $0x7f0] ss:$8 sps:$4 sm:$0xff]  }
 0x4fe   : > { %6871 = vmatmul.mubr.bf16.vlgmr.msra.gmra.mrb[8].mxu0 %v10143_v37  ;;  %v8388_v37 = vld [vmem:[%s8934_s10 + $0x6b0] ss:$8 sps:$4 sm:$0xff]  }
 0x4ff   : > { %6882 = vmatpush1.bf16.msra.mxu0 %v8355_v12  ;;  %6913 = vmatprep.mubr.bf16.mxu0 %v10146_v22  ;;  %v8399_v22 = vld [vmem:[%s8934_s10 + $0x6e4] ss:$8 sps:$4 sm:$0xff]  }
 0x500   : > { %6883 = vmatprep.subr.bf16.mxu0 %v8360_v9 }
 0x503   : > { %6884 = vmatpush1.bf16.msra.mxu0 %v8358_v38 }
 0x504   : > { %6885 = vmatprep.subr.bf16.mxu0 %v8363_v60 }
 0x507   : > { %6886 = vmatpush1.bf16.msra.mxu0 %v8361_v19 }
 0x508   : > { %6887 = vmatprep.subr.bf16.mxu0 %v8366_v5 }
 0x50b   : > { %6888 = vmatpush1.bf16.msra.mxu0 %v8364_v49 }
 0x50c   : > { %6889 = vmatprep.subr.bf16.mxu0 %v8369_v48 }
 0x50f   : > { %6890 = vmatpush1.bf16.msra.mxu0 %v8367_v43 }
 0x510   : > { %6891 = vmatprep.subr.bf16.mxu0 %v8372_v26 }
 0x513   : > { %6892 = vmatpush1.bf16.msra.mxu0 %v8370_v11 }
 0x514   : > { %6893 = vmatprep.subr.bf16.mxu0 %v8375_v42 }
 0x517   : > { %6894 = vmatpush1.bf16.msra.mxu0 %v8373_v63 }
 0x518   : > { %6895 = vmatprep.subr.bf16.mxu0 %v8378_v56 }
 0x51b   : > { %6896 = vmatpush1.bf16.msra.mxu0 %v8376_v31 }
 0x51c   : > { %6897 = vmatprep.subr.bf16.mxu0 %v8381_v25 }
 0x51f   : > { %6898 = vmatpush1.bf16.msra.mxu0 %v8379_v23 }
 0x520   : > { %6899 = vmatprep.subr.bf16.mxu0 %v8384_v61 }
 0x523   : > { %6900 = vmatpush1.bf16.msra.mxu0 %v8382_v39 }
 0x524   : > { %6901 = vmatprep.subr.bf16.mxu0 %v8387_v41 }
 0x527   : > { %6902 = vmatpush1.bf16.msra.mxu0 %v8385_v32 }
 0x528   : > { %6903 = vmatprep.subr.bf16.mxu0 %v8390_v28 }
 0x52b   : > { %6904 = vmatpush1.bf16.msra.mxu0 %v8388_v37 }
 0x52c   : > { %6905 = vmatprep.subr.bf16.mxu0 %v8393_v53 }
 0x52f   : > { %6906 = vmatpush1.bf16.msra.mxu0 %v8391_v0 }
 0x530   : > { %6907 = vmatprep.subr.bf16.mxu0 %v8396_v3 }
 0x533   : > { %6908 = vmatpush1.bf16.msra.mxu0 %v8394_v7 }
 0x534   : > { %6909 = vmatprep.subr.bf16.mxu0 %v8399_v22 }
 0x537   : > { %6910 = vmatpush1.bf16.msra.mxu0 %v8397_v55 }
 0x538   : > { %6911 = vmatprep.subr.bf16.mxu0 %v8402_v54 }
 0x53b   : > { %6912 = vmatpush1.bf16.msra.mxu0 %v8400_v36 }
 0x53c   : > { %6924 = vmatprep.subr.bf16.mxu0 %v8405_v50 }
 0x53e   : > { %6914 = vmatmul.mubr.bf16.vlgmr.msra.gmra.mrb[8].mxu0 %v10149_v57  ;;  %v8417_v57 = vld [vmem:[%s8934_s10 + $0x744] ss:$8 sps:$4 sm:$0xff]  }
 0x53f   : > { %6925 = vmatpush1.bf16.msra.mxu0 %v8403_v6  ;;  %6956 = vmatprep.mubr.bf16.mxu0 %v10151_v35  ;;  %v8420_v35 = vld [vmem:[%s8934_s10 + $0x754] ss:$8 sps:$4 sm:$0xff]  }
 0x540   : > { %6926 = vmatprep.subr.bf16.mxu0 %v8408_v44 }
 0x543   : > { %6927 = vmatpush1.bf16.msra.mxu0 %v8406_v8 }
 0x544   : > { %6928 = vmatprep.subr.bf16.mxu0 %v8411_v18 }
 0x547   : > { %6929 = vmatpush1.bf16.msra.mxu0 %v8409_v15 }
 0x548   : > { %6930 = vmatprep.subr.bf16.mxu0 %v8414_v21 }
 0x54b   : > { %6931 = vmatpush1.bf16.msra.mxu0 %v8412_v16 }
 0x54c   : > { %6932 = vmatprep.subr.bf16.mxu0 %v8417_v57 }
 0x54f   : > { %6933 = vmatpush1.bf16.msra.mxu0 %v8415_v33 }
 0x550   : > { %6934 = vmatprep.subr.bf16.mxu0 %v8420_v35 }
 0x553   : > { %6935 = vmatpush1.bf16.msra.mxu0 %v8418_v29 }
 0x554   : > { %6936 = vmatprep.subr.bf16.mxu0 %v8423_v45 }
 0x557   : > { %6937 = vmatpush1.bf16.msra.mxu0 %v8421_v46 }
 0x558   : > { %6938 = vmatprep.subr.bf16.mxu0 %v8426_v14 }
 0x55b   : > { %6939 = vmatpush1.bf16.msra.mxu0 %v8424_v27 }
 0x55c   : > { %6940 = vmatprep.subr.bf16.mxu0 %v8429_v34 }
 0x55f   : > { %6941 = vmatpush1.bf16.msra.mxu0 %v8427_v62 }
 0x560   : > { %6942 = vmatprep.subr.bf16.mxu0 %v8432_v47 }
 0x563   : > { %6943 = vmatpush1.bf16.msra.mxu0 %v8430_v52 }
 0x564   : > { %6944 = vmatprep.subr.bf16.mxu0 %v8435_v40 }
 0x567   : > { %6945 = vmatpush1.bf16.msra.mxu0 %v8433_v17 }
 0x568   : > { %6946 = vmatprep.subr.bf16.mxu0 %v8438_v13 }
 0x56b   : > { %6947 = vmatpush1.bf16.msra.mxu0 %v8436_v20 }
 0x56c   : > { %6948 = vmatprep.subr.bf16.mxu0 %v8441_v24 }
 0x56f   : > { %6949 = vmatpush1.bf16.msra.mxu0 %v8439_v51 }
 0x570   : > { %6950 = vmatprep.subr.bf16.mxu0 %v8444_v10 }
 0x573   : > { %6951 = vmatpush1.bf16.msra.mxu0 %v8442_v4 }
 0x574   : > { %6952 = vmatprep.subr.bf16.mxu0 %v8447_v1 }
 0x577   : > { %6953 = vmatpush1.bf16.msra.mxu0 %v8445_v59 }
 0x578   : > { %6954 = vmatprep.subr.bf16.mxu0 %v8450_v58 }
 0x57b   : > { %6955 = vmatpush1.bf16.msra.mxu0 %v8448_v2 }
 0x57e   : > { %6957 = vmatmul.mubr.bf16.vlgmr.msra.gmra.mrb[8].mxu0 %v10153_v30 }
 0x651   : > { %v6958_v12 = vpop.f32.mrb[8].mxu0 }
 0x652   : > { %v6960_v9 = vpop.f32.mrb[9].mxu0  ;;  %6971 = vst [vmem:[%s390_s20] sm:$0xff] %v6958_v12 }
 0x653   : > { %v6962_v38 = vpop.f32.mrb[10].mxu0  ;;  %6972 = vst [vmem:[%s390_s20 + $0x8] sm:$0xff] %v6960_v9 }
 0x654   : > { %v6964_v60 = vpop.f32.mrb[11].mxu0  ;;  %6973 = vst [vmem:[%s390_s20 + $0x10] sm:$0xff] %v6962_v38 }
 0x655   : > { %6974 = vst [vmem:[%s390_s20 + $0x18] sm:$0xff] %v6964_v60 }
 0x656 PF: > { %s24_s23 = sadd.s32 1, %s8672_s23   ;;  %s10324_s10 = sld [smem:[#allocation12_spill]] }
 0x657   : > { %p21_p3 = scmp.ge.s32.totalorder %s24_s23, 4   ;;  %s10325_s20 = sld [smem:[#allocation14_spill]] }
 0x658   : > { %s10326_s25 = sld [smem:[#allocation13_spill]]  ;;  %s10327_s18 = smov %s8656_s19 }
 0x659   : > { %s10329_s21 = smov %s8668_s22  ;;  %23 = sbr.rel (!%p21_p3) target bundleno = 11 (0xb), region = 121 }
 0x65c   : > { %s10328_s19 = smov %s10324_s10 }
 0x65e   : > { %s10330_s22 = smov %s10326_s25 }
 0x660   :  { %6996 = vsyncpa [#allocation3], 1 }
 0x661   :  { %6998 = vsyncpa [#allocation3 + $0x1], 1 }
 0x662   :  { %6999 = vsyncpa [#allocation5], 1 }
 0x663   :  { %7001 = vsyncpa [#allocation5 + $0x1], 1 }
 0x664   :  { %7002 = vsyncpa [#allocation8], 1 }
 0x665   :  { %7004 = vsyncpa [#allocation8 + $0x1], 1 }

</bundles_post_ra>
